<compile_context>
chip_gen: v6e
topology: v6e:2x2x1
jax: 0.10.0
libtpu: 0.0.40
codegen_flags: <defaults>
</compile_context>

<pallas_src>
import functools
import math

import jax
import jax.numpy as jnp
from jax import lax
from jax.experimental import pallas as pl
from jax.experimental.pallas import tpu as pltpu


# ----------------------------------------------------------------------------
# In-kernel helpers
# ----------------------------------------------------------------------------
def _layer_norm(x, w, b, eps=1e-5):
    mu = jnp.mean(x, axis=-1, keepdims=True)
    var = jnp.mean(jnp.square(x - mu), axis=-1, keepdims=True)
    return (x - mu) * lax.rsqrt(var + eps) * w + b


# ----------------------------------------------------------------------------
# Fused ViT kernel: grid = (batch_block, layer)
# ----------------------------------------------------------------------------
def _vit_fused_kernel(
        # inputs
        patch_ref, pw_ref, pb_ref, cls_ref, pos_ref, colm_ref, rowm_ref,
        ln1w_ref, ln1b_ref, wqkv_ref, bqkv_ref, wo_ref, bo_ref,
        ln2w_ref, ln2b_ref, w1_ref, b1_ref, w2_ref, b2_ref,
        hlnw_ref, hlnb_ref, hw_ref, hb_ref,
        # output
        logits_ref,
        # scratch
        tok_ref,
        *, seq_len, num_heads, ffn_chunk):
    l = pl.program_id(1)
    n_layers = pl.num_programs(1)
    Bt, S_pad, E = tok_ref.shape
    N = patch_ref.shape[1]
    S = seq_len
    Dh = E // num_heads
    hid = w1_ref.shape[2]

    # ---- layer step 0: patch embedding + cls token + positional embedding ---
    @pl.when(l == 0)
    def _():
        patches = patch_ref[...].reshape(Bt * N, -1).astype(jnp.bfloat16)
        emb = jnp.dot(patches, pw_ref[...],
                      preferred_element_type=jnp.float32) + pb_ref[...]   # (Bt*N, E)
        emb3 = emb.reshape(Bt, N, E)
        cls_b = jnp.broadcast_to(cls_ref[...][None, :, :], (Bt, 1, E))
        pad = jnp.zeros((Bt, S_pad - S, E), jnp.float32)
        tok = jnp.concatenate([cls_b, emb3, pad], axis=1)                 # (Bt, S_pad, E)
        # dropout: inference mode -> identity.  pos rows >= S are zero-padded.
        tok_ref[...] = tok + pos_ref[...][None, :, :]

    x = tok_ref[...].reshape(Bt * S_pad, E)       # residual stream, resident in VMEM

    # ---- self-attention block (pre-norm) ----
    xn = _layer_norm(x, ln1w_ref[0], ln1b_ref[0]).astype(jnp.bfloat16)
    qkv = jnp.dot(xn, wqkv_ref[0],
                  preferred_element_type=jnp.float32) + bqkv_ref[0]       # (Bt*S_pad, 3E)
    qkv3 = qkv.reshape(Bt, S_pad, 3 * E)
    colm = colm_ref[...][None, :, :]              # (1, S_pad, S_pad) additive mask
    attn = None
    # TODO(synk): for realistic head counts (12-16), replace this per-head loop
    # with a single head-batched lax.dot_general on a (heads, S_pad, Dh) layout.
    for h in range(num_heads):
        q = qkv3[:, :, h * Dh:(h + 1) * Dh].astype(jnp.bfloat16)          # (Bt,S,Dh)
        k = qkv3[:, :, E + h * Dh:E + (h + 1) * Dh].astype(jnp.bfloat16)
        v = qkv3[:, :, 2 * E + h * Dh:2 * E + (h + 1) * Dh].astype(jnp.bfloat16)
        # Q was pre-scaled by 1/sqrt(Dh) via the folded wqkv/bqkv.
        s = jnp.einsum('bqd,bkd->bqk', q, k,
                       preferred_element_type=jnp.float32)                # (Bt,S,S)
        s = s + colm                              # mask padded key columns (-1e30)
        s = s - jnp.max(s, axis=-1, keepdims=True)
        p = jnp.exp(s)
        p = p / jnp.sum(p, axis=-1, keepdims=True)        # exact divide (f32 softmax)
        ctx = jnp.einsum('bqk,bkd->bqd', p.astype(jnp.bfloat16), v,
                         preferred_element_type=jnp.float32)              # (Bt,S,Dh)
        # fold the output projection per head: sum_h ctx_h @ wo[h*Dh:(h+1)*Dh, :]
        part = jnp.dot(ctx.reshape(Bt * S_pad, Dh).astype(jnp.bfloat16),
                       wo_ref[0, h * Dh:(h + 1) * Dh, :],
                       preferred_element_type=jnp.float32)                # (Bt*S_pad, E)
        attn = part if attn is None else attn + part
    x = x + attn + bo_ref[0]

    # ---- feed-forward block (pre-norm), hidden dim chunked ----
    xn2 = _layer_norm(x, ln2w_ref[0], ln2b_ref[0]).astype(jnp.bfloat16)
    acc = None
    for c0 in range(0, hid, ffn_chunk):
        cs = min(ffn_chunk, hid - c0)
        h1 = jnp.dot(xn2, w1_ref[0, :, c0:c0 + cs],
                     preferred_element_type=jnp.float32) + b1_ref[0, :, c0:c0 + cs]
        h1 = jnp.maximum(h1, 0.0).astype(jnp.bfloat16)    # activation = 'relu'
        part = jnp.dot(h1, w2_ref[0, c0:c0 + cs, :],
                       preferred_element_type=jnp.float32)
        acc = part if acc is None else acc + part
    x = x + acc + b2_ref[0]                       # dropout: identity

    # keep padded rows exactly zero so they never drift across layers
    x3 = x.reshape(Bt, S_pad, E) * rowm_ref[...][None, :, :]
    tok_ref[...] = x3

    # ---- last layer step: MLP head (LayerNorm + Linear) on the CLS tokens ----
    @pl.when(l == n_layers - 1)
    def _():
        xc = jnp.concatenate([x3[b, 0:1, :] for b in range(Bt)], axis=0)  # (Bt, E)
        xcn = _layer_norm(xc, hlnw_ref[...], hlnb_ref[...])
        logits_ref[...] = (jnp.dot(xcn.astype(jnp.bfloat16), hw_ref[...],
                                   preferred_element_type=jnp.float32)
                           + hb_ref[...])


def vit_fused_call(patches, params, *, batch_block=8):
    B, N, Cpp = patches.shape
    E = params["patch_w"].shape[1]
    S = N + 1
    S_pad = ((S + 7) // 8) * 8
    L = params["wqkv"].shape[0]
    hid = params["w1"].shape[2]
    n_cls = params["head_w"].shape[1]
    heads = params["num_heads"]
    ffn_chunk = min(hid, 512)

    # Batch blocking: Bt images per grid step; pad B up to a multiple of Bt.
    Bt = min(B, batch_block)
    B_pad = ((B + Bt - 1) // Bt) * Bt
    if B_pad != B:
        patches = jnp.concatenate(
            [patches, jnp.zeros((B_pad - B, N, Cpp), patches.dtype)], axis=0)

    kernel = functools.partial(_vit_fused_kernel, seq_len=S,
                               num_heads=heads, ffn_chunk=ffn_chunk)

    def fullspec(shape):
        n = len(shape)
        return pl.BlockSpec(shape, lambda bi, l, _n=n: (0,) * _n)

    def layerspec(shape):
        n = len(shape)
        return pl.BlockSpec((1,) + tuple(shape[1:]),
                            lambda bi, l, _n=n: (l,) + (0,) * (_n - 1))

    out = pl.pallas_call(
        kernel,
        out_shape=jax.ShapeDtypeStruct((B_pad, n_cls), jnp.float32),
        grid=(B_pad // Bt, L),
        in_specs=[
            pl.BlockSpec((Bt, N, Cpp), lambda bi, l: (bi, 0, 0)),   # patches
            fullspec((Cpp, E)), fullspec((1, E)),                   # patch w (bf16), b
            fullspec((1, E)), fullspec((S_pad, E)),                 # cls, pos (padded)
            fullspec((S_pad, S_pad)), fullspec((S_pad, 1)),         # col mask, row mask
            layerspec((L, 1, E)), layerspec((L, 1, E)),             # ln1 w, b
            layerspec((L, E, 3 * E)), layerspec((L, 1, 3 * E)),     # wqkv (bf16), bqkv
            layerspec((L, E, E)), layerspec((L, 1, E)),             # wo (bf16), bo
            layerspec((L, 1, E)), layerspec((L, 1, E)),             # ln2 w, b
            layerspec((L, E, hid)), layerspec((L, 1, hid)),         # w1 (bf16), b1
            layerspec((L, hid, E)), layerspec((L, 1, E)),           # w2 (bf16), b2
            fullspec((1, E)), fullspec((1, E)),                     # head ln w, b
            fullspec((E, n_cls)), fullspec((1, n_cls)),             # head w (bf16), b
        ],
        out_specs=pl.BlockSpec((Bt, n_cls), lambda bi, l: (bi, 0)),
        scratch_shapes=[pltpu.VMEM((Bt, S_pad, E), jnp.float32)],
        compiler_params=pltpu.CompilerParams(
            dimension_semantics=("parallel", "arbitrary"),
            vmem_limit_bytes=64 * 1024 * 1024),
    )(patches,
      params["patch_w"], params["patch_b"], params["cls"], params["pos_pad"],
      params["col_mask"], params["row_mask"],
      params["ln1w"], params["ln1b"], params["wqkv"], params["bqkv"],
      params["wo"], params["bo"], params["ln2w"], params["ln2b"],
      params["w1"], params["b1"], params["w2"], params["b2"],
      params["head_lnw"], params["head_lnb"], params["head_w"], params["head_b"])
    return out[:B]


# ----------------------------------------------------------------------------
# Full forward pass (glue = patch extraction + the single fused kernel call)
# ----------------------------------------------------------------------------
def vit_forward(x, params):
    B, C, Him, Wim = x.shape
    p = params["patch_size"]
    Hp, Wp = Him // p, Wim // p
    # NCHW image -> (B, num_patches, C*p*p); matches Conv2d(stride=patch) +
    # Flatten(start_dim=2) + permute(0, 2, 1) ordering.
    patches = (x.reshape(B, C, Hp, p, Wp, p)
                 .transpose(0, 2, 4, 1, 3, 5)
                 .reshape(B, Hp * Wp, C * p * p))
    return vit_fused_call(patches, params)


# ----------------------------------------------------------------------------
# Deterministic parameter initialization (synthetic; no checkpoint load)
# ----------------------------------------------------------------------------
def init_params(key, *, in_channels, patch_size, num_patches, embed_dim,
                num_encoders, num_heads, dim_feedforward, num_classes):
    E, hid = embed_dim, dim_feedforward
    Cpp = in_channels * patch_size * patch_size
    S = num_patches + 1
    S_pad = ((S + 7) // 8) * 8
    Dh = E // num_heads
    scale = 1.0 / math.sqrt(Dh)
    keys = jax.random.split(key, 4 + num_encoders)

    def rnd(k, shape, s=0.02):
        return (s * jax.random.normal(k, shape)).astype(jnp.float32)

    conv_w = rnd(keys[0], (E, in_channels, patch_size, patch_size))

    ln1w, ln1b, wqkv, bqkv, wo, bo = [], [], [], [], [], []
    ln2w, ln2b, w1, b1, w2, b2 = [], [], [], [], [], []
    for li in range(num_encoders):
        lk = jax.random.split(keys[4 + li], 4)
        w_in = rnd(lk[0], (3 * E, E))                  # in_proj_weight (3E, E)
        wq = w_in.T                                    # x @ in_proj_weight.T -> (E, 3E)
        wq = wq.at[:, :E].multiply(scale)              # fold 1/sqrt(Dh) into Q columns
        wqkv.append(wq.astype(jnp.bfloat16))
        bq = jnp.zeros((1, 3 * E), jnp.float32)
        bq = bq.at[:, :E].multiply(scale)
        bqkv.append(bq)
        wo.append(rnd(lk[1], (E, E)).T.astype(jnp.bfloat16))   # out_proj.weight.T
        bo.append(jnp.zeros((1, E), jnp.float32))
        ln1w.append(jnp.ones((1, E), jnp.float32))
        ln1b.append(jnp.zeros((1, E), jnp.float32))
        ln2w.append(jnp.ones((1, E), jnp.float32))
        ln2b.append(jnp.zeros((1, E), jnp.float32))
        w1.append(rnd(lk[2], (hid, E)).T.astype(jnp.bfloat16))  # linear1.weight.T (E,hid)
        b1.append(jnp.zeros((1, hid), jnp.float32))
        w2.append(rnd(lk[3], (E, hid)).T.astype(jnp.bfloat16))  # linear2.weight.T (hid,E)
        b2.append(jnp.zeros((1, E), jnp.float32))

    pos = rnd(keys[2], (1, S, E), 1.0).reshape(S, E)
    pos_pad = jnp.zeros((S_pad, E), jnp.float32).at[:S].set(pos)
    col_valid = (jnp.arange(S_pad) < S)
    col_mask = jnp.broadcast_to(
        jnp.where(col_valid, 0.0, -1e30).astype(jnp.float32)[None, :],
        (S_pad, S_pad))
    row_mask = col_valid.astype(jnp.float32).reshape(S_pad, 1)

    return {
        "patch_size": patch_size,
        "num_heads": num_heads,
        "patch_w": conv_w.reshape(E, Cpp).T.astype(jnp.bfloat16),   # (Cpp, E)
        "patch_b": jnp.zeros((1, E), jnp.float32),
        # cls_token is (1, in_channels, E); valid as a single token only for
        # in_channels == 1 (same constraint as the reference module).
        "cls": rnd(keys[1], (1, in_channels, E), 1.0).reshape(in_channels, E),
        "pos_pad": pos_pad,
        "col_mask": col_mask,
        "row_mask": row_mask,
        "ln1w": jnp.stack(ln1w), "ln1b": jnp.stack(ln1b),
        "wqkv": jnp.stack(wqkv), "bqkv": jnp.stack(bqkv),
        "wo": jnp.stack(wo), "bo": jnp.stack(bo),
        "ln2w": jnp.stack(ln2w), "ln2b": jnp.stack(ln2b),
        "w1": jnp.stack(w1), "b1": jnp.stack(b1),
        "w2": jnp.stack(w2), "b2": jnp.stack(b2),
        "head_lnw": jnp.ones((1, E), jnp.float32),
        "head_lnb": jnp.zeros((1, E), jnp.float32),
        "head_w": rnd(keys[3], (num_classes, E)).T.astype(jnp.bfloat16),
        "head_b": jnp.zeros((1, num_classes), jnp.float32),
    }


if __name__ == "__main__":
    # Small, forward-consistent shapes (in_channels must be 1, see cls note).
    B, C, IMG, P = 2, 1, 16, 4
    NUM_PATCHES = (IMG // P) ** 2          # 16 patches -> seq len 17 (pad to 24)
    EMBED, HEADS, LAYERS, CLASSES = 32, 4, 2, 10
    FFN = 2048  # PyTorch default dim_feedforward (hidden_dim not forwarded in ref)

    key = jax.random.PRNGKey(0)
    kx, kp = jax.random.split(key)
    x = jax.random.normal(kx, (B, C, IMG, IMG), dtype=jnp.float32)
    params = init_params(kp, in_channels=C, patch_size=P, num_patches=NUM_PATCHES,
                         embed_dim=EMBED, num_encoders=LAYERS, num_heads=HEADS,
                         dim_feedforward=FFN, num_classes=CLASSES)

    out = vit_forward(x, params)
    out = jax.block_until_ready(out)
    assert out.shape == (B, CLASSES)
    assert bool(jnp.all(jnp.isfinite(out)))
    print("KERNEL_OK")
</pallas_src>

<mosaic_0001>
module attributes {stable_mosaic.version = 11 : i64} {
  func.func @_vit_fused_kernel(%arg0: i32, %arg1: i32, %arg2: memref<2x16x16xf32, #tpu.memory_space<vmem>>, %arg3: memref<16x32xbf16, #tpu.memory_space<vmem>>, %arg4: memref<1x32xf32, #tpu.memory_space<vmem>>, %arg5: memref<1x32xf32, #tpu.memory_space<vmem>>, %arg6: memref<24x32xf32, #tpu.memory_space<vmem>>, %arg7: memref<24x24xf32, #tpu.memory_space<vmem>>, %arg8: memref<24x1xf32, #tpu.memory_space<vmem>>, %arg9: memref<1x1x32xf32, #tpu.memory_space<vmem>>, %arg10: memref<1x1x32xf32, #tpu.memory_space<vmem>>, %arg11: memref<1x32x96xbf16, #tpu.memory_space<vmem>>, %arg12: memref<1x1x96xf32, #tpu.memory_space<vmem>>, %arg13: memref<1x32x32xbf16, #tpu.memory_space<vmem>>, %arg14: memref<1x1x32xf32, #tpu.memory_space<vmem>>, %arg15: memref<1x1x32xf32, #tpu.memory_space<vmem>>, %arg16: memref<1x1x32xf32, #tpu.memory_space<vmem>>, %arg17: memref<1x32x2048xbf16, #tpu.memory_space<vmem>>, %arg18: memref<1x1x2048xf32, #tpu.memory_space<vmem>>, %arg19: memref<1x2048x32xbf16, #tpu.memory_space<vmem>>, %arg20: memref<1x1x32xf32, #tpu.memory_space<vmem>>, %arg21: memref<1x32xf32, #tpu.memory_space<vmem>>, %arg22: memref<1x32xf32, #tpu.memory_space<vmem>>, %arg23: memref<32x10xbf16, #tpu.memory_space<vmem>>, %arg24: memref<1x10xf32, #tpu.memory_space<vmem>>, %arg25: memref<2x10xf32, #tpu.memory_space<vmem>>, %arg26: memref<2x24x32xf32, #tpu.memory_space<vmem>>) attributes {dimension_semantics = [#tpu.dimension_semantics<parallel>, #tpu.dimension_semantics<arbitrary>], iteration_bounds = array<i64: 1, 2>, scalar_prefetch = 0 : i64, scratch_operands = 1 : i64, tpu.core_type = #tpu.core_type<tc>, window_params = [{transform_indices = @transform_0, window_bounds = array<i64: 2, 16, 16>}, {pipeline_mode = #tpu.pipeline_mode<synchronous>, transform_indices = @transform_1, window_bounds = array<i64: 16, 32>}, {pipeline_mode = #tpu.pipeline_mode<synchronous>, transform_indices = @transform_2, window_bounds = array<i64: 1, 32>}, {pipeline_mode = #tpu.pipeline_mode<synchronous>, transform_indices = @transform_3, window_bounds = array<i64: 1, 32>}, {pipeline_mode = #tpu.pipeline_mode<synchronous>, transform_indices = @transform_4, window_bounds = array<i64: 24, 32>}, {pipeline_mode = #tpu.pipeline_mode<synchronous>, transform_indices = @transform_5, window_bounds = array<i64: 24, 24>}, {pipeline_mode = #tpu.pipeline_mode<synchronous>, transform_indices = @transform_6, window_bounds = array<i64: 24, 1>}, {transform_indices = @transform_7, window_bounds = array<i64: 1, 1, 32>}, {transform_indices = @transform_8, window_bounds = array<i64: 1, 1, 32>}, {transform_indices = @transform_9, window_bounds = array<i64: 1, 32, 96>}, {transform_indices = @transform_10, window_bounds = array<i64: 1, 1, 96>}, {transform_indices = @transform_11, window_bounds = array<i64: 1, 32, 32>}, {transform_indices = @transform_12, window_bounds = array<i64: 1, 1, 32>}, {transform_indices = @transform_13, window_bounds = array<i64: 1, 1, 32>}, {transform_indices = @transform_14, window_bounds = array<i64: 1, 1, 32>}, {transform_indices = @transform_15, window_bounds = array<i64: 1, 32, 2048>}, {transform_indices = @transform_16, window_bounds = array<i64: 1, 1, 2048>}, {transform_indices = @transform_17, window_bounds = array<i64: 1, 2048, 32>}, {transform_indices = @transform_18, window_bounds = array<i64: 1, 1, 32>}, {pipeline_mode = #tpu.pipeline_mode<synchronous>, transform_indices = @transform_19, window_bounds = array<i64: 1, 32>}, {pipeline_mode = #tpu.pipeline_mode<synchronous>, transform_indices = @transform_20, window_bounds = array<i64: 1, 32>}, {pipeline_mode = #tpu.pipeline_mode<synchronous>, transform_indices = @transform_21, window_bounds = array<i64: 32, 10>}, {pipeline_mode = #tpu.pipeline_mode<synchronous>, transform_indices = @transform_22, window_bounds = array<i64: 1, 10>}, {transform_indices = @transform_23, window_bounds = array<i64: 2, 10>}]} {
    %c0_i32 = arith.constant 0 : i32
    %0 = arith.cmpi eq, %arg1, %c0_i32 : i32
    %1 = arith.extui %0 : i1 to i32
    %c0_i32_0 = arith.constant 0 : i32
    %2 = arith.cmpi ne, %1, %c0_i32_0 : i32
    scf.if %2 {
      %c0_119 = arith.constant 0 : index
      %c0_120 = arith.constant 0 : index
      %c0_121 = arith.constant 0 : index
      %246 = vector.load %arg2[%c0_119, %c0_120, %c0_121] : memref<2x16x16xf32, #tpu.memory_space<vmem>>, vector<2x16x16xf32>
      %247 = vector.shape_cast %246 : vector<2x16x16xf32> to vector<32x16xf32>
      %248 = arith.truncf %247 : vector<32x16xf32> to vector<32x16xbf16>
      %c0_122 = arith.constant 0 : index
      %c0_123 = arith.constant 0 : index
      %249 = vector.load %arg3[%c0_122, %c0_123] : memref<16x32xbf16, #tpu.memory_space<vmem>>, vector<16x32xbf16>
      %cst_124 = arith.constant dense<0.000000e+00> : vector<32x32xf32>
      %250 = tpu.matmul %248, %249, %cst_124 {dimension_numbers = #tpu.dot_dimension_numbers<[1], [0], [0], [1], [0, 0, 1, 1], [], []>} : vector<32x16xbf16>, vector<16x32xbf16>, vector<32x32xf32> -> vector<32x32xf32>
      %c0_125 = arith.constant 0 : index
      %c0_126 = arith.constant 0 : index
      %251 = vector.load %arg4[%c0_125, %c0_126] : memref<1x32xf32, #tpu.memory_space<vmem>>, vector<1x32xf32>
      %252 = vector.broadcast %251 : vector<1x32xf32> to vector<32x32xf32>
      %253 = arith.addf %250, %252 : vector<32x32xf32>
      %254 = vector.shape_cast %253 : vector<32x32xf32> to vector<2x16x32xf32>
      %c0_127 = arith.constant 0 : index
      %c0_128 = arith.constant 0 : index
      %255 = vector.load %arg5[%c0_127, %c0_128] : memref<1x32xf32, #tpu.memory_space<vmem>>, vector<1x32xf32>
      %256 = vector.shape_cast %255 : vector<1x32xf32> to vector<1x1x32xf32>
      %257 = vector.shape_cast %256 : vector<1x1x32xf32> to vector<1x1x32xf32>
      %258 = vector.broadcast %257 : vector<1x1x32xf32> to vector<2x1x32xf32>
      %cst_129 = arith.constant 0.000000e+00 : f32
      %259 = vector.broadcast %cst_129 : f32 to vector<2x7x32xf32>
      %260 = tpu.concatenate %258, %254, %259 in 1 : vector<2x1x32xf32>, vector<2x16x32xf32>, vector<2x7x32xf32> -> vector<2x24x32xf32>
      %c0_130 = arith.constant 0 : index
      %c0_131 = arith.constant 0 : index
      %261 = vector.load %arg6[%c0_130, %c0_131] : memref<24x32xf32, #tpu.memory_space<vmem>>, vector<24x32xf32>
      %262 = vector.shape_cast %261 : vector<24x32xf32> to vector<1x24x32xf32>
      %263 = vector.broadcast %262 : vector<1x24x32xf32> to vector<2x24x32xf32>
      %264 = arith.addf %260, %263 : vector<2x24x32xf32>
      %c0_132 = arith.constant 0 : index
      %c0_133 = arith.constant 0 : index
      %c0_134 = arith.constant 0 : index
      %265 = vector.load %arg26[%c0_132, %c0_133, %c0_134] : memref<2x24x32xf32, #tpu.memory_space<vmem>>, vector<2x24x32xf32>
      tpu.vector_store %arg26[%c0_132, %c0_133, %c0_134], %264 {strides = array<i32>} : memref<2x24x32xf32, #tpu.memory_space<vmem>>, vector<2x24x32xf32>,
    } else {
    }
    %c0 = arith.constant 0 : index
    %c0_1 = arith.constant 0 : index
    %c0_2 = arith.constant 0 : index
    %3 = vector.load %arg26[%c0, %c0_1, %c0_2] : memref<2x24x32xf32, #tpu.memory_space<vmem>>, vector<2x24x32xf32>
    %4 = vector.shape_cast %3 : vector<2x24x32xf32> to vector<48x32xf32>
    %c0_3 = arith.constant 0 : index
    %c0_4 = arith.constant 0 : index
    %c0_5 = arith.constant 0 : index
    %5 = vector.load %arg9[%c0_3, %c0_4, %c0_5] : memref<1x1x32xf32, #tpu.memory_space<vmem>>, vector<1x1x32xf32>
    %6 = vector.shape_cast %5 : vector<1x1x32xf32> to vector<1x32xf32>
    %c0_6 = arith.constant 0 : index
    %c0_7 = arith.constant 0 : index
    %c0_8 = arith.constant 0 : index
    %7 = vector.load %arg10[%c0_6, %c0_7, %c0_8] : memref<1x1x32xf32, #tpu.memory_space<vmem>>, vector<1x1x32xf32>
    %8 = vector.shape_cast %7 : vector<1x1x32xf32> to vector<1x32xf32>
    %cst = arith.constant dense<0.000000e+00> : vector<48xf32>
    %9 = vector.multi_reduction <add>, %4, %cst [1] : vector<48x32xf32> to vector<48xf32>
    %10 = vector.shape_cast %9 : vector<48xf32> to vector<48x1xf32>
    %cst_9 = arith.constant 3.200000e+01 : f32
    %11 = vector.broadcast %cst_9 : f32 to vector<48x1xf32>
    %12 = arith.divf %10, %11 : vector<48x1xf32>
    %13 = vector.broadcast %12 : vector<48x1xf32> to vector<48x32xf32>
    %14 = arith.subf %4, %13 : vector<48x32xf32>
    %15 = arith.mulf %14, %14 : vector<48x32xf32>
    %cst_10 = arith.constant dense<0.000000e+00> : vector<48xf32>
    %16 = vector.multi_reduction <add>, %15, %cst_10 [1] : vector<48x32xf32> to vector<48xf32>
    %17 = vector.shape_cast %16 : vector<48xf32> to vector<48x1xf32>
    %cst_11 = arith.constant 3.200000e+01 : f32
    %18 = vector.broadcast %cst_11 : f32 to vector<48x1xf32>
    %19 = arith.divf %17, %18 : vector<48x1xf32>
    %20 = vector.broadcast %12 : vector<48x1xf32> to vector<48x32xf32>
    %21 = arith.subf %4, %20 : vector<48x32xf32>
    %cst_12 = arith.constant 9.99999974E-6 : f32
    %22 = vector.broadcast %cst_12 : f32 to vector<48x1xf32>
    %23 = arith.addf %19, %22 : vector<48x1xf32>
    %24 = math.rsqrt %23 : vector<48x1xf32>
    %25 = vector.broadcast %24 : vector<48x1xf32> to vector<48x32xf32>
    %26 = arith.mulf %21, %25 : vector<48x32xf32>
    %27 = vector.broadcast %6 : vector<1x32xf32> to vector<48x32xf32>
    %28 = arith.mulf %26, %27 : vector<48x32xf32>
    %29 = vector.broadcast %8 : vector<1x32xf32> to vector<48x32xf32>
    %30 = arith.addf %28, %29 : vector<48x32xf32>
    %31 = arith.truncf %30 : vector<48x32xf32> to vector<48x32xbf16>
    %c0_13 = arith.constant 0 : index
    %c0_14 = arith.constant 0 : index
    %c0_15 = arith.constant 0 : index
    %32 = vector.load %arg11[%c0_13, %c0_14, %c0_15] : memref<1x32x96xbf16, #tpu.memory_space<vmem>>, vector<1x32x96xbf16>
    %33 = vector.shape_cast %32 : vector<1x32x96xbf16> to vector<32x96xbf16>
    %cst_16 = arith.constant dense<0.000000e+00> : vector<48x96xf32>
    %34 = tpu.matmul %31, %33, %cst_16 {dimension_numbers = #tpu.dot_dimension_numbers<[1], [0], [0], [1], [0, 0, 1, 1], [], []>} : vector<48x32xbf16>, vector<32x96xbf16>, vector<48x96xf32> -> vector<48x96xf32>
    %c0_17 = arith.constant 0 : index
    %c0_18 = arith.constant 0 : index
    %c0_19 = arith.constant 0 : index
    %35 = vector.load %arg12[%c0_17, %c0_18, %c0_19] : memref<1x1x96xf32, #tpu.memory_space<vmem>>, vector<1x1x96xf32>
    %36 = vector.shape_cast %35 : vector<1x1x96xf32> to vector<1x96xf32>
    %37 = vector.broadcast %36 : vector<1x96xf32> to vector<48x96xf32>
    %38 = arith.addf %34, %37 : vector<48x96xf32>
    %39 = vector.shape_cast %38 : vector<48x96xf32> to vector<2x24x96xf32>
    %c0_20 = arith.constant 0 : index
    %c0_21 = arith.constant 0 : index
    %40 = vector.load %arg7[%c0_20, %c0_21] : memref<24x24xf32, #tpu.memory_space<vmem>>, vector<24x24xf32>
    %41 = vector.shape_cast %40 : vector<24x24xf32> to vector<1x24x24xf32>
    %42 = vector.extract_strided_slice %39 {offsets = [0, 0, 0], sizes = [2, 24, 8], strides = [1, 1, 1]} : vector<2x24x96xf32> to vector<2x24x8xf32>
    %43 = arith.truncf %42 : vector<2x24x8xf32> to vector<2x24x8xbf16>
    %44 = vector.extract_strided_slice %39 {offsets = [0, 0, 32], sizes = [2, 24, 8], strides = [1, 1, 1]} : vector<2x24x96xf32> to vector<2x24x8xf32>
    %45 = arith.truncf %44 : vector<2x24x8xf32> to vector<2x24x8xbf16>
    %46 = vector.extract_strided_slice %39 {offsets = [0, 0, 64], sizes = [2, 24, 8], strides = [1, 1, 1]} : vector<2x24x96xf32> to vector<2x24x8xf32>
    %47 = arith.truncf %46 : vector<2x24x8xf32> to vector<2x24x8xbf16>
    "tpu.trace_start"() <{level = 10 : i32, message = "bqd,bkd->bqk"}> : () -> ()
    %cst_22 = arith.constant dense<0.000000e+00> : vector<2x24x24xf32>
    %48 = tpu.matmul %43, %45, %cst_22 {dimension_numbers = #tpu.dot_dimension_numbers<[2], [2], [1], [1], [0, 0, 0, 1, 1, 1], [0], [0]>} : vector<2x24x8xbf16>, vector<2x24x8xbf16>, vector<2x24x24xf32> -> vector<2x24x24xf32>
    "tpu.trace_stop"() : () -> ()
    %49 = vector.broadcast %41 : vector<1x24x24xf32> to vector<2x24x24xf32>
    %50 = arith.addf %48, %49 : vector<2x24x24xf32>
    %cst_23 = arith.constant dense<0xFF800000> : vector<2x24xf32>
    %51 = vector.multi_reduction <maximumf>, %50, %cst_23 [2] : vector<2x24x24xf32> to vector<2x24xf32>
    %52 = vector.shape_cast %51 : vector<2x24xf32> to vector<2x24x1xf32>
    %53 = vector.broadcast %52 : vector<2x24x1xf32> to vector<2x24x24xf32>
    %54 = arith.subf %50, %53 : vector<2x24x24xf32>
    %55 = math.exp %54 : vector<2x24x24xf32>
    %cst_24 = arith.constant dense<0.000000e+00> : vector<2x24xf32>
    %56 = vector.multi_reduction <add>, %55, %cst_24 [2] : vector<2x24x24xf32> to vector<2x24xf32>
    %57 = vector.shape_cast %56 : vector<2x24xf32> to vector<2x24x1xf32>
    %58 = vector.broadcast %57 : vector<2x24x1xf32> to vector<2x24x24xf32>
    %59 = arith.divf %55, %58 : vector<2x24x24xf32>
    %60 = arith.truncf %59 : vector<2x24x24xf32> to vector<2x24x24xbf16>
    "tpu.trace_start"() <{level = 10 : i32, message = "bqk,bkd->bqd"}> : () -> ()
    %cst_25 = arith.constant dense<0.000000e+00> : vector<2x24x8xf32>
    %61 = tpu.matmul %60, %47, %cst_25 {dimension_numbers = #tpu.dot_dimension_numbers<[2], [1], [1], [2], [0, 0, 0, 1, 1, 2], [0], [0]>} : vector<2x24x24xbf16>, vector<2x24x8xbf16>, vector<2x24x8xf32> -> vector<2x24x8xf32>
    "tpu.trace_stop"() : () -> ()
    %62 = vector.shape_cast %61 : vector<2x24x8xf32> to vector<48x8xf32>
    %63 = arith.truncf %62 : vector<48x8xf32> to vector<48x8xbf16>
    %c0_26 = arith.constant 0 : index
    %c0_27 = arith.constant 0 : index
    %c0_28 = arith.constant 0 : index
    %64 = vector.load %arg13[%c0_26, %c0_27, %c0_28] : memref<1x32x32xbf16, #tpu.memory_space<vmem>>, vector<1x8x32xbf16>
    %65 = vector.shape_cast %64 : vector<1x8x32xbf16> to vector<8x32xbf16>
    %cst_29 = arith.constant dense<0.000000e+00> : vector<48x32xf32>
    %66 = tpu.matmul %63, %65, %cst_29 {dimension_numbers = #tpu.dot_dimension_numbers<[1], [0], [0], [1], [0, 0, 1, 1], [], []>} : vector<48x8xbf16>, vector<8x32xbf16>, vector<48x32xf32> -> vector<48x32xf32>
    %67 = vector.extract_strided_slice %39 {offsets = [0, 0, 8], sizes = [2, 24, 8], strides = [1, 1, 1]} : vector<2x24x96xf32> to vector<2x24x8xf32>
    %68 = arith.truncf %67 : vector<2x24x8xf32> to vector<2x24x8xbf16>
    %69 = vector.extract_strided_slice %39 {offsets = [0, 0, 40], sizes = [2, 24, 8], strides = [1, 1, 1]} : vector<2x24x96xf32> to vector<2x24x8xf32>
    %70 = arith.truncf %69 : vector<2x24x8xf32> to vector<2x24x8xbf16>
    %71 = vector.extract_strided_slice %39 {offsets = [0, 0, 72], sizes = [2, 24, 8], strides = [1, 1, 1]} : vector<2x24x96xf32> to vector<2x24x8xf32>
    %72 = arith.truncf %71 : vector<2x24x8xf32> to vector<2x24x8xbf16>
    "tpu.trace_start"() <{level = 10 : i32, message = "bqd,bkd->bqk"}> : () -> ()
    %cst_30 = arith.constant dense<0.000000e+00> : vector<2x24x24xf32>
    %73 = tpu.matmul %68, %70, %cst_30 {dimension_numbers = #tpu.dot_dimension_numbers<[2], [2], [1], [1], [0, 0, 0, 1, 1, 1], [0], [0]>} : vector<2x24x8xbf16>, vector<2x24x8xbf16>, vector<2x24x24xf32> -> vector<2x24x24xf32>
    "tpu.trace_stop"() : () -> ()
    %74 = vector.broadcast %41 : vector<1x24x24xf32> to vector<2x24x24xf32>
    %75 = arith.addf %73, %74 : vector<2x24x24xf32>
    %cst_31 = arith.constant dense<0xFF800000> : vector<2x24xf32>
    %76 = vector.multi_reduction <maximumf>, %75, %cst_31 [2] : vector<2x24x24xf32> to vector<2x24xf32>
    %77 = vector.shape_cast %76 : vector<2x24xf32> to vector<2x24x1xf32>
    %78 = vector.broadcast %77 : vector<2x24x1xf32> to vector<2x24x24xf32>
    %79 = arith.subf %75, %78 : vector<2x24x24xf32>
    %80 = math.exp %79 : vector<2x24x24xf32>
    %cst_32 = arith.constant dense<0.000000e+00> : vector<2x24xf32>
    %81 = vector.multi_reduction <add>, %80, %cst_32 [2] : vector<2x24x24xf32> to vector<2x24xf32>
    %82 = vector.shape_cast %81 : vector<2x24xf32> to vector<2x24x1xf32>
    %83 = vector.broadcast %82 : vector<2x24x1xf32> to vector<2x24x24xf32>
    %84 = arith.divf %80, %83 : vector<2x24x24xf32>
    %85 = arith.truncf %84 : vector<2x24x24xf32> to vector<2x24x24xbf16>
    "tpu.trace_start"() <{level = 10 : i32, message = "bqk,bkd->bqd"}> : () -> ()
    %cst_33 = arith.constant dense<0.000000e+00> : vector<2x24x8xf32>
    %86 = tpu.matmul %85, %72, %cst_33 {dimension_numbers = #tpu.dot_dimension_numbers<[2], [1], [1], [2], [0, 0, 0, 1, 1, 2], [0], [0]>} : vector<2x24x24xbf16>, vector<2x24x8xbf16>, vector<2x24x8xf32> -> vector<2x24x8xf32>
    "tpu.trace_stop"() : () -> ()
    %87 = vector.shape_cast %86 : vector<2x24x8xf32> to vector<48x8xf32>
    %88 = arith.truncf %87 : vector<48x8xf32> to vector<48x8xbf16>
    %c0_34 = arith.constant 0 : index
    %c8 = arith.constant 8 : index
    %c0_35 = arith.constant 0 : index
    %89 = vector.load %arg13[%c0_34, %c8, %c0_35] : memref<1x32x32xbf16, #tpu.memory_space<vmem>>, vector<1x8x32xbf16>
    %90 = vector.shape_cast %89 : vector<1x8x32xbf16> to vector<8x32xbf16>
    %cst_36 = arith.constant dense<0.000000e+00> : vector<48x32xf32>
    %91 = tpu.matmul %88, %90, %cst_36 {dimension_numbers = #tpu.dot_dimension_numbers<[1], [0], [0], [1], [0, 0, 1, 1], [], []>} : vector<48x8xbf16>, vector<8x32xbf16>, vector<48x32xf32> -> vector<48x32xf32>
    %92 = arith.addf %66, %91 : vector<48x32xf32>
    %93 = vector.extract_strided_slice %39 {offsets = [0, 0, 16], sizes = [2, 24, 8], strides = [1, 1, 1]} : vector<2x24x96xf32> to vector<2x24x8xf32>
    %94 = arith.truncf %93 : vector<2x24x8xf32> to vector<2x24x8xbf16>
    %95 = vector.extract_strided_slice %39 {offsets = [0, 0, 48], sizes = [2, 24, 8], strides = [1, 1, 1]} : vector<2x24x96xf32> to vector<2x24x8xf32>
    %96 = arith.truncf %95 : vector<2x24x8xf32> to vector<2x24x8xbf16>
    %97 = vector.extract_strided_slice %39 {offsets = [0, 0, 80], sizes = [2, 24, 8], strides = [1, 1, 1]} : vector<2x24x96xf32> to vector<2x24x8xf32>
    %98 = arith.truncf %97 : vector<2x24x8xf32> to vector<2x24x8xbf16>
    "tpu.trace_start"() <{level = 10 : i32, message = "bqd,bkd->bqk"}> : () -> ()
    %cst_37 = arith.constant dense<0.000000e+00> : vector<2x24x24xf32>
    %99 = tpu.matmul %94, %96, %cst_37 {dimension_numbers = #tpu.dot_dimension_numbers<[2], [2], [1], [1], [0, 0, 0, 1, 1, 1], [0], [0]>} : vector<2x24x8xbf16>, vector<2x24x8xbf16>, vector<2x24x24xf32> -> vector<2x24x24xf32>
    "tpu.trace_stop"() : () -> ()
    %100 = vector.broadcast %41 : vector<1x24x24xf32> to vector<2x24x24xf32>
    %101 = arith.addf %99, %100 : vector<2x24x24xf32>
    %cst_38 = arith.constant dense<0xFF800000> : vector<2x24xf32>
    %102 = vector.multi_reduction <maximumf>, %101, %cst_38 [2] : vector<2x24x24xf32> to vector<2x24xf32>
    %103 = vector.shape_cast %102 : vector<2x24xf32> to vector<2x24x1xf32>
    %104 = vector.broadcast %103 : vector<2x24x1xf32> to vector<2x24x24xf32>
    %105 = arith.subf %101, %104 : vector<2x24x24xf32>
    %106 = math.exp %105 : vector<2x24x24xf32>
    %cst_39 = arith.constant dense<0.000000e+00> : vector<2x24xf32>
    %107 = vector.multi_reduction <add>, %106, %cst_39 [2] : vector<2x24x24xf32> to vector<2x24xf32>
    %108 = vector.shape_cast %107 : vector<2x24xf32> to vector<2x24x1xf32>
    %109 = vector.broadcast %108 : vector<2x24x1xf32> to vector<2x24x24xf32>
    %110 = arith.divf %106, %109 : vector<2x24x24xf32>
    %111 = arith.truncf %110 : vector<2x24x24xf32> to vector<2x24x24xbf16>
    "tpu.trace_start"() <{level = 10 : i32, message = "bqk,bkd->bqd"}> : () -> ()
    %cst_40 = arith.constant dense<0.000000e+00> : vector<2x24x8xf32>
    %112 = tpu.matmul %111, %98, %cst_40 {dimension_numbers = #tpu.dot_dimension_numbers<[2], [1], [1], [2], [0, 0, 0, 1, 1, 2], [0], [0]>} : vector<2x24x24xbf16>, vector<2x24x8xbf16>, vector<2x24x8xf32> -> vector<2x24x8xf32>
    "tpu.trace_stop"() : () -> ()
    %113 = vector.shape_cast %112 : vector<2x24x8xf32> to vector<48x8xf32>
    %114 = arith.truncf %113 : vector<48x8xf32> to vector<48x8xbf16>
    %c0_41 = arith.constant 0 : index
    %c16 = arith.constant 16 : index
    %c0_42 = arith.constant 0 : index
    %115 = vector.load %arg13[%c0_41, %c16, %c0_42] : memref<1x32x32xbf16, #tpu.memory_space<vmem>>, vector<1x8x32xbf16>
    %116 = vector.shape_cast %115 : vector<1x8x32xbf16> to vector<8x32xbf16>
    %cst_43 = arith.constant dense<0.000000e+00> : vector<48x32xf32>
    %117 = tpu.matmul %114, %116, %cst_43 {dimension_numbers = #tpu.dot_dimension_numbers<[1], [0], [0], [1], [0, 0, 1, 1], [], []>} : vector<48x8xbf16>, vector<8x32xbf16>, vector<48x32xf32> -> vector<48x32xf32>
    %118 = arith.addf %92, %117 : vector<48x32xf32>
    %119 = vector.extract_strided_slice %39 {offsets = [0, 0, 24], sizes = [2, 24, 8], strides = [1, 1, 1]} : vector<2x24x96xf32> to vector<2x24x8xf32>
    %120 = arith.truncf %119 : vector<2x24x8xf32> to vector<2x24x8xbf16>
    %121 = vector.extract_strided_slice %39 {offsets = [0, 0, 56], sizes = [2, 24, 8], strides = [1, 1, 1]} : vector<2x24x96xf32> to vector<2x24x8xf32>
    %122 = arith.truncf %121 : vector<2x24x8xf32> to vector<2x24x8xbf16>
    %123 = vector.extract_strided_slice %39 {offsets = [0, 0, 88], sizes = [2, 24, 8], strides = [1, 1, 1]} : vector<2x24x96xf32> to vector<2x24x8xf32>
    %124 = arith.truncf %123 : vector<2x24x8xf32> to vector<2x24x8xbf16>
    "tpu.trace_start"() <{level = 10 : i32, message = "bqd,bkd->bqk"}> : () -> ()
    %cst_44 = arith.constant dense<0.000000e+00> : vector<2x24x24xf32>
    %125 = tpu.matmul %120, %122, %cst_44 {dimension_numbers = #tpu.dot_dimension_numbers<[2], [2], [1], [1], [0, 0, 0, 1, 1, 1], [0], [0]>} : vector<2x24x8xbf16>, vector<2x24x8xbf16>, vector<2x24x24xf32> -> vector<2x24x24xf32>
    "tpu.trace_stop"() : () -> ()
    %126 = vector.broadcast %41 : vector<1x24x24xf32> to vector<2x24x24xf32>
    %127 = arith.addf %125, %126 : vector<2x24x24xf32>
    %cst_45 = arith.constant dense<0xFF800000> : vector<2x24xf32>
    %128 = vector.multi_reduction <maximumf>, %127, %cst_45 [2] : vector<2x24x24xf32> to vector<2x24xf32>
    %129 = vector.shape_cast %128 : vector<2x24xf32> to vector<2x24x1xf32>
    %130 = vector.broadcast %129 : vector<2x24x1xf32> to vector<2x24x24xf32>
    %131 = arith.subf %127, %130 : vector<2x24x24xf32>
    %132 = math.exp %131 : vector<2x24x24xf32>
    %cst_46 = arith.constant dense<0.000000e+00> : vector<2x24xf32>
    %133 = vector.multi_reduction <add>, %132, %cst_46 [2] : vector<2x24x24xf32> to vector<2x24xf32>
    %134 = vector.shape_cast %133 : vector<2x24xf32> to vector<2x24x1xf32>
    %135 = vector.broadcast %134 : vector<2x24x1xf32> to vector<2x24x24xf32>
    %136 = arith.divf %132, %135 : vector<2x24x24xf32>
    %137 = arith.truncf %136 : vector<2x24x24xf32> to vector<2x24x24xbf16>
    "tpu.trace_start"() <{level = 10 : i32, message = "bqk,bkd->bqd"}> : () -> ()
    %cst_47 = arith.constant dense<0.000000e+00> : vector<2x24x8xf32>
    %138 = tpu.matmul %137, %124, %cst_47 {dimension_numbers = #tpu.dot_dimension_numbers<[2], [1], [1], [2], [0, 0, 0, 1, 1, 2], [0], [0]>} : vector<2x24x24xbf16>, vector<2x24x8xbf16>, vector<2x24x8xf32> -> vector<2x24x8xf32>
    "tpu.trace_stop"() : () -> ()
    %139 = vector.shape_cast %138 : vector<2x24x8xf32> to vector<48x8xf32>
    %140 = arith.truncf %139 : vector<48x8xf32> to vector<48x8xbf16>
    %c0_48 = arith.constant 0 : index
    %c24 = arith.constant 24 : index
    %c0_49 = arith.constant 0 : index
    %141 = vector.load %arg13[%c0_48, %c24, %c0_49] : memref<1x32x32xbf16, #tpu.memory_space<vmem>>, vector<1x8x32xbf16>
    %142 = vector.shape_cast %141 : vector<1x8x32xbf16> to vector<8x32xbf16>
    %cst_50 = arith.constant dense<0.000000e+00> : vector<48x32xf32>
    %143 = tpu.matmul %140, %142, %cst_50 {dimension_numbers = #tpu.dot_dimension_numbers<[1], [0], [0], [1], [0, 0, 1, 1], [], []>} : vector<48x8xbf16>, vector<8x32xbf16>, vector<48x32xf32> -> vector<48x32xf32>
    %144 = arith.addf %118, %143 : vector<48x32xf32>
    %145 = arith.addf %4, %144 : vector<48x32xf32>
    %c0_51 = arith.constant 0 : index
    %c0_52 = arith.constant 0 : index
    %c0_53 = arith.constant 0 : index
    %146 = vector.load %arg14[%c0_51, %c0_52, %c0_53] : memref<1x1x32xf32, #tpu.memory_space<vmem>>, vector<1x1x32xf32>
    %147 = vector.shape_cast %146 : vector<1x1x32xf32> to vector<1x32xf32>
    %148 = vector.broadcast %147 : vector<1x32xf32> to vector<48x32xf32>
    %149 = arith.addf %145, %148 : vector<48x32xf32>
    %c0_54 = arith.constant 0 : index
    %c0_55 = arith.constant 0 : index
    %c0_56 = arith.constant 0 : index
    %150 = vector.load %arg15[%c0_54, %c0_55, %c0_56] : memref<1x1x32xf32, #tpu.memory_space<vmem>>, vector<1x1x32xf32>
    %151 = vector.shape_cast %150 : vector<1x1x32xf32> to vector<1x32xf32>
    %c0_57 = arith.constant 0 : index
    %c0_58 = arith.constant 0 : index
    %c0_59 = arith.constant 0 : index
    %152 = vector.load %arg16[%c0_57, %c0_58, %c0_59] : memref<1x1x32xf32, #tpu.memory_space<vmem>>, vector<1x1x32xf32>
    %153 = vector.shape_cast %152 : vector<1x1x32xf32> to vector<1x32xf32>
    %cst_60 = arith.constant dense<0.000000e+00> : vector<48xf32>
    %154 = vector.multi_reduction <add>, %149, %cst_60 [1] : vector<48x32xf32> to vector<48xf32>
    %155 = vector.shape_cast %154 : vector<48xf32> to vector<48x1xf32>
    %cst_61 = arith.constant 3.200000e+01 : f32
    %156 = vector.broadcast %cst_61 : f32 to vector<48x1xf32>
    %157 = arith.divf %155, %156 : vector<48x1xf32>
    %158 = vector.broadcast %157 : vector<48x1xf32> to vector<48x32xf32>
    %159 = arith.subf %149, %158 : vector<48x32xf32>
    %160 = arith.mulf %159, %159 : vector<48x32xf32>
    %cst_62 = arith.constant dense<0.000000e+00> : vector<48xf32>
    %161 = vector.multi_reduction <add>, %160, %cst_62 [1] : vector<48x32xf32> to vector<48xf32>
    %162 = vector.shape_cast %161 : vector<48xf32> to vector<48x1xf32>
    %cst_63 = arith.constant 3.200000e+01 : f32
    %163 = vector.broadcast %cst_63 : f32 to vector<48x1xf32>
    %164 = arith.divf %162, %163 : vector<48x1xf32>
    %165 = vector.broadcast %157 : vector<48x1xf32> to vector<48x32xf32>
    %166 = arith.subf %149, %165 : vector<48x32xf32>
    %cst_64 = arith.constant 9.99999974E-6 : f32
    %167 = vector.broadcast %cst_64 : f32 to vector<48x1xf32>
    %168 = arith.addf %164, %167 : vector<48x1xf32>
    %169 = math.rsqrt %168 : vector<48x1xf32>
    %170 = vector.broadcast %169 : vector<48x1xf32> to vector<48x32xf32>
    %171 = arith.mulf %166, %170 : vector<48x32xf32>
    %172 = vector.broadcast %151 : vector<1x32xf32> to vector<48x32xf32>
    %173 = arith.mulf %171, %172 : vector<48x32xf32>
    %174 = vector.broadcast %153 : vector<1x32xf32> to vector<48x32xf32>
    %175 = arith.addf %173, %174 : vector<48x32xf32>
    %176 = arith.truncf %175 : vector<48x32xf32> to vector<48x32xbf16>
    %c0_65 = arith.constant 0 : index
    %c0_66 = arith.constant 0 : index
    %c0_67 = arith.constant 0 : index
    %177 = vector.load %arg17[%c0_65, %c0_66, %c0_67] : memref<1x32x2048xbf16, #tpu.memory_space<vmem>>, vector<1x32x512xbf16>
    %178 = vector.shape_cast %177 : vector<1x32x512xbf16> to vector<32x512xbf16>
    %cst_68 = arith.constant dense<0.000000e+00> : vector<48x512xf32>
    %179 = tpu.matmul %176, %178, %cst_68 {dimension_numbers = #tpu.dot_dimension_numbers<[1], [0], [0], [1], [0, 0, 1, 1], [], []>} : vector<48x32xbf16>, vector<32x512xbf16>, vector<48x512xf32> -> vector<48x512xf32>
    %c0_69 = arith.constant 0 : index
    %c0_70 = arith.constant 0 : index
    %c0_71 = arith.constant 0 : index
    %180 = vector.load %arg18[%c0_69, %c0_70, %c0_71] : memref<1x1x2048xf32, #tpu.memory_space<vmem>>, vector<1x1x512xf32>
    %181 = vector.shape_cast %180 : vector<1x1x512xf32> to vector<1x512xf32>
    %182 = vector.broadcast %181 : vector<1x512xf32> to vector<48x512xf32>
    %183 = arith.addf %179, %182 : vector<48x512xf32>
    %cst_72 = arith.constant 0.000000e+00 : f32
    %184 = vector.broadcast %cst_72 : f32 to vector<48x512xf32>
    %185 = arith.maximumf %183, %184 : vector<48x512xf32>
    %186 = arith.truncf %185 : vector<48x512xf32> to vector<48x512xbf16>
    %c0_73 = arith.constant 0 : index
    %c0_74 = arith.constant 0 : index
    %c0_75 = arith.constant 0 : index
    %187 = vector.load %arg19[%c0_73, %c0_74, %c0_75] : memref<1x2048x32xbf16, #tpu.memory_space<vmem>>, vector<1x512x32xbf16>
    %188 = vector.shape_cast %187 : vector<1x512x32xbf16> to vector<512x32xbf16>
    %cst_76 = arith.constant dense<0.000000e+00> : vector<48x32xf32>
    %189 = tpu.matmul %186, %188, %cst_76 {dimension_numbers = #tpu.dot_dimension_numbers<[1], [0], [0], [1], [0, 0, 1, 1], [], []>} : vector<48x512xbf16>, vector<512x32xbf16>, vector<48x32xf32> -> vector<48x32xf32>
    %c0_77 = arith.constant 0 : index
    %c0_78 = arith.constant 0 : index
    %c512 = arith.constant 512 : index
    %190 = vector.load %arg17[%c0_77, %c0_78, %c512] : memref<1x32x2048xbf16, #tpu.memory_space<vmem>>, vector<1x32x512xbf16>
    %191 = vector.shape_cast %190 : vector<1x32x512xbf16> to vector<32x512xbf16>
    %cst_79 = arith.constant dense<0.000000e+00> : vector<48x512xf32>
    %192 = tpu.matmul %176, %191, %cst_79 {dimension_numbers = #tpu.dot_dimension_numbers<[1], [0], [0], [1], [0, 0, 1, 1], [], []>} : vector<48x32xbf16>, vector<32x512xbf16>, vector<48x512xf32> -> vector<48x512xf32>
    %c0_80 = arith.constant 0 : index
    %c0_81 = arith.constant 0 : index
    %c512_82 = arith.constant 512 : index
    %193 = vector.load %arg18[%c0_80, %c0_81, %c512_82] : memref<1x1x2048xf32, #tpu.memory_space<vmem>>, vector<1x1x512xf32>
    %194 = vector.shape_cast %193 : vector<1x1x512xf32> to vector<1x512xf32>
    %195 = vector.broadcast %194 : vector<1x512xf32> to vector<48x512xf32>
    %196 = arith.addf %192, %195 : vector<48x512xf32>
    %cst_83 = arith.constant 0.000000e+00 : f32
    %197 = vector.broadcast %cst_83 : f32 to vector<48x512xf32>
    %198 = arith.maximumf %196, %197 : vector<48x512xf32>
    %199 = arith.truncf %198 : vector<48x512xf32> to vector<48x512xbf16>
    %c0_84 = arith.constant 0 : index
    %c512_85 = arith.constant 512 : index
    %c0_86 = arith.constant 0 : index
    %200 = vector.load %arg19[%c0_84, %c512_85, %c0_86] : memref<1x2048x32xbf16, #tpu.memory_space<vmem>>, vector<1x512x32xbf16>
    %201 = vector.shape_cast %200 : vector<1x512x32xbf16> to vector<512x32xbf16>
    %cst_87 = arith.constant dense<0.000000e+00> : vector<48x32xf32>
    %202 = tpu.matmul %199, %201, %cst_87 {dimension_numbers = #tpu.dot_dimension_numbers<[1], [0], [0], [1], [0, 0, 1, 1], [], []>} : vector<48x512xbf16>, vector<512x32xbf16>, vector<48x32xf32> -> vector<48x32xf32>
    %203 = arith.addf %189, %202 : vector<48x32xf32>
    %c0_88 = arith.constant 0 : index
    %c0_89 = arith.constant 0 : index
    %c1024 = arith.constant 1024 : index
    %204 = vector.load %arg17[%c0_88, %c0_89, %c1024] : memref<1x32x2048xbf16, #tpu.memory_space<vmem>>, vector<1x32x512xbf16>
    %205 = vector.shape_cast %204 : vector<1x32x512xbf16> to vector<32x512xbf16>
    %cst_90 = arith.constant dense<0.000000e+00> : vector<48x512xf32>
    %206 = tpu.matmul %176, %205, %cst_90 {dimension_numbers = #tpu.dot_dimension_numbers<[1], [0], [0], [1], [0, 0, 1, 1], [], []>} : vector<48x32xbf16>, vector<32x512xbf16>, vector<48x512xf32> -> vector<48x512xf32>
    %c0_91 = arith.constant 0 : index
    %c0_92 = arith.constant 0 : index
    %c1024_93 = arith.constant 1024 : index
    %207 = vector.load %arg18[%c0_91, %c0_92, %c1024_93] : memref<1x1x2048xf32, #tpu.memory_space<vmem>>, vector<1x1x512xf32>
    %208 = vector.shape_cast %207 : vector<1x1x512xf32> to vector<1x512xf32>
    %209 = vector.broadcast %208 : vector<1x512xf32> to vector<48x512xf32>
    %210 = arith.addf %206, %209 : vector<48x512xf32>
    %cst_94 = arith.constant 0.000000e+00 : f32
    %211 = vector.broadcast %cst_94 : f32 to vector<48x512xf32>
    %212 = arith.maximumf %210, %211 : vector<48x512xf32>
    %213 = arith.truncf %212 : vector<48x512xf32> to vector<48x512xbf16>
    %c0_95 = arith.constant 0 : index
    %c1024_96 = arith.constant 1024 : index
    %c0_97 = arith.constant 0 : index
    %214 = vector.load %arg19[%c0_95, %c1024_96, %c0_97] : memref<1x2048x32xbf16, #tpu.memory_space<vmem>>, vector<1x512x32xbf16>
    %215 = vector.shape_cast %214 : vector<1x512x32xbf16> to vector<512x32xbf16>
    %cst_98 = arith.constant dense<0.000000e+00> : vector<48x32xf32>
    %216 = tpu.matmul %213, %215, %cst_98 {dimension_numbers = #tpu.dot_dimension_numbers<[1], [0], [0], [1], [0, 0, 1, 1], [], []>} : vector<48x512xbf16>, vector<512x32xbf16>, vector<48x32xf32> -> vector<48x32xf32>
    %217 = arith.addf %203, %216 : vector<48x32xf32>
    %c0_99 = arith.constant 0 : index
    %c0_100 = arith.constant 0 : index
    %c1536 = arith.constant 1536 : index
    %218 = vector.load %arg17[%c0_99, %c0_100, %c1536] : memref<1x32x2048xbf16, #tpu.memory_space<vmem>>, vector<1x32x512xbf16>
    %219 = vector.shape_cast %218 : vector<1x32x512xbf16> to vector<32x512xbf16>
    %cst_101 = arith.constant dense<0.000000e+00> : vector<48x512xf32>
    %220 = tpu.matmul %176, %219, %cst_101 {dimension_numbers = #tpu.dot_dimension_numbers<[1], [0], [0], [1], [0, 0, 1, 1], [], []>} : vector<48x32xbf16>, vector<32x512xbf16>, vector<48x512xf32> -> vector<48x512xf32>
    %c0_102 = arith.constant 0 : index
    %c0_103 = arith.constant 0 : index
    %c1536_104 = arith.constant 1536 : index
    %221 = vector.load %arg18[%c0_102, %c0_103, %c1536_104] : memref<1x1x2048xf32, #tpu.memory_space<vmem>>, vector<1x1x512xf32>
    %222 = vector.shape_cast %221 : vector<1x1x512xf32> to vector<1x512xf32>
    %223 = vector.broadcast %222 : vector<1x512xf32> to vector<48x512xf32>
    %224 = arith.addf %220, %223 : vector<48x512xf32>
    %cst_105 = arith.constant 0.000000e+00 : f32
    %225 = vector.broadcast %cst_105 : f32 to vector<48x512xf32>
    %226 = arith.maximumf %224, %225 : vector<48x512xf32>
    %227 = arith.truncf %226 : vector<48x512xf32> to vector<48x512xbf16>
    %c0_106 = arith.constant 0 : index
    %c1536_107 = arith.constant 1536 : index
    %c0_108 = arith.constant 0 : index
    %228 = vector.load %arg19[%c0_106, %c1536_107, %c0_108] : memref<1x2048x32xbf16, #tpu.memory_space<vmem>>, vector<1x512x32xbf16>
    %229 = vector.shape_cast %228 : vector<1x512x32xbf16> to vector<512x32xbf16>
    %cst_109 = arith.constant dense<0.000000e+00> : vector<48x32xf32>
    %230 = tpu.matmul %227, %229, %cst_109 {dimension_numbers = #tpu.dot_dimension_numbers<[1], [0], [0], [1], [0, 0, 1, 1], [], []>} : vector<48x512xbf16>, vector<512x32xbf16>, vector<48x32xf32> -> vector<48x32xf32>
    %231 = arith.addf %217, %230 : vector<48x32xf32>
    %232 = arith.addf %149, %231 : vector<48x32xf32>
    %c0_110 = arith.constant 0 : index
    %c0_111 = arith.constant 0 : index
    %c0_112 = arith.constant 0 : index
    %233 = vector.load %arg20[%c0_110, %c0_111, %c0_112] : memref<1x1x32xf32, #tpu.memory_space<vmem>>, vector<1x1x32xf32>
    %234 = vector.shape_cast %233 : vector<1x1x32xf32> to vector<1x32xf32>
    %235 = vector.broadcast %234 : vector<1x32xf32> to vector<48x32xf32>
    %236 = arith.addf %232, %235 : vector<48x32xf32>
    %237 = vector.shape_cast %236 : vector<48x32xf32> to vector<2x24x32xf32>
    %c0_113 = arith.constant 0 : index
    %c0_114 = arith.constant 0 : index
    %238 = vector.load %arg8[%c0_113, %c0_114] : memref<24x1xf32, #tpu.memory_space<vmem>>, vector<24x1xf32>
    %239 = vector.shape_cast %238 : vector<24x1xf32> to vector<1x24x1xf32>
    %240 = vector.broadcast %239 : vector<1x24x1xf32> to vector<2x24x32xf32>
    %241 = arith.mulf %237, %240 : vector<2x24x32xf32>
    %c0_115 = arith.constant 0 : index
    %c0_116 = arith.constant 0 : index
    %c0_117 = arith.constant 0 : index
    %242 = vector.load %arg26[%c0_115, %c0_116, %c0_117] : memref<2x24x32xf32, #tpu.memory_space<vmem>>, vector<2x24x32xf32>
    tpu.vector_store %arg26[%c0_115, %c0_116, %c0_117], %241 {strides = array<i32>} : memref<2x24x32xf32, #tpu.memory_space<vmem>>, vector<2x24x32xf32>,
    %c1_i32 = arith.constant 1 : i32
    %243 = arith.cmpi eq, %arg1, %c1_i32 : i32
    %244 = arith.extui %243 : i1 to i32
    %c0_i32_118 = arith.constant 0 : i32
    %245 = arith.cmpi ne, %244, %c0_i32_118 : i32
    scf.if %245 {
      %246 = vector.extract_strided_slice %241 {offsets = [0, 0, 0], sizes = [1, 1, 32], strides = [1, 1, 1]} : vector<2x24x32xf32> to vector<1x1x32xf32>
      %247 = vector.shape_cast %246 : vector<1x1x32xf32> to vector<1x32xf32>
      %248 = vector.extract_strided_slice %241 {offsets = [1, 0, 0], sizes = [1, 1, 32], strides = [1, 1, 1]} : vector<2x24x32xf32> to vector<1x1x32xf32>
      %249 = vector.shape_cast %248 : vector<1x1x32xf32> to vector<1x32xf32>
      %250 = tpu.concatenate %247, %249 in 0 : vector<1x32xf32>, vector<1x32xf32> -> vector<2x32xf32>
      %c0_119 = arith.constant 0 : index
      %c0_120 = arith.constant 0 : index
      %251 = vector.load %arg21[%c0_119, %c0_120] : memref<1x32xf32, #tpu.memory_space<vmem>>, vector<1x32xf32>
      %c0_121 = arith.constant 0 : index
      %c0_122 = arith.constant 0 : index
      %252 = vector.load %arg22[%c0_121, %c0_122] : memref<1x32xf32, #tpu.memory_space<vmem>>, vector<1x32xf32>
      %cst_123 = arith.constant dense<0.000000e+00> : vector<2xf32>
      %253 = vector.multi_reduction <add>, %250, %cst_123 [1] : vector<2x32xf32> to vector<2xf32>
      %254 = vector.shape_cast %253 : vector<2xf32> to vector<2x1xf32>
      %cst_124 = arith.constant 3.200000e+01 : f32
      %255 = vector.broadcast %cst_124 : f32 to vector<2x1xf32>
      %256 = arith.divf %254, %255 : vector<2x1xf32>
      %257 = vector.broadcast %256 : vector<2x1xf32> to vector<2x32xf32>
      %258 = arith.subf %250, %257 : vector<2x32xf32>
      %259 = arith.mulf %258, %258 : vector<2x32xf32>
      %cst_125 = arith.constant dense<0.000000e+00> : vector<2xf32>
      %260 = vector.multi_reduction <add>, %259, %cst_125 [1] : vector<2x32xf32> to vector<2xf32>
      %261 = vector.shape_cast %260 : vector<2xf32> to vector<2x1xf32>
      %cst_126 = arith.constant 3.200000e+01 : f32
      %262 = vector.broadcast %cst_126 : f32 to vector<2x1xf32>
      %263 = arith.divf %261, %262 : vector<2x1xf32>
      %264 = vector.broadcast %256 : vector<2x1xf32> to vector<2x32xf32>
      %265 = arith.subf %250, %264 : vector<2x32xf32>
      %cst_127 = arith.constant 9.99999974E-6 : f32
      %266 = vector.broadcast %cst_127 : f32 to vector<2x1xf32>
      %267 = arith.addf %263, %266 : vector<2x1xf32>
      %268 = math.rsqrt %267 : vector<2x1xf32>
      %269 = vector.broadcast %268 : vector<2x1xf32> to vector<2x32xf32>
      %270 = arith.mulf %265, %269 : vector<2x32xf32>
      %271 = vector.broadcast %251 : vector<1x32xf32> to vector<2x32xf32>
      %272 = arith.mulf %270, %271 : vector<2x32xf32>
      %273 = vector.broadcast %252 : vector<1x32xf32> to vector<2x32xf32>
      %274 = arith.addf %272, %273 : vector<2x32xf32>
      %275 = arith.truncf %274 : vector<2x32xf32> to vector<2x32xbf16>
      %c0_128 = arith.constant 0 : index
      %c0_129 = arith.constant 0 : index
      %276 = vector.load %arg23[%c0_128, %c0_129] : memref<32x10xbf16, #tpu.memory_space<vmem>>, vector<32x10xbf16>
      %cst_130 = arith.constant dense<0.000000e+00> : vector<2x10xf32>
      %277 = tpu.matmul %275, %276, %cst_130 {dimension_numbers = #tpu.dot_dimension_numbers<[1], [0], [0], [1], [0, 0, 1, 1], [], []>} : vector<2x32xbf16>, vector<32x10xbf16>, vector<2x10xf32> -> vector<2x10xf32>
      %c0_131 = arith.constant 0 : index
      %c0_132 = arith.constant 0 : index
      %278 = vector.load %arg24[%c0_131, %c0_132] : memref<1x10xf32, #tpu.memory_space<vmem>>, vector<1x10xf32>
      %279 = vector.broadcast %278 : vector<1x10xf32> to vector<2x10xf32>
      %280 = arith.addf %277, %279 : vector<2x10xf32>
      %c0_133 = arith.constant 0 : index
      %c0_134 = arith.constant 0 : index
      %281 = vector.load %arg25[%c0_133, %c0_134] : memref<2x10xf32, #tpu.memory_space<vmem>>, vector<2x10xf32>
      tpu.vector_store %arg25[%c0_133, %c0_134], %280 {strides = array<i32>} : memref<2x10xf32, #tpu.memory_space<vmem>>, vector<2x10xf32>,
    } else {
    }
    return
  }
  func.func @transform_0(%arg0: i32, %arg1: i32) -> (i32, i32, i32) {
    %c0_i32 = arith.constant 0 : i32
    %c0_i32_0 = arith.constant 0 : i32
    %c0_i32_1 = arith.constant 0 : i32
    return %arg0, %c0_i32, %c0_i32_0 : i32, i32, i32
  }
  func.func @transform_1(%arg0: i32, %arg1: i32) -> (i32, i32) {
    %c0_i32 = arith.constant 0 : i32
    %c0_i32_0 = arith.constant 0 : i32
    %c0_i32_1 = arith.constant 0 : i32
    return %c0_i32, %c0_i32_0 : i32, i32
  }
  func.func @transform_2(%arg0: i32, %arg1: i32) -> (i32, i32) {
    %c0_i32 = arith.constant 0 : i32
    %c0_i32_0 = arith.constant 0 : i32
    %c0_i32_1 = arith.constant 0 : i32
    return %c0_i32, %c0_i32_0 : i32, i32
  }
  func.func @transform_3(%arg0: i32, %arg1: i32) -> (i32, i32) {
    %c0_i32 = arith.constant 0 : i32
    %c0_i32_0 = arith.constant 0 : i32
    %c0_i32_1 = arith.constant 0 : i32
    return %c0_i32, %c0_i32_0 : i32, i32
  }
  func.func @transform_4(%arg0: i32, %arg1: i32) -> (i32, i32) {
    %c0_i32 = arith.constant 0 : i32
    %c0_i32_0 = arith.constant 0 : i32
    %c0_i32_1 = arith.constant 0 : i32
    return %c0_i32, %c0_i32_0 : i32, i32
  }
  func.func @transform_5(%arg0: i32, %arg1: i32) -> (i32, i32) {
    %c0_i32 = arith.constant 0 : i32
    %c0_i32_0 = arith.constant 0 : i32
    %c0_i32_1 = arith.constant 0 : i32
    return %c0_i32, %c0_i32_0 : i32, i32
  }
  func.func @transform_6(%arg0: i32, %arg1: i32) -> (i32, i32) {
    %c0_i32 = arith.constant 0 : i32
    %c0_i32_0 = arith.constant 0 : i32
    %c0_i32_1 = arith.constant 0 : i32
    return %c0_i32, %c0_i32_0 : i32, i32
  }
  func.func @transform_7(%arg0: i32, %arg1: i32) -> (i32, i32, i32) {
    %c0_i32 = arith.constant 0 : i32
    %c0_i32_0 = arith.constant 0 : i32
    %c0_i32_1 = arith.constant 0 : i32
    return %arg1, %c0_i32, %c0_i32_0 : i32, i32, i32
  }
  func.func @transform_8(%arg0: i32, %arg1: i32) -> (i32, i32, i32) {
    %c0_i32 = arith.constant 0 : i32
    %c0_i32_0 = arith.constant 0 : i32
    %c0_i32_1 = arith.constant 0 : i32
    return %arg1, %c0_i32, %c0_i32_0 : i32, i32, i32
  }
  func.func @transform_9(%arg0: i32, %arg1: i32) -> (i32, i32, i32) {
    %c0_i32 = arith.constant 0 : i32
    %c0_i32_0 = arith.constant 0 : i32
    %c0_i32_1 = arith.constant 0 : i32
    return %arg1, %c0_i32, %c0_i32_0 : i32, i32, i32
  }
  func.func @transform_10(%arg0: i32, %arg1: i32) -> (i32, i32, i32) {
    %c0_i32 = arith.constant 0 : i32
    %c0_i32_0 = arith.constant 0 : i32
    %c0_i32_1 = arith.constant 0 : i32
    return %arg1, %c0_i32, %c0_i32_0 : i32, i32, i32
  }
  func.func @transform_11(%arg0: i32, %arg1: i32) -> (i32, i32, i32) {
    %c0_i32 = arith.constant 0 : i32
    %c0_i32_0 = arith.constant 0 : i32
    %c0_i32_1 = arith.constant 0 : i32
    return %arg1, %c0_i32, %c0_i32_0 : i32, i32, i32
  }
  func.func @transform_12(%arg0: i32, %arg1: i32) -> (i32, i32, i32) {
    %c0_i32 = arith.constant 0 : i32
    %c0_i32_0 = arith.constant 0 : i32
    %c0_i32_1 = arith.constant 0 : i32
    return %arg1, %c0_i32, %c0_i32_0 : i32, i32, i32
  }
  func.func @transform_13(%arg0: i32, %arg1: i32) -> (i32, i32, i32) {
    %c0_i32 = arith.constant 0 : i32
    %c0_i32_0 = arith.constant 0 : i32
    %c0_i32_1 = arith.constant 0 : i32
    return %arg1, %c0_i32, %c0_i32_0 : i32, i32, i32
  }
  func.func @transform_14(%arg0: i32, %arg1: i32) -> (i32, i32, i32) {
    %c0_i32 = arith.constant 0 : i32
    %c0_i32_0 = arith.constant 0 : i32
    %c0_i32_1 = arith.constant 0 : i32
    return %arg1, %c0_i32, %c0_i32_0 : i32, i32, i32
  }
  func.func @transform_15(%arg0: i32, %arg1: i32) -> (i32, i32, i32) {
    %c0_i32 = arith.constant 0 : i32
    %c0_i32_0 = arith.constant 0 : i32
    %c0_i32_1 = arith.constant 0 : i32
    return %arg1, %c0_i32, %c0_i32_0 : i32, i32, i32
  }
  func.func @transform_16(%arg0: i32, %arg1: i32) -> (i32, i32, i32) {
    %c0_i32 = arith.constant 0 : i32
    %c0_i32_0 = arith.constant 0 : i32
    %c0_i32_1 = arith.constant 0 : i32
    return %arg1, %c0_i32, %c0_i32_0 : i32, i32, i32
  }
  func.func @transform_17(%arg0: i32, %arg1: i32) -> (i32, i32, i32) {
    %c0_i32 = arith.constant 0 : i32
    %c0_i32_0 = arith.constant 0 : i32
    %c0_i32_1 = arith.constant 0 : i32
    return %arg1, %c0_i32, %c0_i32_0 : i32, i32, i32
  }
  func.func @transform_18(%arg0: i32, %arg1: i32) -> (i32, i32, i32) {
    %c0_i32 = arith.constant 0 : i32
    %c0_i32_0 = arith.constant 0 : i32
    %c0_i32_1 = arith.constant 0 : i32
    return %arg1, %c0_i32, %c0_i32_0 : i32, i32, i32
  }
  func.func @transform_19(%arg0: i32, %arg1: i32) -> (i32, i32) {
    %c0_i32 = arith.constant 0 : i32
    %c0_i32_0 = arith.constant 0 : i32
    %c0_i32_1 = arith.constant 0 : i32
    return %c0_i32, %c0_i32_0 : i32, i32
  }
  func.func @transform_20(%arg0: i32, %arg1: i32) -> (i32, i32) {
    %c0_i32 = arith.constant 0 : i32
    %c0_i32_0 = arith.constant 0 : i32
    %c0_i32_1 = arith.constant 0 : i32
    return %c0_i32, %c0_i32_0 : i32, i32
  }
  func.func @transform_21(%arg0: i32, %arg1: i32) -> (i32, i32) {
    %c0_i32 = arith.constant 0 : i32
    %c0_i32_0 = arith.constant 0 : i32
    %c0_i32_1 = arith.constant 0 : i32
    return %c0_i32, %c0_i32_0 : i32, i32
  }
  func.func @transform_22(%arg0: i32, %arg1: i32) -> (i32, i32) {
    %c0_i32 = arith.constant 0 : i32
    %c0_i32_0 = arith.constant 0 : i32
    %c0_i32_1 = arith.constant 0 : i32
    return %c0_i32, %c0_i32_0 : i32, i32
  }
  func.func @transform_23(%arg0: i32, %arg1: i32) -> (i32, i32) {
    %c0_i32 = arith.constant 0 : i32
    %c0_i32_0 = arith.constant 0 : i32
    return %arg0, %c0_i32 : i32, i32
  }
}

</mosaic_0001>

<bundles_post_ra>
// kernel: tpu_custom_call.1
= control target key start
LH: loop header
LB: loop body
LE: loop exit
PB: predicated region body
PF: predicated region fallthrough
CT: control target
= control target key end

     0   :  { %s8410_s0 = inlined_call_operand.vmem [shape: f32[2,16,16], index: 0, kind: input, shape index: {}]   ;;  %s8411_s1 = inlined_call_operand.vmem [shape: bf16[16,32], index: 1, kind: input, shape index: {}]   ;;  %s8412_s2 = inlined_call_operand.vmem [shape: f32[1,32], index: 2, kind: input, shape index: {}]   ;;  %s8413_s3 = inlined_call_operand.vmem [shape: f32[1,32], index: 3, kind: input, shape index: {}]   ;;  %s8414_s4 = inlined_call_operand.vmem [shape: f32[24,32], index: 4, kind: input, shape index: {}]   ;;  %s8415_s5 = inlined_call_operand.vmem [shape: f32[24,24], index: 5, kind: input, shape index: {}]   ;;  %s8416_s6 = inlined_call_operand.vmem [shape: f32[24,1], index: 6, kind: input, shape index: {}]   ;;  %s8417_s7 = inlined_call_operand.vmem [shape: f32[2,1,32], index: 7, kind: input, shape index: {}]   ;;  %s8418_s8 = inlined_call_operand.vmem [shape: f32[2,1,32], index: 8, kind: input, shape index: {}]   ;;  %s8419_s9 = inlined_call_operand.vmem [shape: bf16[2,32,96], index: 9, kind: input, shape index: {}]   ;;  %s8420_s10 = inlined_call_operand.vmem [shape: f32[2,1,96], index: 10, kind: input, shape index: {}]   ;;  %s8421_s11 = inlined_call_operand.vmem [shape: bf16[2,32,32], index: 11, kind: input, shape index: {}]   ;;  %s8422_s12 = inlined_call_operand.vmem [shape: f32[2,1,32], index: 12, kind: input, shape index: {}]   ;;  %s8423_s13 = inlined_call_operand.vmem [shape: f32[2,1,32], index: 13, kind: input, shape index: {}]   ;;  %s8424_s14 = inlined_call_operand.vmem [shape: f32[2,1,32], index: 14, kind: input, shape index: {}]   ;;  %s8425_s15 = inlined_call_operand.vmem [shape: bf16[2,32,2048], index: 15, kind: input, shape index: {}]   ;;  %s8426_s16 = inlined_call_operand.vmem [shape: f32[2,1,2048], index: 16, kind: input, shape index: {}]   ;;  %s8427_s17 = inlined_call_operand.vmem [shape: bf16[2,2048,32], index: 17, kind: input, shape index: {}]   ;;  %s8428_s18 = inlined_call_operand.vmem [shape: f32[2,1,32], index: 18, kind: input, shape index: {}]   ;;  %s8429_s19 = inlined_call_operand.vmem [shape: f32[1,32], index: 19, kind: input, shape index: {}]   ;;  %s8430_s20 = inlined_call_operand.vmem [shape: f32[1,32], index: 20, kind: input, shape index: {}]   ;;  %s8431_s21 = inlined_call_operand.vmem [shape: bf16[32,10], index: 21, kind: input, shape index: {}]   ;;  %s8432_s22 = inlined_call_operand.vmem [shape: f32[1,10], index: 22, kind: input, shape index: {}]   ;;  %s8433_s23 = inlined_call_operand.hbm [shape: f32[2,10], index: 23, kind: output, shape index: {}]  }
   0x1   :  { %8452 = sst [smem:[#allocation17_spill]] %s8410_s0 }
   0x2   :  { %8453 = sst [smem:[#allocation18_spill]] %s8411_s1 }
   0x3   :  { %8454 = sst [smem:[#allocation19_spill]] %s8412_s2 }
   0x4   :  { %8455 = sst [smem:[#allocation20_spill]] %s8413_s3 }
   0x5   :  { %8456 = sst [smem:[#allocation21_spill]] %s8414_s4 }
   0x6   :  { %8457 = sst [smem:[#allocation22_spill]] %s8415_s5 }
   0x7   :  { %8458 = sst [smem:[#allocation23_spill]] %s8416_s6 }
   0x8   :  { %8459 = sst [smem:[#allocation24_spill]] %s8417_s7 }
   0x9   :  { %8460 = sst [smem:[#allocation25_spill]] %s8419_s9 }
   0xa   :  { %8461 = sst [smem:[#allocation26_spill]] %s8421_s11 }
   0xb   :  { %8462 = sst [smem:[#allocation27_spill]] %s8429_s19 }
   0xc   :  { %8463 = sst [smem:[#allocation28_spill]] %s8430_s20 }
   0xd   :  { %8464 = sst [smem:[#allocation29_spill]] %s8432_s22 }
   0xe   :  { %8465 = sst [smem:[#allocation30_spill]] %s8433_s23 }
   0xf   :  { %28 = vsyncpa [#allocation4], 0  ;;  %s7142_s4 = smov 0   ;;  %s7144_s30 = smov 0  }
  0x10   :  { %s7146_s24 = smov 0  }
  0x11 LB: > { %8466 = sst [smem:[#allocation6_spill]] %s6999_s30  ;;  %s43_s5 = sadd.s32 1, %s6999_s30  ;;  %s7003_s24 = sphi %s7146_s24, %s34_s24   ;;  %s6999_s30 = sphi %s7144_s30, %s8512_s30   ;;  %s6995_s4 = sphi %s7142_s4, %s8511_s4  }
  0x12   : > { %8467 = sst [smem:[#allocation7_spill]] %s7003_s24  ;;  %p44_p0 = scmp.ge.s32.totalorder %s43_s5, 2 }
  0x13   : > { %p5769_p1 = scmp.ge.s32.totalorder %s7003_s24, 1  ;;  %p757_p2 = scmp.lt.s32.totalorder %s7003_s24, 3 }
  0x14   : > { %s8514_s5 = smov (%p44_p0, %s43_s5), 0 }
  0x15   : > { %8468 = sst [smem:[#allocation8_spill]] %s8514_s5  ;;  %p758_p3 = pnand %p5769_p1, %p757_p2 }
  0x17   : > { %761 = sbr.rel (%p758_p3) target bundleno = 5744 (0x1670), region = 112 }
  0x1c   : > { %p869_p4 = scmp.lt.s32.totalorder %s6995_s4, 1  ;;  %s8470_s9 = sld [smem:[#allocation25_spill]] }
  0x1d   : > { %s8471_s11 = sld [smem:[#allocation26_spill]]  ;;  %p5779_p5 = scmp.ne.s32.totalorder %s6995_s4, 0 }
  0x1e   : > { %s7165_s1 = scalar_select %p869_p4, %s6995_s4, 1 }
  0x1f   : > { %s8473_s23 = sld [smem:[#allocation17_spill]] (!%p5779_p5) }
  0x20   : > { %s6035_s3 = sshll.u32 %s7165_s1, 4  ;;  %s6037_s26 = sshll.u32 %s7165_s1, 8 }
  0x21   : > { %s7206_s19 = scalar_lea.vmem %s8425_s15, %s6037_s26  ;;  %s6038_s27 = sshll.u32 %s7165_s1, 10 }
  0x22   : > { %s7183_s30 = scalar_lea.vmem %s8470_s9, %s6035_s3  ;;  %s913_s29 = scalar_lea.vmem %s8428_s18, %s7165_s1 }
  0x23   : > { %s7188_s22 = scalar_lea.vmem %s8471_s11, %s6035_s3  ;;  %s7211_s11 = scalar_lea.vmem %s8426_s16, %s6035_s3 }
  0x24   : > { %s7221_s25 = scalar_lea.vmem %s8427_s17, %s6038_s27  ;;  %918 = sbr.rel (%p5779_p5) target bundleno = 255 (0xff), region = 116 }
  0x25   : > { %s8472_s26 = sld [smem:[#allocation18_spill]] (!%p5779_p5) }
  0x26   : > { %s8474_s0 = sld [smem:[#allocation19_spill]] (!%p5779_p5) }
  0x27   : > { %s8475_s2 = sld [smem:[#allocation20_spill]] (!%p5779_p5) }
  0x28   : > { %s8476_s7 = sld [smem:[#allocation21_spill]] (!%p5779_p5) }
  0x29   : > { %v919_v1 = vld [vmem:[%s8473_s23] sm:$0xff]  ;;  %v920_v2 = vld [vmem:[%s8473_s23 + $0x8] sm:$0xff]  ;;  %vm940_vm0 = vcmask 130048   ;;  %v921_v3 = vld [vmem:[%s8473_s23 + $0x10] sm:$0xff]  ;;  %vm1001_vm1 = vcmask 1040384   ;;  %vm1027_vm2 = vcmask 261120  }
  0x2a   : > { %v923_v4 = vpack.c.bf16 %v920_v2, %v919_v1  ;;  %v922_v5 = vld [vmem:[%s8473_s23 + $0x18] sm:$0xff] }
  0x2b   : > { %v6687_v0 = vld [vmem:[%s8472_s26] sm:$0xff]   ;;  %v924_v6 = vpack.c.bf16 %v922_v5, %v921_v3 }
  0x2c   : > { %6402 = vmatprep.subr.bf16.mxu0 %v6687_v0  ;;  %6404 = vmatprep.mubr.msk.bf16.mxu0 %vm940_vm0, %v923_v4  ;;  %v5780_v7 = vld [vmem:[%s8474_s0] ss:$0 sm:$0xff] }
  0x2d   : > { %6403 = vmatpush3.bf16.msra.mxu0 %v6687_v0  ;;  %v996_v10 = vld [vmem:[%s8475_s2] sm:$0x1] }
  0x2e   : > { %v1018_v13 = vld [vmem:[%s8476_s7] sm:$0xff]  ;;  %v1019_v23 = vld [vmem:[%s8476_s7 + $0x8] sm:$0xff]  ;;  %v1020_v24 = vld [vmem:[%s8476_s7 + $0x10] sm:$0xff] }
  0x30   : > { %6405 = vmatmul.mubr.msk.bf16.vlgmr.msra.gmra.mxu0 %vm940_vm0, %v924_v6 }
  0xf0   : > { %v6406_v8 = vpop.f32.mrf.mxu0 }
  0xf1   : > { %v990_v9 = vadd.f32 %v6406_v8, %v5780_v7 }
  0xf2   : > { %v981_v11 = vpop.f32.mrf.mxu0 }
  0xf3   : > { %v1005_v12 = vrot.slane %v990_v9, 7  ;;  %v982_v14 = vadd.f32 %v5780_v7, %v981_v11 }
  0xf4   : > { %v6407_v15 = vpop.f32.mrf.mxu0 }
  0xf5   : > { %v1015_v16 = vsel %vm1001_vm1, %v996_v10, %v1005_v12  ;;  %v1002_v17 = vrot.slane %v982_v14, 7  ;;  %v993_v18 = vadd.f32 %v6407_v15, %v5780_v7 }
  0xf6   : > { %v1024_v19 = vadd.f32 %v1018_v13, %v1015_v16  ;;  %v984_v20 = vpop.f32.mrf.mxu0 }
  0xf7   : > { %v1014_v21 = vsel %vm1001_vm1, %v996_v10, %v1002_v17  ;;  %v1006_v22 = vrot.slane %v993_v18, 7  ;;  %v985_v25 = vadd.f32 %v5780_v7, %v984_v20 }
  0xf8   : > { %1031 = vst.msk [vmem:[#allocation2 + $0x18] sm:$0xff] %vm1027_vm2, %v1024_v19  ;;  %v1021_v26 = vadd.f32 %v1018_v13, %v1014_v21 }
  0xf9   : > { %v1007_v27 = vsel %vm1001_vm1, %v1005_v12, %v1006_v22  ;;  %v1017_v28 = vsel %vm1001_vm1, %v1006_v22, 0.0  ;;  %v1003_v29 = vrot.slane %v985_v25, 7 }
  0xfa   : > { %1028 = vst.msk [vmem:[#allocation2] sm:$0xff] %vm1027_vm2, %v1021_v26  ;;  %v1025_v30 = vadd.f32 %v1019_v23, %v1007_v27  ;;  %v1026_v31 = vadd.f32 %v1020_v24, %v1017_v28 }
  0xfb   : > { %v1004_v32 = vsel %vm1001_vm1, %v1002_v17, %v1003_v29  ;;  %v1016_v33 = vsel %vm1001_vm1, %v1003_v29, 0.0 }
  0xfc   : > { %1032 = vst.msk [vmem:[#allocation2 + $0x20] sm:$0xff] %vm1027_vm2, %v1025_v30  ;;  %1033 = vst.msk [vmem:[#allocation2 + $0x28] sm:$0xff] %vm1027_vm2, %v1026_v31  ;;  %v1022_v34 = vadd.f32 %v1019_v23, %v1004_v32  ;;  %v1023_v35 = vadd.f32 %v1020_v24, %v1016_v33 }
  0xfe   : > { %1029 = vst.msk [vmem:[#allocation2 + $0x8] sm:$0xff] %vm1027_vm2, %v1022_v34  ;;  %1030 = vst.msk [vmem:[#allocation2 + $0x10] sm:$0xff] %vm1027_vm2, %v1023_v35 }
  0xff PF: > { %vm1042_vm3 = vcmask 261120   ;;  %v1037_v41 = vld [vmem:[#allocation2 + $0x18] sm:$0xff]  ;;  %v6690_v14 = vld [vmem:[%s7183_s30 + $0x8] sm:$0xff]   ;;  %v7005_v15 = vmov 0.0   ;;  %vm7006_vm4 = vmmov 0   ;;  %v6691_v16 = vld [vmem:[%s7183_s30] sm:$0xff]   ;;  %s8479_s3 = scalar_lea.vmem %s8418_s8, %s7165_s1  ;;  %s8480_s27 = scalar_lea.vmem %s8420_s10, %s7165_s1 }
 0x100   : > { %v1052_v45 = vsel %vm1042_vm3, %v1037_v41, 0.0  ;;  %6408 = vmatprep.subr.bf16.mxu1 %v7005_v15  ;;  %6412 = vmatprep.mubr.msk.bf16.mxu1 %vm7006_vm4, %v7005_v15  ;;  %s8477_s0 = sld [smem:[#allocation24_spill]]  ;;  %vm1251_vm5 = vcmask 64512   ;;  %s7007_s6 = smov 96   ;;  %vm1378_vm6 = vcmask 195584   ;;  %vm1460_vm7 = vcmask 1043456  }
 0x101   : > { %v1034_v36 = vld [vmem:[#allocation2] sm:$0xff]  ;;  %6409 = vmatpush3.bf16.msra.mxu1 %v6690_v14  ;;  %s8481_s9 = sld [smem:[#allocation22_spill]]  ;;  %s7009_s24 = smov 88  }
 0x102   : > { %v1043_v39 = vsel %vm1042_vm3, %v1034_v36, 0.0  ;;  %6410 = vmatprep.subr.bf16.mxu1 %v7005_v15  ;;  %s7010_s20 = smov 120   ;;  %s7013_s28 = smov 112  }
 0x103   : > { %v1038_v42 = vld [vmem:[#allocation2 + $0x20] sm:$0xff]  ;;  %v1039_v43 = vld [vmem:[#allocation2 + $0x28] sm:$0xff]  ;;  %1044 = vadd.xlane.f32.xlu0 %v1043_v39  ;;  %s7014_s30 = smov 48   ;;  %s8489_s26 = scalar_lea.vmem %s8423_s13, %s7165_s1 }
 0x104   : > { %v1055_v46 = vsel %vm1042_vm3, %v1038_v42, 0.0  ;;  %v1058_v47 = vsel %vm1042_vm3, %v1039_v43, 0.0  ;;  %p6024_p6 = scmp.ne.s32.totalorder %s6995_s4, 1 }
 0x105   : > { %v1036_v37 = vld [vmem:[#allocation2 + $0x10] sm:$0xff]  ;;  %v1035_v38 = vld [vmem:[#allocation2 + $0x8] sm:$0xff]  ;;  %6411 = vmatpush3.bf16.msra.mxu1 %v6691_v16  ;;  %s8503_s2 = sld [smem:[#allocation27_spill]] (!%p6024_p6) }
 0x106   : > { %v1049_v40 = vsel %vm1042_vm3, %v1036_v37, 0.0  ;;  %v1046_v44 = vsel %vm1042_vm3, %v1035_v38, 0.0  ;;  %s8478_s5 = scalar_lea.vmem %s8477_s0, %s7165_s1  ;;  %s7015_s0 = smov 72  }
 0x107   : > { %1050 = vadd.xlane.f32.xlu1 %v1049_v40  ;;  %1047 = vadd.xlane.f32.xlu0 %v1046_v44 }
 0x10b   : > { %1053 = vadd.xlane.f32.xlu1 %v1052_v45  ;;  %1056 = vadd.xlane.f32.xlu0 %v1055_v46 }
 0x10f   : > { %1059 = vadd.xlane.f32.xlu1 %v1058_v47 }
 0x18c   : > { %v1045_v48 = vpop.xlane.xlu0 %1044 }
 0x18d   : > { %v1062_v50 = vmul.f32 0.03125, %v1045_v48 }
 0x18f   : > { %v7272_v52 = vsub.f32 %v1034_v36, %v1062_v50 }
 0x190   : > { %v1051_v49 = vpop.xlane.xlu1 %1050  ;;  %v1048_v54 = vpop.xlane.xlu0 %1047 }
 0x191   : > { %v1064_v51 = vmul.f32 0.03125, %v1051_v49  ;;  %v1063_v56 = vmul.f32 0.03125, %v1048_v54  ;;  %v1074_v58 = vmul.f32 %v7272_v52, %v7272_v52 }
 0x193   : > { %v7274_v53 = vsub.f32 %v1036_v37, %v1064_v51  ;;  %v1069_v60 = vsub.f32 %v1035_v38, %v1063_v56  ;;  %v1080_v62 = vsel %vm1042_vm3, %v1074_v58, 0.0  ;;  %v5784_v37 = vld [vmem:[%s8478_s5] ss:$0 sm:$0xff]  ;;  %s7016_s5 = smov 104  }
 0x194   : > { %v1054_v55 = vpop.xlane.xlu1 %1053  ;;  %1081 = vadd.xlane.f32.xlu0 %v1080_v62  ;;  %v1057_v63 = vpop.xlane.xlu0 %1056 }
 0x195   : > { %v1065_v57 = vmul.f32 0.03125, %v1054_v55  ;;  %v1076_v59 = vmul.f32 %v7274_v53, %v7274_v53  ;;  %v1066_v2 = vmul.f32 0.03125, %v1057_v63  ;;  %v1075_v4 = vmul.f32 %v1069_v60, %v1069_v60 }
 0x197   : > { %v7280_v61 = vsub.f32 %v1037_v41, %v1065_v57  ;;  %v1086_v1 = vsel %vm1042_vm3, %v1076_v59, 0.0  ;;  %v7286_v6 = vsub.f32 %v1038_v42, %v1066_v2  ;;  %v1083_v8 = vsel %vm1042_vm3, %v1075_v4, 0.0  ;;  %v5785_v42 = vld [vmem:[%s8479_s3] ss:$0 sm:$0xff]  ;;  %s7008_s3 = smov 64  }
 0x198   : > { %v1060_v0 = vpop.xlane.xlu1 %1059  ;;  %1087 = vadd.xlane.f32.xlu0 %v1086_v1  ;;  %1084 = vadd.xlane.f32.xlu1 %v1083_v8  ;;  %v5786_v1 = vld [vmem:[%s8480_s27] ss:$0 sm:$0xff]  ;;  %s7011_s27 = smov 56  }
 0x199   : > { %v1067_v3 = vmul.f32 0.03125, %v1060_v0  ;;  %v1077_v5 = vmul.f32 %v7280_v61, %v7280_v61  ;;  %v1078_v10 = vmul.f32 %v7286_v6, %v7286_v6 }
 0x19b   : > { %v7288_v7 = vsub.f32 %v1039_v43, %v1067_v3  ;;  %v1089_v9 = vsel %vm1042_vm3, %v1077_v5, 0.0  ;;  %v1092_v12 = vsel %vm1042_vm3, %v1078_v10, 0.0 }
 0x19c   : > { %1090 = vadd.xlane.f32.xlu1 %v1089_v9  ;;  %1093 = vadd.xlane.f32.xlu0 %v1092_v12 }
 0x19d   : > { %v1079_v11 = vmul.f32 %v7288_v7, %v7288_v7 }
 0x19f   : > { %v1095_v13 = vsel %vm1042_vm3, %v1079_v11, 0.0 }
 0x1a0   : > { %1096 = vadd.xlane.f32.xlu1 %v1095_v13 }
 0x21d   : > { %v1082_v17 = vpop.xlane.xlu0 %1081 }
 0x21e   : > { %v1098_v18 = vmul.f32 0.03125, %v1082_v17 }
 0x220   : > { %v1104_v19 = vadd.f32 1e-05, %v1098_v18 }
 0x221   : > { %v1085_v20 = vpop.xlane.xlu1 %1084  ;;  %v1088_v21 = vpop.xlane.xlu0 %1087 }
 0x222   : > { %6820 = vrsqrt.f32 %v1104_v19  ;;  %v1099_v22 = vmul.f32 0.03125, %v1085_v20  ;;  %v1100_v23 = vmul.f32 0.03125, %v1088_v21 }
 0x224   : > { %v1105_v24 = vadd.f32 1e-05, %v1099_v22  ;;  %v1106_v25 = vadd.f32 1e-05, %v1100_v23 }
 0x225   : > { %v1091_v26 = vpop.xlane.xlu1 %1090  ;;  %v1094_v27 = vpop.xlane.xlu0 %1093 }
 0x226   : > { %6822 = vrsqrt.f32 %v1105_v24  ;;  %v1101_v28 = vmul.f32 0.03125, %v1091_v26  ;;  %v1102_v30 = vmul.f32 0.03125, %v1094_v27 }
 0x227   : > { %6824 = vrsqrt.f32 %v1106_v25 }
 0x228   : > { %v1107_v29 = vadd.f32 1e-05, %v1101_v28  ;;  %v1108_v33 = vadd.f32 1e-05, %v1102_v30 }
 0x229   : > { %v1097_v31 = vpop.xlane.xlu1 %1096 }
 0x22a   : > { %6826 = vrsqrt.f32 %v1107_v29  ;;  %v1103_v32 = vmul.f32 0.03125, %v1097_v31 }
 0x22c   : > { %v1109_v34 = vadd.f32 1e-05, %v1103_v32 }
 0x22e   : > { %6828 = vrsqrt.f32 %v1109_v34  ;;  %v7367_v34 = vld [vmem:[%s8481_s9 + $0x10] sm:$0xff] }
 0x22f   : > { %v6821_v35 = vpop.eup %6820  ;;  %6830 = vrsqrt.f32 %v1108_v33  ;;  %v7362_v33 = vld [vmem:[%s8481_s9] sm:$0xff] }
 0x230   : > { %v1116_v36 = vmul.f32 %v6821_v35, %v7272_v52 }
 0x232   : > { %v1128_v40 = vmul.f32 %v5784_v37, %v1116_v36 }
 0x233   : > { %v6823_v38 = vpop.eup %6822 }
 0x234   : > { %v1117_v39 = vmul.f32 %v6823_v38, %v1069_v60  ;;  %v6825_v41 = vpop.eup %6824  ;;  %v1140_v45 = vadd.f32 %v5785_v42, %v1128_v40  ;;  %v7373_v38 = vld [vmem:[%s8481_s9 + $0x8] sm:$0xff] }
 0x235   : > { %v1118_v47 = vmul.f32 %v6825_v41, %v7274_v53 }
 0x236   : > { %v1129_v43 = vmul.f32 %v5784_v37, %v1117_v39 }
 0x237   : > { %v6827_v44 = vpop.eup %6826  ;;  %v1130_v52 = vmul.f32 %v5784_v37, %v1118_v47 }
 0x238   : > { %v1141_v46 = vadd.f32 %v5785_v42, %v1129_v43  ;;  %v1119_v48 = vmul.f32 %v6827_v44, %v7280_v61 }
 0x239   : > { %v1142_v57 = vadd.f32 %v5785_v42, %v1130_v52 }
 0x23a   : > { %v1146_v49 = vpack.c.bf16 %v1141_v46, %v1140_v45  ;;  %v1131_v50 = vmul.f32 %v5784_v37, %v1119_v48 }
 0x23b   : > { %v6829_v51 = vpop.eup %6828 }
 0x23c   : > { %6413 = vmatmul.mubr.msk.bf16.vlgmr.msra.gmra.mxu1 %vm1042_vm3, %v1146_v49  ;;  %v6831_v54 = vpop.eup %6830  ;;  %v1143_v55 = vadd.f32 %v5785_v42, %v1131_v50  ;;  %v1121_v56 = vmul.f32 %v6829_v51, %v7288_v7 }
 0x23d   : > { %6416 = vmatprep.mubr.msk.bf16.mxu1 %vm7006_vm4, %v7005_v15  ;;  %v1120_v58 = vmul.f32 %v6831_v54, %v7286_v6 }
 0x23e   : > { %v1147_v53 = vpack.c.bf16 %v1143_v55, %v1142_v57  ;;  %v1133_v59 = vmul.f32 %v5784_v37, %v1121_v56 }
 0x23f   : > { %v1132_v60 = vmul.f32 %v5784_v37, %v1120_v58 }
 0x240   : > { %v1145_v61 = vadd.f32 %v5785_v42, %v1133_v59 }
 0x241   : > { %v1144_v62 = vadd.f32 %v5785_v42, %v1132_v60 }
 0x243   : > { %v1148_v63 = vpack.c.bf16 %v1145_v61, %v1144_v62 }
 0x244   : > { %6417 = vmatmul.mubr.msk.bf16.gmra.mxu1 %vm1042_vm3, %v1147_v53 }
 0x245   : > { %6420 = vmatprep.mubr.msk.bf16.mxu1 %vm7006_vm4, %v7005_v15 }
 0x24c   : > { %6421 = vmatmul.mubr.msk.bf16.gmra.mxu1 %vm1042_vm3, %v1148_v63 }
 0x2fc   : > { %v1215_v0 = vpop.f32.mrf.mxu1 }
 0x2fd   : > { %v1216_v4 = vadd.f32 %v5786_v1, %v1215_v0 }
 0x2fe   : > { %v6414_v2 = vpop.f32.mrf.mxu1 }
 0x300   : > { %v1218_v3 = vpop.f32.mrf.mxu1 }
 0x301   : > { %v1219_v5 = vadd.f32 %v5786_v1, %v1218_v3 }
 0x302   : > { %v6415_v6 = vpop.f32.mrf.mxu1 }
 0x303   : > { %v7331_v7 = vpack.c.bf16 %v1219_v5, %v1216_v4 }
 0x304   : > { %v1223_v8 = vpop.f32.mrf.mxu1 }
 0x305   : > { %v1224_v9 = vadd.f32 %v5786_v1, %v1223_v8  ;;  %1247 = vrot.lane.b32.xlu1 %v7331_v7, %s7007_s6  ;;  %6428 = vmatprep.mubr.msk.bf16.mxu1 %vm1251_vm5, %v7331_v7 }
 0x306   : > { %v6418_v10 = vpop.f32.mrf.mxu1 }
 0x307   : > { %v7336_v11 = vpack.c.bf16 %v1224_v9, %v1224_v9 }
 0x308   : > { %v1226_v12 = vpop.f32.mrf.mxu1 }
 0x309   : > { %1249 = vrot.lane.b32.xlu0 %v7336_v11, %s7007_s6  ;;  %v1227_v16 = vadd.f32 %v5786_v1, %v1226_v12 }
 0x30a   : > { %v6419_v13 = vpop.f32.mrf.mxu1 }
 0x30c   : > { %v1231_v14 = vpop.f32.mrf.mxu1 }
 0x30d   : > { %v1232_v17 = vadd.f32 %v5786_v1, %v1231_v14 }
 0x30e   : > { %v6422_v18 = vpop.f32.mrf.mxu1 }
 0x30f   : > { %v7339_v19 = vpack.c.bf16 %v1232_v17, %v1227_v16 }
 0x310   : > { %v1234_v20 = vpop.f32.mrf.mxu1 }
 0x311   : > { %v1235_v21 = vadd.f32 %v5786_v1, %v1234_v20  ;;  %6436 = vmatprep.mubr.msk.bf16.mxu0 %vm1251_vm5, %v7339_v19 }
 0x312   : > { %v6423_v22 = vpop.f32.mrf.mxu1 }
 0x313   : > { %v7343_v23 = vpack.c.bf16 %v1235_v21, %v1235_v21 }
 0x315   : > { %1316 = vrot.lane.b32.xlu1 %v7343_v23, %s7007_s6 }
 0x319   : > { %1314 = vrot.lane.b32.xlu1 %v7339_v19, %s7007_s6  ;;  %s7012_s6 = smov 80  }
 0x377   : > { %v1248_v26 = vpop.permute.xlu1 %1247 }
 0x378   : > { %v1259_v27 = vsel %vm1251_vm5, %v1248_v26, 0 }
 0x37b   : > { %v1250_v24 = vpop.permute.xlu0 %1249 }
 0x37c   : > { %6616 = vmatprep.subr.msk.bf16.mxu1 %vm1251_vm5, %v1250_v24  ;;  %v1262_v25 = vsel %vm1251_vm5, %v1250_v24, 0 }
 0x37d   : > { %6425 = vmatpush3.bf16.xpose.msra.mxu1 %v1262_v25 }
 0x37e   : > { %6617 = vmatprep.subr.msk.bf16.mxu1 %vm1251_vm5, %v1248_v26 }
 0x385   : > { %6427 = vmatpush3.bf16.xpose.msra.mxu1 %v1259_v27 }
 0x387   : > { %v1317_v28 = vpop.permute.xlu1 %1316 }
 0x388   : > { %6618 = vmatprep.subr.msk.bf16.mxu0 %vm1251_vm5, %v1317_v28  ;;  %v1328_v29 = vsel %vm1251_vm5, %v1317_v28, 0 }
 0x389   : > { %6433 = vmatpush3.bf16.xpose.msra.mxu0 %v1328_v29 }
 0x38b   : > { %v1315_v30 = vpop.permute.xlu1 %1314 }
 0x38c   : > { %6429 = vmatmul.mubr.msk.bf16.vlgmr.msra.gmra.mxu1 %vm1251_vm5, %v7336_v11  ;;  %6619 = vmatprep.subr.msk.bf16.mxu0 %vm1251_vm5, %v1315_v30  ;;  %v1325_v31 = vsel %vm1251_vm5, %v1315_v30, 0 }
 0x391   : > { %6435 = vmatpush3.bf16.xpose.msra.mxu0 %v1325_v31 }
 0x398   : > { %6437 = vmatmul.mubr.msk.bf16.vlgmr.msra.gmra.mxu0 %vm1251_vm5, %v7343_v23 }
 0x44c   : > { %v6430_v32 = vpop.f32.mrf.mxu1 }
 0x44d   : > { %v1307_v39 = vadd.f32 %v6430_v32, %v7367_v34 }
 0x44e   : > { %v1298_v35 = vpop.f32.mrf.mxu1 }
 0x44f   : > { %v1299_v36 = vadd.f32 %v1298_v35, %v7362_v33  ;;  %v1385_v44 = vsel %vm1378_vm6, %v1307_v39, -inf }
 0x450   : > { %v6431_v37 = vpop.f32.mrf.mxu1 }
 0x451   : > { %v1379_v40 = vsel %vm1378_vm6, %v1299_v36, -inf }
 0x452   : > { %v1301_v41 = vpop.f32.mrf.mxu1  ;;  %1380 = vmax.xlane.f32.xlu0 %v1379_v40 }
 0x453   : > { %v1302_v42 = vadd.f32 %v1301_v41, %v7373_v38 }
 0x455   : > { %v1382_v43 = vsel %vm1378_vm6, %v1302_v42, -inf }
 0x456   : > { %1383 = vmax.xlane.f32.xlu1 %v1382_v43  ;;  %1386 = vmax.xlane.f32.xlu0 %v1385_v44 }
 0x458   : > { %v6438_v45 = vpop.f32.mrf.mxu0 }
 0x459   : > { %v1373_v46 = vadd.f32 %v6438_v45, %v7367_v34 }
 0x45a   : > { %v1364_v47 = vpop.f32.mrf.mxu0 }
 0x45b   : > { %v1365_v48 = vadd.f32 %v1364_v47, %v7362_v33  ;;  %v1394_v49 = vsel %vm1378_vm6, %v1373_v46, -inf }
 0x45c   : > { %v6439_v50 = vpop.f32.mrf.mxu0  ;;  %1395 = vmax.xlane.f32.xlu1 %v1394_v49 }
 0x45d   : > { %v1388_v51 = vsel %vm1378_vm6, %v1365_v48, -inf }
 0x45e   : > { %v1367_v52 = vpop.f32.mrf.mxu0  ;;  %1389 = vmax.xlane.f32.xlu0 %v1388_v51 }
 0x45f   : > { %v7385_v54 = vadd.f32 %v1367_v52, %v7373_v38 }
 0x461   : > { %v1391_v55 = vsel %vm1378_vm6, %v7385_v54, -inf }
 0x462   : > { %1392 = vmax.xlane.f32.xlu0 %v1391_v55 }
 0x46d   : > { %1449 = vrot.lane.b32.xlu1 %v7331_v7, %s7008_s3 }
 0x471   : > { %1584 = vrot.lane.b32.xlu1 %v7336_v11, %s7009_s24 }
 0x475   : > { %1514 = vrot.lane.b32.xlu1 %v7343_v23, %s7008_s3 }
 0x478   : > { %1451 = vrot.lane.b32.xlu0 %v7336_v11, %s7008_s3 }
 0x479   : > { %1582 = vrot.lane.b32.xlu1 %v7331_v7, %s7009_s24 }
 0x4db   : > { %v1381_v56 = vpop.xlane.xlu0 %1380 }
 0x4dc   : > { %v1397_v57 = vsub.f32 %v1299_v36, %v1381_v56 }
 0x4de   : > { %v1403_v63 = vmul.f32 1.442695, %v1397_v57 }
 0x4df   : > { %v1384_v58 = vpop.xlane.xlu1 %1383  ;;  %v1387_v53 = vpop.xlane.xlu0 %1386 }
 0x4e0   : > { %v1398_v59 = vsub.f32 %v1302_v42, %v1384_v58  ;;  %v1399_v60 = vsub.f32 %v1307_v39, %v1387_v53 }
 0x4e2   : > { %v1405_v61 = vmul.f32 1.442695, %v1398_v59  ;;  %v1407_v62 = vmul.f32 1.442695, %v1399_v60 }
 0x4e4   : > { %6832 = vpow2.f32 %v1405_v61 }
 0x4e5   : > { %6834 = vpow2.f32 %v1407_v62  ;;  %v1396_v0 = vpop.xlane.xlu1 %1395 }
 0x4e6   : > { %v1402_v1 = vsub.f32 %v1373_v46, %v1396_v0  ;;  %6836 = vpow2.f32 %v1403_v63 }
 0x4e7   : > { %v1390_v2 = vpop.xlane.xlu0 %1389 }
 0x4e8   : > { %v1413_v3 = vmul.f32 1.442695, %v1402_v1  ;;  %v1400_v4 = vsub.f32 %v1365_v48, %v1390_v2 }
 0x4e9   : > { %v1450_v5 = vpop.permute.xlu1 %1449 }
 0x4ea   : > { %6838 = vpow2.f32 %v1413_v3  ;;  %v1409_v6 = vmul.f32 1.442695, %v1400_v4 }
 0x4eb   : > { %v1393_v8 = vpop.xlane.xlu0 %1392 }
 0x4ec   : > { %6840 = vpow2.f32 %v1409_v6  ;;  %v1401_v30 = vsub.f32 %v7385_v54, %v1393_v8 }
 0x4ed   : > { %v1585_v9 = vpop.permute.xlu1 %1584 }
 0x4ee   : > { %v1596_v10 = vsel %vm1251_vm5, %v1585_v9, 0  ;;  %6622 = vmatprep.subr.msk.bf16.mxu0 %vm1251_vm5, %v1585_v9  ;;  %v1411_v31 = vmul.f32 1.442695, %v1401_v30 }
 0x4ef   : > { %6457 = vmatpush3.bf16.xpose.msra.mxu0 %v1596_v10  ;;  %v1452_v12 = vpop.permute.xlu0 %1451 }
 0x4f0   : > { %v1462_v13 = vsel %vm1460_vm7, %v1452_v12, 0  ;;  %6620 = vmatprep.subr.msk.bf16.mxu1 %vm1460_vm7, %v1452_v12  ;;  %6842 = vpow2.f32 %v1411_v31 }
 0x4f1   : > { %v6833_v14 = vpop.eup %6832  ;;  %v1515_v16 = vpop.permute.xlu1 %1514  ;;  %6441 = vmatpush3.bf16.msra.mxu1 %v1462_v13 }
 0x4f2   : > { %v6835_v17 = vpop.eup %6834  ;;  %6442 = vmatprep.subr.bf16.mxu1 %v1450_v5  ;;  %v1418_v18 = vsel %vm1378_vm6, %v6833_v14, 0.0  ;;  %v1524_v51 = vsel %vm1460_vm7, %v1515_v16, 0 }
 0x4f3   : > { %1419 = vadd.xlane.f32.xlu1 %v1418_v18  ;;  %v1421_v20 = vsel %vm1378_vm6, %v6835_v17, 0.0  ;;  %v6837_v21 = vpop.eup %6836 }
 0x4f4   : > { %1422 = vadd.xlane.f32.xlu0 %v1421_v20  ;;  %v1415_v26 = vsel %vm1378_vm6, %v6837_v21, 0.0 }
 0x4f5   : > { %v1583_v22 = vpop.permute.xlu1 %1582  ;;  %6443 = vmatpush3.bf16.msra.mxu1 %v1450_v5 }
 0x4f6   : > { %v1593_v24 = vsel %vm1251_vm5, %v1583_v22, 0  ;;  %6621 = vmatprep.subr.msk.bf16.mxu1 %vm1460_vm7, %v1515_v16  ;;  %6623 = vmatprep.subr.msk.bf16.mxu0 %vm1251_vm5, %v1583_v22 }
 0x4f7   : > { %v6839_v25 = vpop.eup %6838  ;;  %6459 = vmatpush3.bf16.xpose.msra.mxu0 %v1593_v24 }
 0x4f8   : > { %1416 = vadd.xlane.f32.xlu0 %v1415_v26  ;;  %v1430_v27 = vsel %vm1378_vm6, %v6839_v25, 0.0 }
 0x4f9   : > { %v6841_v28 = vpop.eup %6840  ;;  %1431 = vadd.xlane.f32.xlu1 %v1430_v27 }
 0x4fa   : > { %v1424_v29 = vsel %vm1378_vm6, %v6841_v28, 0.0 }
 0x4fd   : > { %1425 = vadd.xlane.f32.xlu1 %v1424_v29  ;;  %v6843_v32 = vpop.eup %6842 }
 0x4fe   : > { %v1427_v35 = vsel %vm1378_vm6, %v6843_v32, 0.0 }
 0x50e   : > { %1512 = vrot.lane.b32.xlu0 %v7339_v19, %s7008_s3  ;;  %1578 = vrot.lane.b32.xlu1 %v7331_v7, %s7010_s20 }
 0x512   : > { %1650 = vrot.lane.b32.xlu1 %v7339_v19, %s7009_s24 }
 0x516   : > { %1648 = vrot.lane.b32.xlu1 %v7343_v23, %s7010_s20 }
 0x52d   : > { %1428 = vadd.xlane.f32.xlu0 %v1427_v35 }
 0x543   : > { %1652 = vrot.lane.b32.xlu0 %v7343_v23, %s7009_s24  ;;  %s8490_s24 = scalar_lea.vmem %s8424_s14, %s7165_s1 }
 0x547   : > { %1580 = vrot.lane.b32.xlu0 %v7336_v11, %s7010_s20 }
 0x54b   : > { %1646 = vrot.lane.b32.xlu0 %v7339_v19, %s7010_s20 }
 0x57c   : > { %v1420_v36 = vpop.xlane.xlu1 %1419 }
 0x57d   : > { %v1423_v37 = vpop.xlane.xlu0 %1422 }
 0x57e   : > { %6844 = vrcp.f32 %v1423_v37 }
 0x57f   : > { %6846 = vrcp.f32 %v1420_v36 }
 0x581   : > { %v1417_v39 = vpop.xlane.xlu0 %1416 }
 0x582   : > { %6848 = vrcp.f32 %v1417_v39  ;;  %v1432_v40 = vpop.xlane.xlu1 %1431 }
 0x583   : > { %6850 = vrcp.f32 %v1432_v40 }
 0x585   : > { %v1513_v52 = vpop.permute.xlu0 %1512 }
 0x586   : > { %v1426_v41 = vpop.xlane.xlu1 %1425 }
 0x587   : > { %6852 = vrcp.f32 %v1426_v41 }
 0x58a   : > { %v1579_v42 = vpop.permute.xlu1 %1578 }
 0x58b   : > { %6460 = vmatprep.mubr.msk.bf16.mxu0 %vm1251_vm5, %v1579_v42  ;;  %v6845_v43 = vpop.eup %6844 }
 0x58c   : > { %v6847_v44 = vpop.eup %6846  ;;  %v1438_v46 = vmul.f32 %v6845_v43, %v6835_v17 }
 0x58d   : > { %v1436_v48 = vmul.f32 %v6847_v44, %v6833_v14 }
 0x58e   : > { %v1446_v50 = vpack.c.bf16 %v1438_v46, %v1438_v46  ;;  %v1651_v2 = vpop.permute.xlu1 %1650 }
 0x58f   : > { %v6849_v45 = vpop.eup %6848  ;;  %v1661_v3 = vsel %vm1251_vm5, %v1651_v2, 0 }
 0x590   : > { %v1434_v47 = vmul.f32 %v6849_v45, %v6837_v21  ;;  %v6851_v57 = vpop.eup %6850 }
 0x591   : > { %v1444_v59 = vmul.f32 %v6851_v57, %v6839_v25 }
 0x592   : > { %v1445_v49 = vpack.c.bf16 %v1436_v48, %v1434_v47  ;;  %v1649_v4 = vpop.permute.xlu1 %1648 }
 0x593   : > { %v1448_v63 = vpack.c.bf16 %v1444_v59, %v1444_v59 }
 0x594   : > { %6444 = vmatprep.mubr.msk.bf16.mxu1 %vm1378_vm6, %v1445_v49  ;;  %v6853_v58 = vpop.eup %6852 }
 0x595   : > { %6445 = vmatmul.mubr.msk.bf16.vlgmr.msra.gmra.mxu1 %vm1378_vm6, %v1446_v50  ;;  %v1440_v60 = vmul.f32 %v6853_v58, %v6841_v28 }
 0x596   : > { %6449 = vmatpush3.bf16.msra.mxu1 %v1524_v51 }
 0x597   : > { %6450 = vmatprep.subr.bf16.mxu1 %v1513_v52 }
 0x59a   : > { %6451 = vmatpush3.bf16.msra.mxu1 %v1513_v52 }
 0x5b6   : > { %v1429_v54 = vpop.xlane.xlu0 %1428 }
 0x5b7   : > { %6854 = vrcp.f32 %v1429_v54 }
 0x5ba   : > { %v1653_v55 = vpop.permute.xlu0 %1652 }
 0x5bb   : > { %6624 = vmatprep.subr.msk.bf16.mxu1 %vm1251_vm5, %v1653_v55  ;;  %v1664_v0 = vsel %vm1251_vm5, %v1653_v55, 0 }
 0x5be   : > { %v1581_v56 = vpop.permute.xlu0 %1580 }
 0x5bf   : > { %6461 = vmatmul.mubr.msk.bf16.vlgmr.msra.gmra.mxu0 %vm1251_vm5, %v1581_v56 }
 0x5c2   : > { %v1647_v1 = vpop.permute.xlu0 %1646 }
 0x5c4   : > { %v6855_v53 = vpop.eup %6854 }
 0x5c5   : > { %v1442_v61 = vmul.f32 %v6855_v53, %v6843_v32 }
 0x5c7   : > { %v1447_v62 = vpack.c.bf16 %v1442_v61, %v1440_v60 }
 0x5c9   : > { %6452 = vmatprep.mubr.msk.bf16.mxu1 %vm1378_vm6, %v1447_v62 }
 0x5ca   : > { %6453 = vmatmul.mubr.msk.bf16.vlgmr.msra.gmra.mxu1 %vm1378_vm6, %v1448_v63 }
 0x5cb   : > { %6465 = vmatpush3.bf16.xpose.msra.mxu1 %v1664_v0  ;;  %6468 = vmatprep.mubr.msk.bf16.mxu1 %vm1251_vm5, %v1647_v1 }
 0x5cc   : > { %6625 = vmatprep.subr.msk.bf16.mxu1 %vm1251_vm5, %v1651_v2 }
 0x5d3   : > { %6467 = vmatpush3.bf16.xpose.msra.mxu1 %v1661_v3 }
 0x5da   : > { %6469 = vmatmul.mubr.msk.bf16.vlgmr.msra.gmra.mxu1 %vm1251_vm5, %v1649_v4 }
 0x655   : > { %v7436_v5 = vpop.f32.mrf.mxu1 }
 0x657   : > { %v7438_v6 = vpop.f32.mrf.mxu1 }
 0x659   : > { %v6447_v8 = vpop.f32.mrf.mxu1 }
 0x65b   : > { %v7444_v20 = vpop.f32.mrf.mxu1 }
 0x67f   : > { %v6462_v9 = vpop.f32.mrf.mxu0 }
 0x680   : > { %v1641_v14 = vadd.f32 %v6462_v9, %v7367_v34 }
 0x681   : > { %v1632_v10 = vpop.f32.mrf.mxu0 }
 0x682   : > { %v1633_v12 = vadd.f32 %v1632_v10, %v7362_v33  ;;  %v1720_v22 = vsel %vm1378_vm6, %v1641_v14, -inf }
 0x683   : > { %v6463_v13 = vpop.f32.mrf.mxu0 }
 0x684   : > { %v1714_v16 = vsel %vm1378_vm6, %v1633_v12, -inf }
 0x685   : > { %v1635_v17 = vpop.f32.mrf.mxu0  ;;  %1715 = vmax.xlane.f32.xlu0 %v1714_v16 }
 0x686   : > { %v1636_v18 = vadd.f32 %v1635_v17, %v7373_v38 }
 0x688   : > { %v1717_v21 = vsel %vm1378_vm6, %v1636_v18, -inf }
 0x689   : > { %1718 = vmax.xlane.f32.xlu1 %v1717_v21  ;;  %1721 = vmax.xlane.f32.xlu0 %v1720_v22 }
 0x68a   : > { %v7448_v24 = vpop.f32.mrf.mxu1 }
 0x68c   : > { %v7450_v25 = vpop.f32.mrf.mxu1 }
 0x68d   : > { %v1575_v26 = vpack.c.bf16 %v7450_v25, %v7436_v5 }
 0x68e   : > { %v6455_v27 = vpop.f32.mrf.mxu1 }
 0x690   : > { %v7454_v28 = vpop.f32.mrf.mxu1 }
 0x69a   : > { %v6470_v29 = vpop.f32.mrf.mxu1 }
 0x69b   : > { %v1709_v30 = vadd.f32 %v6470_v29, %v7367_v34 }
 0x69c   : > { %v1700_v31 = vpop.f32.mrf.mxu1 }
 0x69d   : > { %v1701_v32 = vadd.f32 %v1700_v31, %v7362_v33  ;;  %v1729_v35 = vsel %vm1378_vm6, %v1709_v30, -inf }
 0x69e   : > { %1730 = vmax.xlane.f32.xlu1 %v1729_v35  ;;  %v6471_v36 = vpop.f32.mrf.mxu1 }
 0x69f   : > { %v1723_v37 = vsel %vm1378_vm6, %v1701_v32, -inf }
 0x6a0   : > { %v1703_v39 = vpop.f32.mrf.mxu1  ;;  %1724 = vmax.xlane.f32.xlu0 %v1723_v37 }
 0x6a1   : > { %v1704_v40 = vadd.f32 %v1703_v39, %v7373_v38 }
 0x6a3   : > { %v1726_v41 = vsel %vm1378_vm6, %v1704_v40, -inf }
 0x6a4   : > { %1727 = vmax.xlane.f32.xlu0 %v1726_v41  ;;  %v1911_v41 = vld [vmem:[%s7188_s22 + $0x4] sm:$0xf] }
 0x70e   : > { %v1716_v42 = vpop.xlane.xlu0 %1715 }
 0x70f   : > { %v1732_v43 = vsub.f32 %v1633_v12, %v1716_v42 }
 0x711   : > { %v1738_v44 = vmul.f32 1.442695, %v1732_v43 }
 0x712   : > { %v1719_v45 = vpop.xlane.xlu1 %1718  ;;  %v1722_v46 = vpop.xlane.xlu0 %1721 }
 0x713   : > { %6856 = vpow2.f32 %v1738_v44  ;;  %v1733_v47 = vsub.f32 %v1636_v18, %v1719_v45  ;;  %v1734_v48 = vsub.f32 %v1641_v14, %v1722_v46  ;;  %v1922_v45 = vsel %vm1460_vm7, %v1911_v41, 0 }
 0x715   : > { %v1740_v49 = vmul.f32 1.442695, %v1733_v47  ;;  %v1742_v50 = vmul.f32 1.442695, %v1734_v48 }
 0x717   : > { %6858 = vpow2.f32 %v1740_v49 }
 0x718   : > { %6860 = vpow2.f32 %v1742_v50 }
 0x720   : > { %v6857_v51 = vpop.eup %6856 }
 0x721   : > { %v1750_v52 = vsel %vm1378_vm6, %v6857_v51, 0.0 }
 0x722   : > { %1751 = vadd.xlane.f32.xlu0 %v1750_v52  ;;  %v1577_v52 = vld [vmem:[%s7188_s22] sm:$0xf] }
 0x724   : > { %v6859_v54 = vpop.eup %6858 }
 0x725   : > { %v7463_v55 = vpop.eup %6860  ;;  %v1753_v56 = vsel %vm1378_vm6, %v6859_v54, 0.0 }
 0x726   : > { %1754 = vadd.xlane.f32.xlu1 %v1753_v56  ;;  %v1756_v57 = vsel %vm1378_vm6, %v7463_v55, 0.0 }
 0x727   : > { %v1731_v58 = vpop.xlane.xlu1 %1730  ;;  %1757 = vadd.xlane.f32.xlu0 %v1756_v57  ;;  %v1991_v57 = vsel %vm1460_vm7, %v1577_v52, 0 }
 0x728   : > { %v1737_v53 = vsub.f32 %v1709_v30, %v1731_v58 }
 0x729   : > { %v1725_v59 = vpop.xlane.xlu0 %1724 }
 0x72a   : > { %v1748_v60 = vmul.f32 1.442695, %v1737_v53  ;;  %v1735_v61 = vsub.f32 %v1701_v32, %v1725_v59  ;;  %v1574_v59 = vpack.c.bf16 %v7444_v20, %v7438_v6  ;;  %v1576_v20 = vpack.c.bf16 %v7448_v24, %v7454_v28 }
 0x72c   : > { %6862 = vpow2.f32 %v1748_v60  ;;  %v1744_v62 = vmul.f32 1.442695, %v1735_v61 }
 0x72d   : > { %v1728_v63 = vpop.xlane.xlu0 %1727 }
 0x72e   : > { %6864 = vpow2.f32 %v1744_v62  ;;  %v1736_v0 = vsub.f32 %v1704_v40, %v1728_v63 }
 0x730   : > { %v1746_v1 = vmul.f32 1.442695, %v1736_v0 }
 0x732   : > { %6866 = vpow2.f32 %v1746_v1 }
 0x739   : > { %v7468_v2 = vpop.eup %6862 }
 0x73a   : > { %v1765_v3 = vsel %vm1378_vm6, %v7468_v2, 0.0 }
 0x73b   : > { %v7472_v4 = vpop.eup %6864  ;;  %1766 = vadd.xlane.f32.xlu1 %v1765_v3 }
 0x73c   : > { %v1759_v8 = vsel %vm1378_vm6, %v7472_v4, 0.0 }
 0x73f   : > { %v7476_v9 = vpop.eup %6866  ;;  %1760 = vadd.xlane.f32.xlu1 %v1759_v8 }
 0x740   : > { %v1762_v10 = vsel %vm1378_vm6, %v7476_v9, 0.0 }
 0x741   : > { %1763 = vadd.xlane.f32.xlu0 %v1762_v10 }
 0x750   : > { %1784 = vrot.lane.b32.xlu1 %v7331_v7, %s7011_s27 }
 0x754   : > { %1848 = vrot.lane.b32.xlu1 %v7343_v23, %s7011_s27 }
 0x757   : > { %1786 = vrot.lane.b32.xlu0 %v7336_v11, %s7011_s27 }
 0x758   : > { %1846 = vrot.lane.b32.xlu1 %v7339_v19, %s7011_s27  ;;  %s8496_s27 = sld [smem:[#allocation23_spill]] }
 0x75b   : > { %2056 = vrot.lane.b32.xlu0 %v7336_v11, %s7012_s6 }
 0x75c   : > { %2054 = vrot.lane.b32.xlu1 %v7331_v7, %s7012_s6 }
 0x75f   : > { %2124 = vrot.lane.b32.xlu0 %v7343_v23, %s7012_s6 }
 0x760   : > { %2050 = vrot.lane.b32.xlu1 %v7331_v7, %s7013_s28 }
 0x763   : > { %2052 = vrot.lane.b32.xlu0 %v7336_v11, %s7013_s28 }
 0x764   : > { %2122 = vrot.lane.b32.xlu1 %v7339_v19, %s7012_s6  ;;  %s7017_s6 = smov 40  }
 0x767   : > { %2118 = vrot.lane.b32.xlu0 %v7339_v19, %s7013_s28 }
 0x768   : > { %2120 = vrot.lane.b32.xlu1 %v7343_v23, %s7013_s28 }
 0x7ab   : > { %v1752_v12 = vpop.xlane.xlu0 %1751 }
 0x7ac   : > { %6868 = vrcp.f32 %v1752_v12 }
 0x7af   : > { %v1755_v13 = vpop.xlane.xlu1 %1754 }
 0x7b0   : > { %6870 = vrcp.f32 %v1755_v13  ;;  %v1758_v17 = vpop.xlane.xlu0 %1757 }
 0x7b1   : > { %6872 = vrcp.f32 %v1758_v17 }
 0x7b9   : > { %v6869_v14 = vpop.eup %6868 }
 0x7ba   : > { %v1769_v18 = vmul.f32 %v6869_v14, %v6857_v51 }
 0x7bd   : > { %v6871_v16 = vpop.eup %6870 }
 0x7be   : > { %v1771_v21 = vmul.f32 %v6871_v16, %v6859_v54  ;;  %v6873_v32 = vpop.eup %6872 }
 0x7bf   : > { %v1773_v40 = vmul.f32 %v6873_v32, %v7463_v55 }
 0x7c0   : > { %v1780_v22 = vpack.c.bf16 %v1771_v21, %v1769_v18 }
 0x7c1   : > { %v1781_v44 = vpack.c.bf16 %v1773_v40, %v1773_v40 }
 0x7c2   : > { %6476 = vmatprep.mubr.msk.bf16.mxu0 %vm1378_vm6, %v1780_v22 }
 0x7c4   : > { %v1767_v27 = vpop.xlane.xlu1 %1766 }
 0x7c5   : > { %6874 = vrcp.f32 %v1767_v27 }
 0x7c8   : > { %v1761_v29 = vpop.xlane.xlu1 %1760 }
 0x7c9   : > { %6876 = vrcp.f32 %v1761_v29 }
 0x7ca   : > { %v1764_v30 = vpop.xlane.xlu0 %1763 }
 0x7cb   : > { %6878 = vrcp.f32 %v1764_v30 }
 0x7cc   : > { %v1785_v31 = vpop.permute.xlu1 %1784 }
 0x7ce   : > { %v1787_v35 = vpop.permute.xlu0 %1786 }
 0x7cf   : > { %v1796_v36 = vsel %vm1460_vm7, %v1787_v35, 0  ;;  %6626 = vmatprep.subr.msk.bf16.mxu0 %vm1460_vm7, %v1787_v35 }
 0x7d0   : > { %v1849_v37 = vpop.permute.xlu1 %1848  ;;  %6473 = vmatpush3.bf16.msra.mxu0 %v1796_v36 }
 0x7d1   : > { %v1858_v39 = vsel %vm1460_vm7, %v1849_v37, 0  ;;  %6474 = vmatprep.subr.bf16.mxu0 %v1785_v31  ;;  %6627 = vmatprep.subr.msk.bf16.mxu1 %vm1460_vm7, %v1849_v37 }
 0x7d2   : > { %6481 = vmatpush3.bf16.msra.mxu1 %v1858_v39  ;;  %v6875_v43 = vpop.eup %6874  ;;  %v2057_v48 = vpop.permute.xlu0 %2056 }
 0x7d3   : > { %v1779_v49 = vmul.f32 %v6875_v43, %v7468_v2 }
 0x7d4   : > { %v1847_v42 = vpop.permute.xlu1 %1846  ;;  %6475 = vmatpush3.bf16.msra.mxu0 %v1785_v31 }
 0x7d5   : > { %6482 = vmatprep.subr.bf16.mxu1 %v1847_v42  ;;  %6488 = vmatprep.subr.bf16.mxu0 %v7005_v15  ;;  %v1783_v56 = vpack.c.bf16 %v1779_v49, %v1779_v49 }
 0x7d6   : > { %v6877_v46 = vpop.eup %6876  ;;  %6483 = vmatpush3.bf16.msra.mxu1 %v1847_v42  ;;  %v2125_v58 = vpop.permute.xlu0 %2124 }
 0x7d7   : > { %6477 = vmatmul.mubr.msk.bf16.vlgmr.msra.gmra.mxu0 %vm1378_vm6, %v1781_v44  ;;  %6502 = vmatprep.subr.bf16.mxu1 %v7005_v15  ;;  %v1775_v50 = vmul.f32 %v6877_v46, %v7472_v4  ;;  %v2136_v60 = vsel %vm1251_vm5, %v2125_v58, 0  ;;  %v2068_v4 = vsel %vm1251_vm5, %v2057_v48, 0 }
 0x7d8   : > { %v6879_v47 = vpop.eup %6878  ;;  %6489 = vmatpush3.bf16.msra.mxu0 %v1922_v45  ;;  %6490 = vmatprep.mubr.msk.bf16.mxu0 %vm7006_vm4, %v7005_v15  ;;  %v2055_v54 = vpop.permute.xlu1 %2054 }
 0x7d9   : > { %6628 = vmatprep.subr.msk.bf16.mxu0 %vm1251_vm5, %v2057_v48  ;;  %v1777_v51 = vmul.f32 %v6879_v47, %v7476_v9  ;;  %v2065_v12 = vsel %vm1251_vm5, %v2055_v54, 0 }
 0x7da   : > { %v2053_v6 = vpop.permute.xlu0 %2052 }
 0x7db   : > { %v1782_v55 = vpack.c.bf16 %v1777_v51, %v1775_v50 }
 0x7dc   : > { %v2051_v53 = vpop.permute.xlu1 %2050 }
 0x7dd   : > { %6484 = vmatprep.mubr.msk.bf16.mxu1 %vm1378_vm6, %v1782_v55 }
 0x7de   : > { %6485 = vmatmul.mubr.msk.bf16.vlgmr.msra.gmra.mxu1 %vm1378_vm6, %v1783_v56  ;;  %v2119_v63 = vpop.permute.xlu0 %2118 }
 0x7df   : > { %6503 = vmatpush3.bf16.msra.mxu1 %v1991_v57  ;;  %6504 = vmatprep.mubr.msk.bf16.mxu1 %vm7006_vm4, %v7005_v15 }
 0x7e0   : > { %6630 = vmatprep.subr.msk.bf16.mxu1 %vm1251_vm5, %v2125_v58  ;;  %v2123_v61 = vpop.permute.xlu1 %2122 }
 0x7e1   : > { %v2133_v62 = vsel %vm1251_vm5, %v2123_v61, 0 }
 0x7e4   : > { %v2121_v0 = vpop.permute.xlu1 %2120 }
 0x7e6   : > { %6505 = vmatmul.mubr.msk.bf16.vlgmr.msra.gmra.mxu1 %vm1251_vm5, %v1574_v59 }
 0x7e7   : > { %6525 = vmatpush3.bf16.xpose.msra.mxu1 %v2136_v60  ;;  %6508 = vmatprep.mubr.msk.bf16.mxu1 %vm7006_vm4, %v7005_v15 }
 0x7e8   : > { %6631 = vmatprep.subr.msk.bf16.mxu1 %vm1251_vm5, %v2123_v61 }
 0x7ee   : > { %6509 = vmatmul.mubr.msk.bf16.gmra.mxu1 %vm1251_vm5, %v1575_v26 }
 0x7ef   : > { %6527 = vmatpush3.bf16.xpose.msra.mxu1 %v2133_v62  ;;  %6512 = vmatprep.mubr.msk.bf16.mxu1 %vm7006_vm4, %v7005_v15 }
 0x7f6   : > { %6513 = vmatmul.mubr.msk.bf16.gmra.mxu1 %vm1251_vm5, %v1576_v20 }
 0x7f7   : > { %6528 = vmatprep.mubr.msk.bf16.mxu1 %vm1251_vm5, %v2119_v63 }
 0x7fe   : > { %6529 = vmatmul.mubr.msk.bf16.vlgmr.msra.gmra.mxu1 %vm1251_vm5, %v2121_v0 }
 0x897   : > { %v6478_v1 = vpop.f32.mrf.mxu0 }
 0x899   : > { %v1832_v5 = vpop.f32.mrf.mxu0 }
 0x89b   : > { %v6479_v25 = vpop.f32.mrf.mxu0 }
 0x89d   : > { %v1835_v26 = vpop.f32.mrf.mxu0 }
 0x89e   : > { %v1908_v2 = vpack.c.bf16 %v1835_v26, %v1832_v5  ;;  %v6486_v3 = vpop.f32.mrf.mxu1 }
 0x8a0   : > { %v1894_v8 = vpop.f32.mrf.mxu1  ;;  %6491 = vmatmul.mubr.msk.bf16.vlgmr.msra.gmra.mxu0 %vm1251_vm5, %v1908_v2 }
 0x8a1   : > { %6517 = vmatpush3.bf16.xpose.msra.mxu0 %v2068_v4  ;;  %6494 = vmatprep.mubr.msk.bf16.mxu0 %vm7006_vm4, %v7005_v15  ;;  %v1909_v9 = vpack.c.bf16 %v1894_v8, %v6478_v1 }
 0x8a2   : > { %6629 = vmatprep.subr.msk.bf16.mxu0 %vm1251_vm5, %v2055_v54  ;;  %v6487_v24 = vpop.f32.mrf.mxu1 }
 0x8a4   : > { %v1897_v28 = vpop.f32.mrf.mxu1 }
 0x8a5   : > { %v1910_v17 = vpack.c.bf16 %v6486_v3, %v1897_v28 }
 0x8a6   : > { %v7540_v10 = vpop.f32.mrf.mxu1 }
 0x8a8   : > { %6495 = vmatmul.mubr.msk.bf16.gmra.mxu0 %vm1251_vm5, %v1909_v9  ;;  %v6506_v13 = vpop.f32.mrf.mxu1 }
 0x8a9   : > { %6519 = vmatpush3.bf16.xpose.msra.mxu0 %v2065_v12  ;;  %6498 = vmatprep.mubr.msk.bf16.mxu0 %vm7006_vm4, %v7005_v15 }
 0x8aa   : > { %v7546_v14 = vpop.f32.mrf.mxu1 }
 0x8ac   : > { %v6507_v16 = vpop.f32.mrf.mxu1 }
 0x8ae   : > { %v7548_v18 = vpop.f32.mrf.mxu1 }
 0x8b0   : > { %6499 = vmatmul.mubr.msk.bf16.gmra.mxu0 %vm1251_vm5, %v1910_v17  ;;  %v6510_v21 = vpop.f32.mrf.mxu1 }
 0x8b1   : > { %6520 = vmatprep.mubr.msk.bf16.mxu0 %vm1251_vm5, %v2051_v53 }
 0x8b2   : > { %v7552_v22 = vpop.f32.mrf.mxu1 }
 0x8b4   : > { %v6511_v27 = vpop.f32.mrf.mxu1 }
 0x8b6   : > { %v7554_v29 = vpop.f32.mrf.mxu1 }
 0x8b8   : > { %v6514_v30 = vpop.f32.mrf.mxu1  ;;  %6521 = vmatmul.mubr.msk.bf16.vlgmr.msra.gmra.mxu0 %vm1251_vm5, %v2053_v6 }
 0x8ba   : > { %v7557_v31 = vpop.f32.mrf.mxu1 }
 0x8bc   : > { %v6515_v32 = vpop.f32.mrf.mxu1 }
 0x8be   : > { %v6530_v35 = vpop.f32.mrf.mxu1 }
 0x8bf   : > { %v2181_v59 = vadd.f32 %v6530_v35, %v7367_v34 }
 0x8c0   : > { %v2172_v36 = vpop.f32.mrf.mxu1 }
 0x8c1   : > { %v2173_v60 = vadd.f32 %v2172_v36, %v7362_v33  ;;  %v2201_v63 = vsel %vm1378_vm6, %v2181_v59, -inf }
 0x8c2   : > { %v6531_v37 = vpop.f32.mrf.mxu1 }
 0x8c3   : > { %v2195_v0 = vsel %vm1378_vm6, %v2173_v60, -inf }
 0x8c4   : > { %v2175_v6 = vpop.f32.mrf.mxu1 }
 0x8c5   : > { %v2176_v20 = vadd.f32 %v2175_v6, %v7373_v38 }
 0x8c7   : > { %v2198_v1 = vsel %vm1378_vm6, %v2176_v20, -inf }
 0x960   : > { %v7559_v39 = vpop.f32.mrf.mxu0 }
 0x962   : > { %v6492_v40 = vpop.f32.mrf.mxu0 }
 0x964   : > { %v7561_v41 = vpop.f32.mrf.mxu0 }
 0x966   : > { %v6493_v42 = vpop.f32.mrf.mxu0 }
 0x968   : > { %v7563_v43 = vpop.f32.mrf.mxu0 }
 0x96a   : > { %v6496_v44 = vpop.f32.mrf.mxu0 }
 0x96c   : > { %v7565_v45 = vpop.f32.mrf.mxu0 }
 0x96e   : > { %v6497_v46 = vpop.f32.mrf.mxu0 }
 0x970   : > { %v7567_v47 = vpop.f32.mrf.mxu0 }
 0x972   : > { %v6500_v48 = vpop.f32.mrf.mxu0 }
 0x974   : > { %v7569_v49 = vpop.f32.mrf.mxu0 }
 0x976   : > { %v6501_v50 = vpop.f32.mrf.mxu0 }
 0x978   : > { %v6522_v51 = vpop.f32.mrf.mxu0 }
 0x979   : > { %v2113_v56 = vadd.f32 %v6522_v51, %v7367_v34 }
 0x97a   : > { %v2104_v52 = vpop.f32.mrf.mxu0 }
 0x97b   : > { %v2105_v54 = vadd.f32 %v2104_v52, %v7362_v33  ;;  %v2192_v62 = vsel %vm1378_vm6, %v2113_v56, -inf }
 0x97c   : > { %v6523_v55 = vpop.f32.mrf.mxu0 }
 0x97d   : > { %v2186_v57 = vsel %vm1378_vm6, %v2105_v54, -inf }
 0x97e   : > { %v2107_v58 = vpop.f32.mrf.mxu0  ;;  %2187 = vmax.xlane.f32.xlu0 %v2186_v57 }
 0x97f   : > { %v2108_v53 = vadd.f32 %v2107_v58, %v7373_v38 }
 0x981   : > { %v2189_v61 = vsel %vm1378_vm6, %v2108_v53, -inf }
 0x982   : > { %2190 = vmax.xlane.f32.xlu1 %v2189_v61  ;;  %2193 = vmax.xlane.f32.xlu0 %v2192_v62 }
 0x986   : > { %2202 = vmax.xlane.f32.xlu1 %v2201_v63  ;;  %2196 = vmax.xlane.f32.xlu0 %v2195_v0 }
 0x98a   : > { %2199 = vmax.xlane.f32.xlu0 %v2198_v1 }
 0xa07   : > { %v2188_v34 = vpop.xlane.xlu0 %2187 }
 0xa08   : > { %v2204_v9 = vsub.f32 %v2105_v54, %v2188_v34 }
 0xa0a   : > { %v2210_v16 = vmul.f32 1.442695, %v2204_v9  ;;  %v2383_v9 = vld [vmem:[%s7188_s22 + $0x8] sm:$0xf] }
 0xa0b   : > { %v2191_v33 = vpop.xlane.xlu1 %2190  ;;  %v2194_v5 = vpop.xlane.xlu0 %2193 }
 0xa0c   : > { %v2206_v4 = vsub.f32 %v2113_v56, %v2194_v5  ;;  %v2205_v44 = vsub.f32 %v2108_v53, %v2191_v33 }
 0xa0e   : > { %v2214_v12 = vmul.f32 1.442695, %v2206_v4  ;;  %v2212_v46 = vmul.f32 1.442695, %v2205_v44 }
 0xa0f   : > { %v2203_v25 = vpop.xlane.xlu1 %2202  ;;  %v2197_v26 = vpop.xlane.xlu0 %2196 }
 0xa10   : > { %v2209_v2 = vsub.f32 %v2181_v59, %v2203_v25  ;;  %v2207_v3 = vsub.f32 %v2173_v60, %v2197_v26 }
 0xa12   : > { %v2216_v8 = vmul.f32 1.442695, %v2207_v3  ;;  %v2220_v24 = vmul.f32 1.442695, %v2209_v2 }
 0xa13   : > { %v2200_v38 = vpop.xlane.xlu0 %2199 }
 0xa14   : > { %v2208_v28 = vsub.f32 %v2176_v20, %v2200_v38  ;;  %6880 = vpow2.f32 %v2216_v8 }
 0xa15   : > { %6882 = vpow2.f32 %v2220_v24 }
 0xa16   : > { %v2218_v13 = vmul.f32 1.442695, %v2208_v28 }
 0xa18   : > { %6884 = vpow2.f32 %v2218_v13 }
 0xa19   : > { %6886 = vpow2.f32 %v2214_v12 }
 0xa1a   : > { %6888 = vpow2.f32 %v2210_v16 }
 0xa1b   : > { %6890 = vpow2.f32 %v2212_v46 }
 0xa21   : > { %v6881_v17 = vpop.eup %6880 }
 0xa22   : > { %v2231_v21 = vsel %vm1378_vm6, %v6881_v17, 0.0  ;;  %v7584_v27 = vpop.eup %6882 }
 0xa23   : > { %2232 = vadd.xlane.f32.xlu1 %v2231_v21  ;;  %v2237_v36 = vsel %vm1378_vm6, %v7584_v27, 0.0 }
 0xa25   : > { %v6885_v30 = vpop.eup %6884 }
 0xa26   : > { %v2234_v32 = vsel %vm1378_vm6, %v6885_v30, 0.0  ;;  %v7587_v35 = vpop.eup %6886 }
 0xa27   : > { %2235 = vadd.xlane.f32.xlu0 %v2234_v32  ;;  %2238 = vadd.xlane.f32.xlu1 %v2237_v36  ;;  %v2228_v37 = vsel %vm1378_vm6, %v7587_v35, 0.0  ;;  %v7593_v40 = vpop.eup %6888 }
 0xa28   : > { %v2222_v42 = vsel %vm1378_vm6, %v7593_v40, 0.0  ;;  %v6891_v48 = vpop.eup %6890 }
 0xa29   : > { %v2225_v50 = vsel %vm1378_vm6, %v6891_v48, 0.0 }
 0xa2b   : > { %2229 = vadd.xlane.f32.xlu0 %v2228_v37 }
 0xa2f   : > { %2223 = vadd.xlane.f32.xlu0 %v2222_v42 }
 0xa38   : > { %2256 = vrot.lane.b32.xlu1 %v7331_v7, %s7014_s30 }
 0xa45   : > { %2258 = vrot.lane.b32.xlu0 %v7336_v11, %s7014_s30 }
 0xa49   : > { %2465 = vrot.lane.b32.xlu0 %v7336_v11, %s7015_s0 }
 0xa4d   : > { %2533 = vrot.lane.b32.xlu0 %v7343_v23, %s7015_s0 }
 0xa51   : > { %2461 = vrot.lane.b32.xlu0 %v7336_v11, %s7016_s5 }
 0xa55   : > { %2527 = vrot.lane.b32.xlu0 %v7339_v19, %s7016_s5 }
 0xa5c   : > { %2226 = vadd.xlane.f32.xlu1 %v2225_v50 }
 0xa6d   : > { %2320 = vrot.lane.b32.xlu1 %v7343_v23, %s7014_s30 }
 0xa71   : > { %2318 = vrot.lane.b32.xlu1 %v7339_v19, %s7014_s30  ;;  %s8482_s30 = scalar_lea.vmem %s8422_s12, %s7165_s1 }
 0xa75   : > { %2463 = vrot.lane.b32.xlu1 %v7331_v7, %s7015_s0 }
 0xa79   : > { %2459 = vrot.lane.b32.xlu1 %v7331_v7, %s7016_s5 }
 0xa7d   : > { %2531 = vrot.lane.b32.xlu1 %v7339_v19, %s7015_s0 }
 0xa81   : > { %2529 = vrot.lane.b32.xlu1 %v7343_v23, %s7016_s5 }
 0xaac   : > { %v2233_v51 = vpop.xlane.xlu1 %2232 }
 0xaad   : > { %6892 = vrcp.f32 %v2233_v51 }
 0xab0   : > { %v2236_v52 = vpop.xlane.xlu0 %2235  ;;  %v2239_v55 = vpop.xlane.xlu1 %2238 }
 0xab1   : > { %6894 = vrcp.f32 %v2236_v52 }
 0xab2   : > { %6896 = vrcp.f32 %v2239_v55  ;;  %v7641_v55 = vld [vmem:[%s8481_s9] sm:$0xff] }
 0xab4   : > { %v2230_v54 = vpop.xlane.xlu0 %2229  ;;  %v2257_v60 = vpop.permute.xlu1 %2256 }
 0xab5   : > { %6898 = vrcp.f32 %v2230_v54 }
 0xab8   : > { %v2224_v56 = vpop.xlane.xlu0 %2223 }
 0xab9   : > { %6900 = vrcp.f32 %v2224_v56 }
 0xaba   : > { %v6893_v57 = vpop.eup %6892 }
 0xabb   : > { %v2247_v61 = vmul.f32 %v6893_v57, %v6881_v17  ;;  %v2394_v17 = vsel %vm1460_vm7, %v2383_v9, 0 }
 0xabc   : > { %v2259_v58 = vpop.permute.xlu0 %2258 }
 0xabd   : > { %v2268_v53 = vsel %vm1460_vm7, %v2259_v58, 0  ;;  %6632 = vmatprep.subr.msk.bf16.mxu0 %vm1460_vm7, %v2259_v58  ;;  %v6941_v58 = vld [vmem:[%s8481_s9 + $0x10] sm:$0xff] }
 0xabe   : > { %v6895_v59 = vpop.eup %6894  ;;  %6533 = vmatpush3.bf16.msra.mxu0 %v2268_v53 }
 0xabf   : > { %6534 = vmatprep.subr.bf16.mxu0 %v2257_v60  ;;  %v2249_v62 = vmul.f32 %v6895_v59, %v6885_v30  ;;  %v6897_v63 = vpop.eup %6896 }
 0xac0   : > { %v2251_v34 = vmul.f32 %v6897_v63, %v7584_v27  ;;  %v2466_v5 = vpop.permute.xlu0 %2465 }
 0xac1   : > { %v2254_v6 = vpack.c.bf16 %v2249_v62, %v2247_v61  ;;  %v2477_v4 = vsel %vm1251_vm5, %v2466_v5, 0  ;;  %v7651_v62 = vld [vmem:[%s8481_s9 + $0x8] sm:$0xff] }
 0xac2   : > { %6535 = vmatpush3.bf16.msra.mxu0 %v2257_v60  ;;  %v6899_v25 = vpop.eup %6898  ;;  %v2255_v26 = vpack.c.bf16 %v2251_v34, %v2251_v34 }
 0xac3   : > { %6544 = vmatprep.mubr.msk.bf16.mxu1 %vm1378_vm6, %v2254_v6  ;;  %6548 = vmatprep.subr.bf16.mxu0 %v7005_v15  ;;  %v2245_v24 = vmul.f32 %v6899_v25, %v7587_v35 }
 0xac4   : > { %v2534_v21 = vpop.permute.xlu0 %2533 }
 0xac5   : > { %v2253_v16 = vpack.c.bf16 %v2245_v24, %v2245_v24  ;;  %v2545_v50 = vsel %vm1251_vm5, %v2534_v21, 0 }
 0xac6   : > { %v6901_v2 = vpop.eup %6900 }
 0xac7   : > { %v2241_v38 = vmul.f32 %v6901_v2, %v7593_v40 }
 0xac8   : > { %v2462_v30 = vpop.permute.xlu0 %2461 }
 0xacc   : > { %v2528_v34 = vpop.permute.xlu0 %2527 }
 0xae5   : > { %v2227_v20 = vpop.xlane.xlu1 %2226 }
 0xae6   : > { %6902 = vrcp.f32 %v2227_v20 }
 0xae9   : > { %v2321_v0 = vpop.permute.xlu1 %2320 }
 0xaea   : > { %v2330_v1 = vsel %vm1460_vm7, %v2321_v0, 0  ;;  %6633 = vmatprep.subr.msk.bf16.mxu1 %vm1460_vm7, %v2321_v0 }
 0xaeb   : > { %6541 = vmatpush3.bf16.msra.mxu1 %v2330_v1 }
 0xaed   : > { %v2319_v33 = vpop.permute.xlu1 %2318 }
 0xaee   : > { %6542 = vmatprep.subr.bf16.mxu1 %v2319_v33 }
 0xaef   : > { %6543 = vmatpush3.bf16.msra.mxu1 %v2319_v33 }
 0xaf0   : > { %6634 = vmatprep.subr.msk.bf16.mxu1 %vm1251_vm5, %v2466_v5  ;;  %v2028_v5 = vadd.f32 %v7540_v10, %v7559_v39  ;;  %v2039_v39 = vadd.f32 %v7552_v22, %v7565_v45  ;;  %v2047_v22 = vadd.f32 %v7557_v31, %v7569_v49 }
 0xaf1   : > { %v2464_v3 = vpop.permute.xlu1 %2463 }
 0xaf2   : > { %6545 = vmatmul.mubr.msk.bf16.vlgmr.msra.gmra.mxu1 %vm1378_vm6, %v2255_v26  ;;  %v2474_v27 = vsel %vm1251_vm5, %v2464_v3, 0 }
 0xaf3   : > { %v6903_v8 = vpop.eup %6902  ;;  %6563 = vmatpush3.bf16.xpose.msra.mxu1 %v2477_v4 }
 0xaf4   : > { %6635 = vmatprep.subr.msk.bf16.mxu1 %vm1251_vm5, %v2464_v3  ;;  %v2243_v28 = vmul.f32 %v6903_v8, %v6891_v48  ;;  %v2031_v3 = vadd.f32 %v7546_v14, %v7561_v41 }
 0xaf5   : > { %v2460_v12 = vpop.permute.xlu1 %2459 }
 0xaf6   : > { %6566 = vmatprep.mubr.msk.bf16.mxu1 %vm1251_vm5, %v2460_v12  ;;  %v2252_v13 = vpack.c.bf16 %v2243_v28, %v2241_v38  ;;  %v2036_v28 = vadd.f32 %v7548_v18, %v7563_v43 }
 0xaf8   : > { %6536 = vmatprep.mubr.msk.bf16.mxu0 %vm1378_vm6, %v2252_v13 }
 0xaf9   : > { %6537 = vmatmul.mubr.msk.bf16.vlgmr.msra.gmra.mxu0 %vm1378_vm6, %v2253_v16  ;;  %v2532_v52 = vpop.permute.xlu1 %2531 }
 0xafa   : > { %6549 = vmatpush3.bf16.msra.mxu0 %v2394_v17  ;;  %6550 = vmatprep.mubr.msk.bf16.mxu0 %vm7006_vm4, %v7005_v15  ;;  %v2542_v20 = vsel %vm1251_vm5, %v2532_v52, 0 }
 0xafb   : > { %6636 = vmatprep.subr.msk.bf16.mxu0 %vm1251_vm5, %v2534_v21  ;;  %6565 = vmatpush3.bf16.xpose.msra.mxu1 %v2474_v27 }
 0xafd   : > { %v2530_v33 = vpop.permute.xlu1 %2529 }
 0xb02   : > { %6567 = vmatmul.mubr.msk.bf16.vlgmr.msra.gmra.mxu1 %vm1251_vm5, %v2462_v30 }
 0xbb2   : > { %v6546_v32 = vpop.f32.mrf.mxu1 }
 0xbb4   : > { %v2366_v35 = vpop.f32.mrf.mxu1 }
 0xbb6   : > { %v6547_v36 = vpop.f32.mrf.mxu1 }
 0xbb8   : > { %v2369_v46 = vpop.f32.mrf.mxu1 }
 0xbb9   : > { %v6538_v37 = vpop.f32.mrf.mxu0  ;;  %v2382_v1 = vpack.c.bf16 %v6546_v32, %v2369_v46  ;;  %v2044_v32 = vadd.f32 %v7554_v29, %v7567_v47 }
 0xbba   : > { %v2381_v60 = vpack.c.bf16 %v2366_v35, %v6538_v37 }
 0xbbb   : > { %v2304_v40 = vpop.f32.mrf.mxu0 }
 0xbbd   : > { %v6539_v42 = vpop.f32.mrf.mxu0 }
 0xbbf   : > { %v2307_v44 = vpop.f32.mrf.mxu0 }
 0xbc0   : > { %v2380_v48 = vpack.c.bf16 %v2307_v44, %v2304_v40 }
 0xbc2   : > { %6551 = vmatmul.mubr.msk.bf16.vlgmr.msra.gmra.mxu0 %vm1251_vm5, %v2380_v48  ;;  %v6568_v51 = vpop.f32.mrf.mxu1 }
 0xbc3   : > { %6571 = vmatpush3.bf16.xpose.msra.mxu0 %v2545_v50  ;;  %6554 = vmatprep.mubr.msk.bf16.mxu0 %vm7006_vm4, %v7005_v15  ;;  %v2522_v53 = vadd.f32 %v6941_v58, %v6568_v51 }
 0xbc4   : > { %6637 = vmatprep.subr.msk.bf16.mxu0 %vm1251_vm5, %v2532_v52  ;;  %v2513_v54 = vpop.f32.mrf.mxu1 }
 0xbc5   : > { %v2514_v56 = vadd.f32 %v7641_v55, %v2513_v54  ;;  %v2601_v0 = vsel %vm1378_vm6, %v2522_v53, -inf }
 0xbc6   : > { %v6569_v57 = vpop.f32.mrf.mxu1 }
 0xbc7   : > { %v2595_v59 = vsel %vm1378_vm6, %v2514_v56, -inf }
 0xbc8   : > { %v2516_v61 = vpop.f32.mrf.mxu1  ;;  %2596 = vmax.xlane.f32.xlu0 %v2595_v59 }
 0xbc9   : > { %v2517_v6 = vadd.f32 %v7651_v62, %v2516_v61 }
 0xbca   : > { %6555 = vmatmul.mubr.msk.bf16.gmra.mxu0 %vm1251_vm5, %v2381_v60 }
 0xbcb   : > { %6573 = vmatpush3.bf16.xpose.msra.mxu0 %v2542_v20  ;;  %v2598_v63 = vsel %vm1378_vm6, %v2517_v6, -inf  ;;  %6558 = vmatprep.mubr.msk.bf16.mxu0 %vm7006_vm4, %v7005_v15 }
 0xbcc   : > { %2599 = vmax.xlane.f32.xlu1 %v2598_v63  ;;  %2602 = vmax.xlane.f32.xlu0 %v2601_v0 }
 0xbcd   : > { %6594 = vmatprep.subr.bf16.mxu0 %v7005_v15 }
 0xbd2   : > { %6559 = vmatmul.mubr.msk.bf16.gmra.mxu0 %vm1251_vm5, %v2382_v1 }
 0xbd3   : > { %6574 = vmatprep.mubr.msk.bf16.mxu0 %vm1251_vm5, %v2528_v34 }
 0xbda   : > { %6575 = vmatmul.mubr.msk.bf16.vlgmr.msra.gmra.mxu0 %vm1251_vm5, %v2530_v33 }
 0xbdb   : > { %6596 = vmatprep.mubr.msk.bf16.mxu0 %vm7006_vm4, %v7005_v15 }
 0xc51   : > { %v2597_v12 = vpop.xlane.xlu0 %2596 }
 0xc52   : > { %v2613_v14 = vsub.f32 %v2514_v56, %v2597_v12 }
 0xc54   : > { %v2619_v43 = vmul.f32 1.442695, %v2613_v14 }
 0xc55   : > { %v2600_v4 = vpop.xlane.xlu1 %2599  ;;  %v2603_v27 = vpop.xlane.xlu0 %2602 }
 0xc56   : > { %v2614_v9 = vsub.f32 %v2517_v6, %v2600_v4  ;;  %v2615_v35 = vsub.f32 %v2522_v53, %v2603_v27 }
 0xc58   : > { %v2621_v17 = vmul.f32 1.442695, %v2614_v9  ;;  %v2623_v40 = vmul.f32 1.442695, %v2615_v35 }
 0xc5a   : > { %6904 = vpow2.f32 %v2621_v17 }
 0xc5b   : > { %6906 = vpow2.f32 %v2619_v43 }
 0xc5c   : > { %6908 = vpow2.f32 %v2623_v40 }
 0xc67   : > { %v6905_v51 = vpop.eup %6904 }
 0xc68   : > { %v2634_v56 = vsel %vm1378_vm6, %v6905_v51, 0.0 }
 0xc82   : > { %v2430_v25 = vpop.f32.mrf.mxu0 }
 0xc83   : > { %v7668_v26 = vadd.f32 %v2430_v25, %v2028_v5 }
 0xc84   : > { %v6552_v2 = vpop.f32.mrf.mxu0 }
 0xc86   : > { %v2433_v8 = vpop.f32.mrf.mxu0 }
 0xc87   : > { %v7672_v24 = vadd.f32 %v2433_v8, %v2031_v3 }
 0xc88   : > { %v6553_v38 = vpop.f32.mrf.mxu0 }
 0xc8a   : > { %v2438_v13 = vpop.f32.mrf.mxu0 }
 0xc8b   : > { %v7676_v16 = vadd.f32 %v2438_v13, %v2036_v28 }
 0xc8c   : > { %v6556_v10 = vpop.f32.mrf.mxu0 }
 0xc8e   : > { %v2441_v21 = vpop.f32.mrf.mxu0 }
 0xc8f   : > { %v7680_v41 = vadd.f32 %v2441_v21, %v2039_v39 }
 0xc90   : > { %v6557_v30 = vpop.f32.mrf.mxu0 }
 0xc92   : > { %v2446_v18 = vpop.f32.mrf.mxu0 }
 0xc93   : > { %v7684_v36 = vadd.f32 %v2446_v18, %v2044_v32 }
 0xc94   : > { %v6560_v37 = vpop.f32.mrf.mxu0 }
 0xc96   : > { %v2449_v45 = vpop.f32.mrf.mxu0 }
 0xc97   : > { %v7688_v42 = vadd.f32 %v2449_v45, %v2047_v22 }
 0xc98   : > { %v6561_v44 = vpop.f32.mrf.mxu0 }
 0xc9a   : > { %v6576_v46 = vpop.f32.mrf.mxu0 }
 0xc9b   : > { %v2590_v48 = vadd.f32 %v6941_v58, %v6576_v46  ;;  %v6907_v58 = vpop.eup %6906 }
 0xc9c   : > { %v2581_v29 = vpop.f32.mrf.mxu0  ;;  %v6909_v53 = vpop.eup %6908 }
 0xc9d   : > { %v2582_v47 = vadd.f32 %v7641_v55, %v2581_v29  ;;  %v2610_v50 = vsel %vm1378_vm6, %v2590_v48, -inf  ;;  %v2631_v55 = vsel %vm1378_vm6, %v6907_v58, 0.0  ;;  %v2637_v59 = vsel %vm1378_vm6, %v6909_v53, 0.0  ;;  %v2792_v29 = vld [vmem:[%s7188_s22 + $0xc] sm:$0xf]  ;;  %s8505_s22 = sld [smem:[#allocation29_spill]] (!%p6024_p6) }
 0xc9e   : > { %2611 = vmax.xlane.f32.xlu1 %v2610_v50  ;;  %v6577_v52 = vpop.f32.mrf.mxu0 }
 0xc9f   : > { %v2604_v54 = vsel %vm1378_vm6, %v2582_v47, -inf }
 0xca0   : > { %v2584_v31 = vpop.f32.mrf.mxu0  ;;  %2605 = vmax.xlane.f32.xlu0 %v2604_v54 }
 0xca1   : > { %v2585_v49 = vadd.f32 %v7651_v62, %v2584_v31 }
 0xca2   : > { %2635 = vadd.xlane.f32.xlu1 %v2634_v56 }
 0xca3   : > { %v2607_v57 = vsel %vm1378_vm6, %v2585_v49, -inf }
 0xca4   : > { %2608 = vmax.xlane.f32.xlu0 %v2607_v57 }
 0xca8   : > { %2632 = vadd.xlane.f32.xlu0 %v2631_v55 }
 0xcac   : > { %2638 = vadd.xlane.f32.xlu0 %v2637_v59 }
 0xd27   : > { %v2612_v60 = vpop.xlane.xlu1 %2611 }
 0xd28   : > { %v2618_v61 = vsub.f32 %v2590_v48, %v2612_v60 }
 0xd29   : > { %v2606_v6 = vpop.xlane.xlu0 %2605 }
 0xd2a   : > { %v2629_v20 = vmul.f32 1.442695, %v2618_v61  ;;  %v2616_v63 = vsub.f32 %v2582_v47, %v2606_v6  ;;  %v2803_v47 = vsel %vm1460_vm7, %v2792_v29, 0  ;;  %v5836_v61 = vld [vmem:[%s8482_s30] ss:$0 sm:$0xff] }
 0xd2b   : > { %v2636_v1 = vpop.xlane.xlu1 %2635  ;;  %6595 = vmatpush3.bf16.msra.mxu0 %v2803_v47 }
 0xd2c   : > { %6910 = vpow2.f32 %v2629_v20  ;;  %v2625_v62 = vmul.f32 1.442695, %v2616_v63  ;;  %v6943_v20 = vld [vmem:[#allocation2] sm:$0xff] }
 0xd2d   : > { %v2609_v0 = vpop.xlane.xlu0 %2608 }
 0xd2e   : > { %6912 = vpow2.f32 %v2625_v62  ;;  %v2617_v34 = vsub.f32 %v2585_v49, %v2609_v0 }
 0xd2f   : > { %6914 = vrcp.f32 %v2636_v1 }
 0xd30   : > { %v2627_v33 = vmul.f32 1.442695, %v2617_v34  ;;  %v6944_v34 = vld [vmem:[#allocation2 + $0x8] sm:$0xff] }
 0xd31   : > { %v2633_v5 = vpop.xlane.xlu0 %2632 }
 0xd32   : > { %6916 = vpow2.f32 %v2627_v33 }
 0xd33   : > { %6918 = vrcp.f32 %v2633_v5 }
 0xd35   : > { %v2639_v39 = vpop.xlane.xlu0 %2638 }
 0xd36   : > { %6920 = vrcp.f32 %v2639_v39 }
 0xd39   : > { %v6911_v25 = vpop.eup %6910 }
 0xd3a   : > { %v2646_v2 = vsel %vm1378_vm6, %v6911_v25, 0.0 }
 0xd3b   : > { %v6913_v3 = vpop.eup %6912  ;;  %2647 = vadd.xlane.f32.xlu1 %v2646_v2 }
 0xd3c   : > { %v6915_v4 = vpop.eup %6914  ;;  %v2640_v8 = vsel %vm1378_vm6, %v6913_v3, 0.0 }
 0xd3d   : > { %v2652_v13 = vmul.f32 %v6915_v4, %v6905_v51  ;;  %v6945_v4 = vld [vmem:[#allocation2 + $0x10] sm:$0xff] }
 0xd3f   : > { %v6917_v38 = vpop.eup %6916  ;;  %2641 = vadd.xlane.f32.xlu1 %v2640_v8 }
 0xd40   : > { %v6919_v28 = vpop.eup %6918  ;;  %v2643_v9 = vsel %vm1378_vm6, %v6917_v38, 0.0 }
 0xd41   : > { %2644 = vadd.xlane.f32.xlu0 %v2643_v9  ;;  %v2650_v12 = vmul.f32 %v6919_v28, %v6907_v58 }
 0xd43   : > { %v2661_v10 = vpack.c.bf16 %v2652_v13, %v2650_v12  ;;  %v6921_v30 = vpop.eup %6920  ;;  %v6946_v13 = vld [vmem:[#allocation2 + $0x18] sm:$0xff] }
 0xd45   : > { %6582 = vmatprep.mubr.msk.bf16.mxu1 %vm1378_vm6, %v2661_v10 }
 0xd50   : > { %2665 = vrot.lane.b32.xlu1 %v7331_v7, %s7017_s6  ;;  %v2654_v7 = vmul.f32 %v6921_v30, %v6909_v53 }
 0xd54   : > { %2729 = vrot.lane.b32.xlu1 %v7343_v23, %s7017_s6  ;;  %v2662_v23 = vpack.c.bf16 %v2654_v7, %v2654_v7 }
 0xd57   : > { %2667 = vrot.lane.b32.xlu0 %v7336_v11, %s7017_s6 }
 0xd58   : > { %2727 = vrot.lane.b32.xlu1 %v7339_v19, %s7017_s6 }
 0xdc4   : > { %v2648_v17 = vpop.xlane.xlu1 %2647 }
 0xdc5   : > { %6922 = vrcp.f32 %v2648_v17 }
 0xdc8   : > { %v2642_v21 = vpop.xlane.xlu1 %2641 }
 0xdc9   : > { %6924 = vrcp.f32 %v2642_v21 }
 0xdca   : > { %v2645_v14 = vpop.xlane.xlu0 %2644 }
 0xdcb   : > { %6926 = vrcp.f32 %v2645_v14 }
 0xdcc   : > { %v2666_v27 = vpop.permute.xlu1 %2665 }
 0xdce   : > { %v2668_v32 = vpop.permute.xlu0 %2667 }
 0xdcf   : > { %v2677_v18 = vsel %vm1460_vm7, %v2668_v32, 0  ;;  %6638 = vmatprep.subr.msk.bf16.mxu1 %vm1460_vm7, %v2668_v32 }
 0xdd0   : > { %6579 = vmatpush3.bf16.msra.mxu1 %v2677_v18  ;;  %v2730_v11 = vpop.permute.xlu1 %2729 }
 0xdd1   : > { %6580 = vmatprep.subr.bf16.mxu1 %v2666_v27  ;;  %v2739_v35 = vsel %vm1460_vm7, %v2730_v11, 0 }
 0xdd2   : > { %v6923_v19 = vpop.eup %6922 }
 0xdd3   : > { %v2660_v44 = vmul.f32 %v6923_v19, %v6911_v25  ;;  %v6948_v19 = vld [vmem:[#allocation2 + $0x28] sm:$0xff] }
 0xdd4   : > { %6581 = vmatpush3.bf16.msra.mxu1 %v2666_v27  ;;  %v2728_v22 = vpop.permute.xlu1 %2727  ;;  %v6947_v27 = vld [vmem:[#allocation2 + $0x20] sm:$0xff] }
 0xdd5   : > { %6639 = vmatprep.subr.msk.bf16.mxu1 %vm1460_vm7, %v2730_v11  ;;  %v2664_v48 = vpack.c.bf16 %v2660_v44, %v2660_v44 }
 0xdd6   : > { %v6925_v43 = vpop.eup %6924 }
 0xdd7   : > { %6583 = vmatmul.mubr.msk.bf16.vlgmr.msra.gmra.mxu1 %vm1378_vm6, %v2662_v23  ;;  %v2656_v45 = vmul.f32 %v6925_v43, %v6913_v3 }
 0xdd8   : > { %v6927_v37 = vpop.eup %6926  ;;  %6587 = vmatpush3.bf16.msra.mxu1 %v2739_v35 }
 0xdd9   : > { %6588 = vmatprep.subr.bf16.mxu1 %v2728_v22  ;;  %v2658_v40 = vmul.f32 %v6927_v37, %v6917_v38 }
 0xddb   : > { %v2663_v46 = vpack.c.bf16 %v2658_v40, %v2656_v45 }
 0xddc   : > { %6589 = vmatpush3.bf16.msra.mxu1 %v2728_v22 }
 0xddd   : > { %6590 = vmatprep.mubr.msk.bf16.mxu1 %vm1378_vm6, %v2663_v46 }
 0xddf   : > { %6591 = vmatmul.mubr.msk.bf16.vlgmr.msra.gmra.mxu1 %vm1378_vm6, %v2664_v48 }
 0xe97   : > { %v6584_v50 = vpop.f32.mrf.mxu1 }
 0xe99   : > { %v2713_v51 = vpop.f32.mrf.mxu1 }
 0xe9b   : > { %v6585_v52 = vpop.f32.mrf.mxu1 }
 0xe9d   : > { %v2716_v54 = vpop.f32.mrf.mxu1 }
 0xe9e   : > { %v2789_v31 = vpack.c.bf16 %v2716_v54, %v2713_v51 }
 0xe9f   : > { %v6592_v49 = vpop.f32.mrf.mxu1 }
 0xea0   : > { %6597 = vmatmul.mubr.msk.bf16.vlgmr.msra.gmra.mxu0 %vm1251_vm5, %v2789_v31 }
 0xea1   : > { %v2775_v56 = vpop.f32.mrf.mxu1  ;;  %6600 = vmatprep.mubr.msk.bf16.mxu0 %vm7006_vm4, %v7005_v15 }
 0xea2   : > { %v2790_v58 = vpack.c.bf16 %v2775_v56, %v6584_v50 }
 0xea3   : > { %v6593_v57 = vpop.f32.mrf.mxu1 }
 0xea5   : > { %v2778_v55 = vpop.f32.mrf.mxu1 }
 0xea6   : > { %v2791_v53 = vpack.c.bf16 %v6592_v49, %v2778_v55 }
 0xea8   : > { %6601 = vmatmul.mubr.msk.bf16.gmra.mxu0 %vm1251_vm5, %v2790_v58 }
 0xea9   : > { %6604 = vmatprep.mubr.msk.bf16.mxu0 %vm7006_vm4, %v7005_v15 }
 0xeb0   : > { %6605 = vmatmul.mubr.msk.bf16.gmra.mxu0 %vm1251_vm5, %v2791_v53 }
 0xf60   : > { %v2839_v59 = vpop.f32.mrf.mxu0 }
 0xf61   : > { %v2862_v60 = vadd.f32 %v2839_v59, %v7668_v26 }
 0xf62   : > { %v6598_v6 = vpop.f32.mrf.mxu0 }
 0xf63   : > { %v2868_v63 = vadd.f32 %v6943_v20, %v2862_v60 }
 0xf64   : > { %v2842_v62 = vpop.f32.mrf.mxu0 }
 0xf65   : > { %v7728_v0 = vadd.f32 %v5836_v61, %v2868_v63  ;;  %v2863_v15 = vadd.f32 %v2842_v62, %v7672_v24 }
 0xf66   : > { %v6599_v1 = vpop.f32.mrf.mxu0 }
 0xf67   : > { %8483 = vst [vmem:[#allocation9_spill] sm:$0xff] %v7728_v0  ;;  %v2869_v33 = vadd.f32 %v6944_v34, %v2863_v15  ;;  %v2889_v5 = vsel %vm1042_vm3, %v7728_v0, 0.0  ;;  %v2999_v34 = vld [vmem:[%s7206_s19 + $0x88] sm:$0xff] }
 0xf68   : > { %2890 = vadd.xlane.f32.xlu0 %v2889_v5  ;;  %v2847_v26 = vpop.f32.mrf.mxu0  ;;  %v2998_v5 = vld [vmem:[%s7206_s19 + $0x80] sm:$0xff] }
 0xf69   : > { %v7733_v25 = vadd.f32 %v5836_v61, %v2869_v33  ;;  %v2864_v2 = vadd.f32 %v2847_v26, %v7676_v16  ;;  %v3001_v33 = vld [vmem:[%s7206_s19 + $0xc8] sm:$0xff] }
 0xf6a   : > { %v6602_v3 = vpop.f32.mrf.mxu0  ;;  %v5846_v26 = vcombine.high %v2999_v34, %v3001_v33 }
 0xf6b   : > { %8484 = vst [vmem:[#allocation10_spill] sm:$0xff] %v7733_v25  ;;  %v2870_v8 = vadd.f32 %v6945_v4, %v2864_v2  ;;  %v2892_v38 = vsel %vm1042_vm3, %v7733_v25, 0.0  ;;  %v3000_v2 = vld [vmem:[%s7206_s19 + $0xc0] sm:$0xff]  ;;  %v5845_v3 = vcombine.low %v2999_v34, %v3001_v33 }
 0xf6c   : > { %2893 = vadd.xlane.f32.xlu1 %v2892_v38  ;;  %v2850_v24 = vpop.f32.mrf.mxu0  ;;  %v5843_v4 = vcombine.low %v2998_v5, %v3000_v2  ;;  %3148 = vmatprep.subr.bf16.mxu0 %v5846_v26  ;;  %v2994_v38 = vld [vmem:[%s7206_s19] sm:$0xff]  ;;  %v3301_v26 = vld [vmem:[%s7206_s19 + $0x50] sm:$0xff] }
 0xf6d   : > { %v7738_v28 = vadd.f32 %v5836_v61, %v2870_v8  ;;  %v2865_v9 = vadd.f32 %v2850_v24, %v7680_v41  ;;  %v5844_v8 = vcombine.high %v2998_v5, %v3000_v2  ;;  %3149 = vmatpush1.bf16.msra.mxu0 %v5845_v3  ;;  %v2996_v24 = vld [vmem:[%s7206_s19 + $0x40] sm:$0xff]  ;;  %v3300_v2 = vld [vmem:[%s7206_s19 + $0x18] sm:$0xff] }
 0xf6e   : > { %v6603_v12 = vpop.f32.mrf.mxu0  ;;  %v3302_v3 = vld [vmem:[%s7206_s19 + $0x58] sm:$0xff] }
 0xf6f   : > { %8485 = vst [vmem:[#allocation11_spill] sm:$0xff] %v7738_v28  ;;  %v2871_v10 = vadd.f32 %v6946_v13, %v2865_v9  ;;  %v2895_v39 = vsel %vm1042_vm3, %v7738_v28, 0.0  ;;  %3085 = vmatprep.subr.bf16.mxu1 %v5844_v8  ;;  %v2995_v9 = vld [vmem:[%s7206_s19 + $0x8] sm:$0xff]  ;;  %v5840_v12 = vcombine.high %v2994_v38, %v2996_v24 }
 0xf70   : > { %2896 = vadd.xlane.f32.xlu0 %v2895_v39  ;;  %v2855_v16 = vpop.f32.mrf.mxu0  ;;  %3086 = vmatpush1.bf16.msra.mxu1 %v5843_v4  ;;  %v2997_v13 = vld [vmem:[%s7206_s19 + $0x48] sm:$0xff] }
 0xf71   : > { %v7743_v17 = vadd.f32 %v5836_v61, %v2871_v10  ;;  %v2866_v21 = vadd.f32 %v2855_v16, %v7684_v36  ;;  %v5839_v10 = vcombine.low %v2994_v38, %v2996_v24  ;;  %v5841_v39 = vcombine.low %v2995_v9, %v2997_v13  ;;  %3087 = vmatprep.subr.bf16.mxu1 %v5840_v12 }
 0xf72   : > { %v6606_v14 = vpop.f32.mrf.mxu0  ;;  %v5842_v16 = vcombine.high %v2995_v9, %v2997_v13  ;;  %v5856_v38 = vcombine.high %v3300_v2, %v3302_v3  ;;  %v5855_v13 = vcombine.low %v3300_v2, %v3302_v3 }
 0xf73   : > { %8486 = vst [vmem:[#allocation12_spill] sm:$0xff] %v7743_v17  ;;  %v2872_v30 = vadd.f32 %v6947_v27, %v2866_v21  ;;  %v2898_v32 = vsel %vm1042_vm3, %v7743_v17, 0.0  ;;  %v8440_v21 = vmov 0   ;;  %v3303_v14 = vld [vmem:[%s7206_s19 + $0x90] sm:$0xff] }
 0xf74   : > { %2899 = vadd.xlane.f32.xlu0 %v2898_v32  ;;  %v2858_v41 = vpop.f32.mrf.mxu0  ;;  %3150 = vmatprep.subr.bf16.mxu0 %v5842_v16  ;;  %v3305_v27 = vld [vmem:[%s7206_s19 + $0xd0] sm:$0xff] }
 0xf75   : > { %v7748_v18 = vadd.f32 %v5836_v61, %v2872_v30  ;;  %v2867_v7 = vadd.f32 %v2858_v41, %v7688_v42  ;;  %3088 = vmatpush1.bf16.msra.mxu1 %v5839_v10  ;;  %3151 = vmatpush1.bf16.msra.mxu0 %v5841_v39  ;;  %v3304_v30 = vld [vmem:[%s7206_s19 + $0x98] sm:$0xff]  ;;  %v5857_v32 = vcombine.low %v3303_v14, %v3305_v27 }
 0xf76   : > { %v6607_v11 = vpop.f32.mrf.mxu0  ;;  %3105 = vmatprep.mubr.bf16.mxu1 %v8440_v21  ;;  %3168 = vmatprep.mubr.bf16.mxu0 %v8440_v21  ;;  %v5858_v41 = vcombine.high %v3303_v14, %v3305_v27 }
 0xf77   : > { %8487 = vst [vmem:[#allocation13_spill] sm:$0xff] %v7748_v18  ;;  %v2873_v23 = vadd.f32 %v6948_v19, %v2867_v7  ;;  %v2901_v43 = vsel %vm1042_vm3, %v7748_v18, 0.0  ;;  %6688 = vset.pattern.permute.xlu0 %v8440_v21  ;;  %6689 = vset.pattern.permute.xlu1 %v8440_v21  ;;  %v3306_v7 = vld [vmem:[%s7206_s19 + $0xd8] sm:$0xff] }
 0xf78   : > { %2902 = vadd.xlane.f32.xlu0 %v2901_v43  ;;  %v5859_v11 = vcombine.low %v3304_v30, %v3306_v7  ;;  %v5860_v19 = vcombine.high %v3304_v30, %v3306_v7  ;;  %3381 = vmatprep.subr.bf16.mxu1 %v5858_v41 }
 0xf79   : > { %v7753_v36 = vadd.f32 %v5836_v61, %v2873_v23 }
 0xf7a   : > { %3444 = vmatprep.subr.bf16.mxu0 %v5860_v19  ;;  %v6693_v19 = vld [vmem:[%s7221_s25 + $0x1f8] sm:$0xff]  }
 0xf7b   : > { %8488 = vst [vmem:[#allocation14_spill] sm:$0xff] %v7753_v36  ;;  %v2904_v35 = vsel %vm1042_vm3, %v7753_v36, 0.0 }
 0xf7c   : > { %2905 = vadd.xlane.f32.xlu1 %v2904_v35 }
 0xff1   : > { %v2891_v37 = vpop.xlane.xlu0 %2890 }
 0xff2   : > { %v2907_v22 = vmul.f32 0.03125, %v2891_v37 }
 0xff4   : > { %v7758_v45 = vsub.f32 %v7728_v0, %v2907_v22  ;;  %v6736_v0 = vld [vmem:[%s7221_s25 + $0x60] sm:$0xff]  }
 0xff5   : > { %v2894_v40 = vpop.xlane.xlu1 %2893 }
 0xff6   : > { %v2908_v42 = vmul.f32 0.03125, %v2894_v40  ;;  %v2919_v44 = vmul.f32 %v7758_v45, %v7758_v45 }
 0xff8   : > { %v7763_v46 = vsub.f32 %v7733_v25, %v2908_v42  ;;  %v2925_v48 = vsel %vm1042_vm3, %v2919_v44, 0.0  ;;  %v6735_v25 = vld [vmem:[%s7221_s25 + $0xa8] sm:$0xff]  }
 0xff9   : > { %v2897_v29 = vpop.xlane.xlu0 %2896  ;;  %2926 = vadd.xlane.f32.xlu0 %v2925_v48 }
 0xffa   : > { %v2909_v47 = vmul.f32 0.03125, %v2897_v29  ;;  %v2920_v50 = vmul.f32 %v7763_v46, %v7763_v46 }
 0xffc   : > { %v7769_v51 = vsub.f32 %v7738_v28, %v2909_v47  ;;  %v2928_v52 = vsel %vm1042_vm3, %v2920_v50, 0.0 }
 0xffd   : > { %v2900_v54 = vpop.xlane.xlu0 %2899  ;;  %2929 = vadd.xlane.f32.xlu1 %v2928_v52 }
 0xffe   : > { %v2910_v31 = vmul.f32 0.03125, %v2900_v54  ;;  %v2921_v49 = vmul.f32 %v7769_v51, %v7769_v51 }
0x1000   : > { %v7775_v56 = vsub.f32 %v7743_v17, %v2910_v31  ;;  %v2931_v57 = vsel %vm1042_vm3, %v2921_v49, 0.0 }
0x1001   : > { %2932 = vadd.xlane.f32.xlu0 %v2931_v57  ;;  %v2903_v58 = vpop.xlane.xlu0 %2902 }
0x1002   : > { %v2911_v55 = vmul.f32 0.03125, %v2903_v58  ;;  %v2922_v53 = vmul.f32 %v7775_v56, %v7775_v56  ;;  %v5837_v58 = vld [vmem:[%s8489_s26] ss:$0 sm:$0xff] }
0x1004   : > { %v7781_v59 = vsub.f32 %v7748_v18, %v2911_v55  ;;  %v2934_v60 = vsel %vm1042_vm3, %v2922_v53, 0.0  ;;  %v6727_v18 = vld [vmem:[%s7221_s25 + $0xb8] sm:$0xff]  }
0x1005   : > { %2935 = vadd.xlane.f32.xlu1 %v2934_v60  ;;  %v2906_v61 = vpop.xlane.xlu1 %2905 }
0x1006   : > { %v2912_v6 = vmul.f32 0.03125, %v2906_v61  ;;  %v2923_v20 = vmul.f32 %v7781_v59, %v7781_v59 }
0x1008   : > { %v7787_v63 = vsub.f32 %v7753_v36, %v2912_v6  ;;  %v2937_v62 = vsel %vm1042_vm3, %v2923_v20, 0.0  ;;  %v6726_v36 = vld [vmem:[%s7221_s25 + $0x38] sm:$0xff]  }
0x1009   : > { %2938 = vadd.xlane.f32.xlu0 %v2937_v62 }
0x100a   : > { %v2924_v15 = vmul.f32 %v7787_v63, %v7787_v63 }
0x100c   : > { %v2940_v1 = vsel %vm1042_vm3, %v2924_v15, 0.0 }
0x100d   : > { %2941 = vadd.xlane.f32.xlu1 %v2940_v1  ;;  %v3299_v1 = vld [vmem:[%s7206_s19 + $0x10] sm:$0xff] }
0x100e   : > { %v5854_v8 = vcombine.high %v3299_v1, %v3301_v26  ;;  %v5853_v12 = vcombine.low %v3299_v1, %v3301_v26  ;;  %v6721_v1 = vld [vmem:[%s7221_s25 + $0x1c0] sm:$0xff]   ;;  %v6725_v26 = vld [vmem:[%s7221_s25 + $0xf8] sm:$0xff]  }
0x1082   : > { %v2927_v23 = vpop.xlane.xlu0 %2926 }
0x1083   : > { %v2943_v43 = vmul.f32 0.03125, %v2927_v23  ;;  %v6694_v23 = vld [vmem:[%s7221_s25 + $0x138] sm:$0xff]  }
0x1085   : > { %v2949_v35 = vadd.f32 1e-05, %v2943_v43  ;;  %v6695_v43 = vld [vmem:[%s7221_s25 + $0x1b8] sm:$0xff]  }
0x1086   : > { %v2930_v37 = vpop.xlane.xlu1 %2929 }
0x1087   : > { %6928 = vrsqrt.f32 %v2949_v35  ;;  %v2944_v22 = vmul.f32 0.03125, %v2930_v37  ;;  %v6696_v35 = vld [vmem:[%s7221_s25 + $0x170] sm:$0xff]  }
0x1088   : > { %v6697_v37 = vld [vmem:[%s7221_s25 + $0x1f0] sm:$0xff]  }
0x1089   : > { %v2950_v40 = vadd.f32 1e-05, %v2944_v22  ;;  %v6698_v22 = vld [vmem:[%s7221_s25 + $0x130] sm:$0xff]  }
0x108a   : > { %v2933_v42 = vpop.xlane.xlu0 %2932 }
0x108b   : > { %6930 = vrsqrt.f32 %v2950_v40  ;;  %v2945_v44 = vmul.f32 0.03125, %v2933_v42  ;;  %v6699_v40 = vld [vmem:[%s7221_s25 + $0x1b0] sm:$0xff]   ;;  %v6700_v42 = vld [vmem:[%s7221_s25 + $0x168] sm:$0xff]  }
0x108d   : > { %v2951_v48 = vadd.f32 1e-05, %v2945_v44  ;;  %v6701_v44 = vld [vmem:[%s7221_s25 + $0x1e8] sm:$0xff]  }
0x108e   : > { %v2936_v29 = vpop.xlane.xlu1 %2935 }
0x108f   : > { %6932 = vrsqrt.f32 %v2951_v48  ;;  %v2946_v47 = vmul.f32 0.03125, %v2936_v29  ;;  %v6702_v48 = vld [vmem:[%s7221_s25 + $0x128] sm:$0xff]  }
0x1090   : > { %v6703_v29 = vld [vmem:[%s7221_s25 + $0x1a8] sm:$0xff]  }
0x1091   : > { %v2952_v50 = vadd.f32 1e-05, %v2946_v47  ;;  %v6704_v47 = vld [vmem:[%s7221_s25 + $0x160] sm:$0xff]  }
0x1092   : > { %v2939_v52 = vpop.xlane.xlu0 %2938 }
0x1093   : > { %6934 = vrsqrt.f32 %v2952_v50  ;;  %v2947_v54 = vmul.f32 0.03125, %v2939_v52  ;;  %v6705_v50 = vld [vmem:[%s7221_s25 + $0x1e0] sm:$0xff]  }
0x1094   : > { %v6929_v31 = vpop.eup %6928  ;;  %v6706_v52 = vld [vmem:[%s7221_s25 + $0x120] sm:$0xff]  }
0x1095   : > { %v2961_v49 = vmul.f32 %v6929_v31, %v7758_v45  ;;  %v2953_v57 = vadd.f32 1e-05, %v2947_v54  ;;  %v5838_v45 = vld [vmem:[%s8490_s24] ss:$0 sm:$0xff]  ;;  %v6708_v31 = vld [vmem:[%s7221_s25 + $0x158] sm:$0xff]  }
0x1096   : > { %v2942_v55 = vpop.xlane.xlu1 %2941  ;;  %v6707_v54 = vld [vmem:[%s7221_s25 + $0x1a0] sm:$0xff]  }
0x1097   : > { %6936 = vrsqrt.f32 %v2953_v57  ;;  %v2948_v53 = vmul.f32 0.03125, %v2942_v55  ;;  %v2973_v61 = vmul.f32 %v5837_v58, %v2961_v49  ;;  %v6709_v49 = vld [vmem:[%s7221_s25 + $0x1d8] sm:$0xff]   ;;  %v6712_v55 = vld [vmem:[%s7221_s25 + $0x150] sm:$0xff]  }
0x1098   : > { %v6931_v60 = vpop.eup %6930  ;;  %v6710_v57 = vld [vmem:[%s7221_s25 + $0x118] sm:$0xff]  }
0x1099   : > { %v2962_v6 = vmul.f32 %v6931_v60, %v7763_v46  ;;  %v2954_v20 = vadd.f32 1e-05, %v2948_v53  ;;  %v2985_v34 = vadd.f32 %v5838_v45, %v2973_v61  ;;  %v6713_v53 = vld [vmem:[%s7221_s25 + $0x1d0] sm:$0xff]  }
0x109a   : > { %v6714_v60 = vld [vmem:[%s7221_s25 + $0x110] sm:$0xff]  }
0x109b   : > { %v2974_v62 = vmul.f32 %v5837_v58, %v2962_v6  ;;  %6938 = vrsqrt.f32 %v2954_v20  ;;  %v6715_v61 = vld [vmem:[%s7221_s25 + $0x190] sm:$0xff]   ;;  %v6716_v6 = vld [vmem:[%s7221_s25 + $0x148] sm:$0xff]  }
0x109c   : > { %v6933_v15 = vpop.eup %6932  ;;  %v6717_v20 = vld [vmem:[%s7221_s25 + $0x1c8] sm:$0xff]  }
0x109d   : > { %v2986_v33 = vadd.f32 %v5838_v45, %v2974_v62  ;;  %v2963_v5 = vmul.f32 %v6933_v15, %v7769_v51  ;;  %v6719_v62 = vld [vmem:[%s7221_s25 + $0x188] sm:$0xff]   ;;  %v6720_v15 = vld [vmem:[%s7221_s25 + $0x140] sm:$0xff]  }
0x109f   : > { %v7826_v4 = vpack.c.bf16 %v2986_v33, %v2985_v34  ;;  %v2975_v24 = vmul.f32 %v5837_v58, %v2963_v5  ;;  %v6722_v34 = vld [vmem:[%s7221_s25 + $0x100] sm:$0xff]   ;;  %v6724_v5 = vld [vmem:[%s7221_s25 + $0x78] sm:$0xff]  }
0x10a0   : > { %v6935_v46 = vpop.eup %6934  ;;  %v6723_v33 = vld [vmem:[%s7221_s25 + $0x180] sm:$0xff]  }
0x10a1   : > { %v2964_v9 = vmul.f32 %v6935_v46, %v7775_v56  ;;  %5847 = vmatmul.mubr.msk.bf16.vlgmr.msra.gmra.mxu1 %vm1042_vm3, %v7826_v4  ;;  %5850 = vmatmul.mubr.msk.bf16.vlgmr.msra.gmra.mxu0 %vm1042_vm3, %v7826_v4  ;;  %v2987_v39 = vadd.f32 %v5838_v45, %v2975_v24 }
0x10a2   : > { %3115 = vmatprep.mubr.bf16.mxu1 %v8440_v21  ;;  %3178 = vmatprep.mubr.bf16.mxu0 %v8440_v21 }
0x10a3   : > { %v2976_v51 = vmul.f32 %v5837_v58, %v2964_v9  ;;  %3382 = vmatpush1.bf16.msra.mxu1 %v5857_v32  ;;  %3445 = vmatpush1.bf16.msra.mxu0 %v5859_v11 }
0x10a4   : > { %v6937_v10 = vpop.eup %6936  ;;  %3383 = vmatprep.subr.bf16.mxu1 %v5854_v8  ;;  %3446 = vmatprep.subr.bf16.mxu0 %v5856_v38 }
0x10a5   : > { %v2988_v56 = vadd.f32 %v5838_v45, %v2976_v51  ;;  %v2965_v16 = vmul.f32 %v6937_v10, %v7781_v59 }
0x10a7   : > { %v7836_v14 = vpack.c.bf16 %v2988_v56, %v2987_v39  ;;  %3384 = vmatpush1.bf16.msra.mxu1 %v5853_v12  ;;  %3447 = vmatpush1.bf16.msra.mxu0 %v5855_v13  ;;  %v2977_v30 = vmul.f32 %v5837_v58, %v2965_v16 }
0x10a8   : > { %v6939_v27 = vpop.eup %6938  ;;  %6161 = vmatprep.subr.bf16.mxu0 %v6693_v19 }
0x10a9   : > { %v2966_v41 = vmul.f32 %v6939_v27, %v7787_v63  ;;  %5848 = vmatmul.mubr.msk.bf16.gmra.mxu1 %vm1042_vm3, %v7836_v14  ;;  %5851 = vmatmul.mubr.msk.bf16.gmra.mxu0 %vm1042_vm3, %v7836_v14  ;;  %v2989_v59 = vadd.f32 %v5838_v45, %v2977_v30  ;;  %v6692_v63 = vld [vmem:[%s7221_s25 + $0x178] sm:$0xff]  }
0x10aa   : > { %3125 = vmatprep.mubr.bf16.mxu1 %v8440_v21  ;;  %3188 = vmatprep.mubr.bf16.mxu0 %v8440_v21 }
0x10ab   : > { %v2978_v32 = vmul.f32 %v5837_v58, %v2966_v41  ;;  %6127 = vmatprep.subr.bf16.mxu1 %v6692_v63  ;;  %v6711_v58 = vld [vmem:[%s7221_s25 + $0x198] sm:$0xff]   ;;  %v3004_v41 = vlaneseq }
0x10ad   : > { %v2990_v7 = vadd.f32 %v5838_v45, %v2978_v32  ;;  %v6718_v45 = vld [vmem:[%s7221_s25 + $0x108] sm:$0xff]   ;;  %v3005_v19 = vshrl.u32 %v3004_v41, 7 }
0x10af   : > { %v7845_v11 = vpack.c.bf16 %v2990_v7, %v2989_v59 }
0x10b1   : > { %5849 = vmatmul.mubr.msk.bf16.gmra.mxu1 %vm1042_vm3, %v7845_v11  ;;  %5852 = vmatmul.mubr.msk.bf16.gmra.mxu0 %vm1042_vm3, %v7845_v11 }
0x10b2   : > { %3401 = vmatprep.mubr.bf16.mxu1 %v8440_v21  ;;  %3464 = vmatprep.mubr.bf16.mxu0 %v8440_v21 }
0x10b9   : > { %5861 = vmatmul.mubr.msk.bf16.vlgmr.msra.gmra.mxu1 %vm1042_vm3, %v7826_v4  ;;  %5864 = vmatmul.mubr.msk.bf16.vlgmr.msra.gmra.mxu0 %vm1042_vm3, %v7826_v4 }
0x10ba   : > { %3411 = vmatprep.mubr.bf16.mxu1 %v8440_v21  ;;  %3474 = vmatprep.mubr.bf16.mxu0 %v8440_v21 }
0x10bb   : > { %6128 = vmatpush3.bf16.msra.mxu1 %v6694_v23  ;;  %6162 = vmatpush3.bf16.msra.mxu0 %v6695_v43 }
0x10bc   : > { %6129 = vmatprep.subr.bf16.mxu1 %v6696_v35  ;;  %6163 = vmatprep.subr.bf16.mxu0 %v6697_v37 }
0x10bf   : > { %6130 = vmatpush3.bf16.msra.mxu1 %v6698_v22  ;;  %6164 = vmatpush3.bf16.msra.mxu0 %v6699_v40  ;;  %v7951_v22 = vsub.s32 1, %v3005_v19  ;;  %v7953_v40 = vsub.s32 3, %v3005_v19 }
0x10c0   : > { %6131 = vmatprep.subr.bf16.mxu1 %v6700_v42  ;;  %6165 = vmatprep.subr.bf16.mxu0 %v6701_v44  ;;  %v3307_v42 = vld [vmem:[%s7211_s11 + $0x4] sm:$0xf]  ;;  %v7956_v44 = vsub.s32 0, %v3005_v19 }
0x10c1   : > { %5862 = vmatmul.mubr.msk.bf16.gmra.mxu1 %vm1042_vm3, %v7836_v14  ;;  %5865 = vmatmul.mubr.msk.bf16.gmra.mxu0 %vm1042_vm3, %v7836_v14  ;;  %8491 = vst [vmem:[#allocation15_spill] sm:$0xff] %v7951_v22  ;;  %8492 = vst [vmem:[#allocation16_spill] sm:$0xff] %v7953_v40 }
0x10c2   : > { %3421 = vmatprep.mubr.bf16.mxu1 %v8440_v21  ;;  %3484 = vmatprep.mubr.bf16.mxu0 %v8440_v21 }
0x10c3   : > { %6132 = vmatpush3.bf16.msra.mxu1 %v6702_v48  ;;  %6166 = vmatpush3.bf16.msra.mxu0 %v6703_v29  ;;  %v7958_v48 = vsub.s32 2, %v3005_v19 }
0x10c4   : > { %6133 = vmatprep.subr.bf16.mxu1 %v6704_v47  ;;  %6167 = vmatprep.subr.bf16.mxu0 %v6705_v50  ;;  %v7961_v50 = vrot.slane %v3307_v42, %v7951_v22 }
0x10c7   : > { %6134 = vmatpush3.bf16.msra.mxu1 %v6706_v52  ;;  %6168 = vmatpush3.bf16.msra.mxu0 %v6707_v54  ;;  %v7964_v52 = vrot.slane %v3307_v42, %v7953_v40  ;;  %v7967_v54 = vrot.slane %v3307_v42, %v7956_v44 }
0x10c8   : > { %6135 = vmatprep.subr.bf16.mxu1 %v6708_v31  ;;  %6169 = vmatprep.subr.bf16.mxu0 %v6709_v49  ;;  %v7970_v31 = vrot.slane %v3307_v42, %v7958_v48 }
0x10c9   : > { %5863 = vmatmul.mubr.msk.bf16.gmra.mxu1 %vm1042_vm3, %v7845_v11  ;;  %5866 = vmatmul.mubr.msk.bf16.gmra.mxu0 %vm1042_vm3, %v7845_v11 }
0x10cb   : > { %6136 = vmatpush3.bf16.msra.mxu1 %v6710_v57  ;;  %6170 = vmatpush3.bf16.msra.mxu0 %v6711_v58 }
0x10cc   : > { %6137 = vmatprep.subr.bf16.mxu1 %v6712_v55  ;;  %6171 = vmatprep.subr.bf16.mxu0 %v6713_v53 }
0x10cf   : > { %6138 = vmatpush3.bf16.msra.mxu1 %v6714_v60  ;;  %6172 = vmatpush3.bf16.msra.mxu0 %v6715_v61 }
0x10d0   : > { %6139 = vmatprep.subr.bf16.mxu1 %v6716_v6  ;;  %6173 = vmatprep.subr.bf16.mxu0 %v6717_v20 }
0x10d3   : > { %6140 = vmatpush3.bf16.msra.mxu1 %v6718_v45  ;;  %6174 = vmatpush3.bf16.msra.mxu0 %v6719_v62 }
0x10d4   : > { %6141 = vmatprep.subr.bf16.mxu1 %v6720_v15  ;;  %6175 = vmatprep.subr.bf16.mxu0 %v6721_v1 }
0x10d7   : > { %6142 = vmatpush3.bf16.msra.mxu1 %v6722_v34  ;;  %6176 = vmatpush3.bf16.msra.mxu0 %v6723_v33 }
0x10d8   : > { %6195 = vmatprep.subr.bf16.mxu1 %v6724_v5  ;;  %6229 = vmatprep.subr.bf16.mxu0 %v6725_v26 }
0x1161   : > { %v7903_v2 = vpop.f32.mrf.mxu1  ;;  %v7905_v3 = vpop.f32.mrf.mxu0 }
0x1163   : > { %v7907_v46 = vpop.f32.mrf.mxu1  ;;  %v7909_v8 = vpop.f32.mrf.mxu0 }
0x1165   : > { %v7911_v38 = vpop.f32.mrf.mxu1  ;;  %v7913_v24 = vpop.f32.mrf.mxu0 }
0x1167   : > { %v7915_v9 = vpop.f32.mrf.mxu1  ;;  %v7917_v51 = vpop.f32.mrf.mxu0 }
0x1169   : > { %v7919_v12 = vpop.f32.mrf.mxu1  ;;  %v7921_v13 = vpop.f32.mrf.mxu0 }
0x116b   : > { %v7923_v10 = vpop.f32.mrf.mxu1  ;;  %v7925_v39 = vpop.f32.mrf.mxu0 }
0x116d   : > { %v7927_v56 = vpop.f32.mrf.mxu1  ;;  %v7929_v16 = vpop.f32.mrf.mxu0 }
0x116f   : > { %v7931_v27 = vpop.f32.mrf.mxu1  ;;  %v7933_v30 = vpop.f32.mrf.mxu0 }
0x1171   : > { %v7935_v32 = vpop.f32.mrf.mxu1  ;;  %v7937_v59 = vpop.f32.mrf.mxu0 }
0x1173   : > { %v7939_v7 = vpop.f32.mrf.mxu1  ;;  %v7941_v63 = vpop.f32.mrf.mxu0 }
0x1175   : > { %v7943_v23 = vpop.f32.mrf.mxu1  ;;  %v7945_v43 = vpop.f32.mrf.mxu0 }
0x1177   : > { %v7947_v35 = vpop.f32.mrf.mxu1  ;;  %v7949_v37 = vpop.f32.mrf.mxu0 }
0x1179   : > { %v3403_v29 = vpop.f32.mrf.mxu1  ;;  %v3466_v47 = vpop.f32.mrf.mxu0 }
0x117a   : > { %v3404_v20 = vadd.f32 %v3403_v29, %v7967_v54  ;;  %v3467_v45 = vadd.f32 %v3466_v47, %v7970_v31 }
0x117b   : > { %v3405_v49 = vpop.f32.mrf.mxu1  ;;  %v3468_v57 = vpop.f32.mrf.mxu0 }
0x117c   : > { %v3406_v53 = vadd.f32 %v3405_v49, %v7961_v50  ;;  %v3469_v60 = vadd.f32 %v3468_v57, %v7964_v52  ;;  %v3495_v57 = vmax.f32 %v3404_v20, 0.0  ;;  %v3497_v47 = vmax.f32 %v3467_v45, 0.0 }
0x117d   : > { %v3407_v58 = vpop.f32.mrf.mxu1  ;;  %v3470_v55 = vpop.f32.mrf.mxu0 }
0x117e   : > { %v3408_v61 = vadd.f32 %v3407_v58, %v7967_v54  ;;  %v3471_v6 = vadd.f32 %v3470_v55, %v7970_v31  ;;  %v3496_v19 = vmax.f32 %v3406_v53, 0.0  ;;  %v3498_v42 = vmax.f32 %v3469_v60, 0.0  ;;  %v6728_v53 = vld [vmem:[%s7221_s25 + $0x70] sm:$0xff]  }
0x117f   : > { %v3409_v62 = vpop.f32.mrf.mxu1  ;;  %v3472_v15 = vpop.f32.mrf.mxu0  ;;  %v6729_v60 = vld [vmem:[%s7221_s25 + $0xf0] sm:$0xff]  }
0x1180   : > { %v3410_v1 = vadd.f32 %v3409_v62, %v7961_v50  ;;  %v3473_v34 = vadd.f32 %v3472_v15, %v7964_v52  ;;  %v3499_v33 = vmax.f32 %v3408_v61, 0.0  ;;  %v3501_v5 = vmax.f32 %v3471_v6, 0.0 }
0x1181   : > { %v3413_v26 = vpop.f32.mrf.mxu1  ;;  %v3476_v41 = vpop.f32.mrf.mxu0 }
0x1182   : > { %v3500_v49 = vmax.f32 %v3410_v1, 0.0  ;;  %v3502_v29 = vmax.f32 %v3473_v34, 0.0  ;;  %v3519_v15 = vpack.c.bf16 %v3499_v33, %v3495_v57  ;;  %v3521_v17 = vpack.c.bf16 %v3501_v5, %v3497_v47  ;;  %v6732_v47 = vld [vmem:[%s7221_s25 + $0x68] sm:$0xff]  }
0x1183   : > { %v3415_v58 = vpop.f32.mrf.mxu1  ;;  %v3478_v55 = vpop.f32.mrf.mxu0  ;;  %v3414_v34 = vadd.f32 %v3413_v26, %v7967_v54  ;;  %v3477_v33 = vadd.f32 %v3476_v41, %v7970_v31  ;;  %v6731_v41 = vld [vmem:[%s7221_s25 + $0xb0] sm:$0xff]  }
0x1184   : > { %v3520_v21 = vpack.c.bf16 %v3500_v49, %v3496_v19  ;;  %v3522_v62 = vpack.c.bf16 %v3502_v29, %v3498_v42  ;;  %v3416_v61 = vadd.f32 %v3415_v58, %v7961_v50  ;;  %v3479_v1 = vadd.f32 %v3478_v55, %v7964_v52 }
0x1185   : > { %v3417_v6 = vpop.f32.mrf.mxu1  ;;  %v3480_v28 = vpop.f32.mrf.mxu0 }
0x1186   : > { %v3418_v20 = vadd.f32 %v3417_v6, %v7967_v54  ;;  %v3481_v45 = vadd.f32 %v3480_v28, %v7970_v31  ;;  %3819 = vmatprep.mubr.bf16.mxu1 %v3520_v21  ;;  %3876 = vmatprep.mubr.bf16.mxu0 %v3522_v62  ;;  %v6730_v28 = vld [vmem:[%s7221_s25 + $0x30] sm:$0xff]   ;;  %v3504_v58 = vmax.f32 %v3416_v61, 0.0  ;;  %v3503_v6 = vmax.f32 %v3414_v34, 0.0 }
0x1187   : > { %v3419_v5 = vpop.f32.mrf.mxu1  ;;  %v3482_v19 = vpop.f32.mrf.mxu0  ;;  %3820 = vmatmul.mubr.bf16.vlgmr.msra.gmra.mxu1 %v3519_v15  ;;  %3877 = vmatmul.mubr.bf16.vlgmr.msra.gmra.mxu0 %v3521_v17  ;;  %v3506_v17 = vmax.f32 %v3479_v1, 0.0  ;;  %v7996_v15 = vld [vmem:[%s7211_s11] sm:$0xf] }
0x1188   : > { %v3420_v42 = vadd.f32 %v3419_v5, %v7961_v50  ;;  %v3483_v49 = vadd.f32 %v3482_v19, %v7964_v52  ;;  %6196 = vmatpush3.bf16.msra.mxu1 %v6726_v36  ;;  %6230 = vmatpush3.bf16.msra.mxu0 %v6727_v18  ;;  %v3507_v21 = vmax.f32 %v3418_v20, 0.0  ;;  %v3509_v29 = vmax.f32 %v3481_v45, 0.0  ;;  %v6733_v45 = vld [vmem:[%s7221_s25 + $0xe8] sm:$0xff]  }
0x1189   : > { %v3423_v26 = vpop.f32.mrf.mxu1  ;;  %v3486_v57 = vpop.f32.mrf.mxu0  ;;  %6197 = vmatprep.subr.bf16.mxu1 %v6728_v53  ;;  %6231 = vmatprep.subr.bf16.mxu0 %v6729_v60  ;;  %v3505_v36 = vmax.f32 %v3477_v33, 0.0  ;;  %v8001_v53 = vrot.slane %v7996_v15, %v7951_v22  ;;  %v8005_v60 = vrot.slane %v7996_v15, %v7953_v40  ;;  %v6734_v5 = vld [vmem:[%s7221_s25 + $0x28] sm:$0xff]  }
0x118a   : > { %v3508_v55 = vmax.f32 %v3420_v42, 0.0  ;;  %v3510_v62 = vmax.f32 %v3483_v49, 0.0  ;;  %v3523_v34 = vpack.c.bf16 %v3507_v21, %v3503_v6 }
0x118b   : > { %v3425_v18 = vpop.f32.mrf.mxu1  ;;  %v3488_v20 = vpop.f32.mrf.mxu0  ;;  %v3525_v33 = vpack.c.bf16 %v3509_v29, %v3505_v36  ;;  %v3114_v21 = vadd.f32 %v7915_v9, %v8001_v53  ;;  %v3177_v29 = vadd.f32 %v7917_v51, %v8005_v60  ;;  %v6738_v9 = vld [vmem:[%s7221_s25 + $0x20] sm:$0xff]   ;;  %v3110_v51 = vadd.f32 %v7907_v46, %v8001_v53 }
0x118c   : > { %v3524_v61 = vpack.c.bf16 %v3508_v55, %v3504_v58  ;;  %v3526_v1 = vpack.c.bf16 %v3510_v62, %v3506_v17  ;;  %6198 = vmatpush3.bf16.msra.mxu1 %v6730_v28  ;;  %v3426_v19 = vadd.f32 %v3425_v18, %v7961_v50  ;;  %6232 = vmatpush3.bf16.msra.mxu0 %v6731_v41  ;;  %v6737_v28 = vld [vmem:[%s7221_s25 + $0xe0] sm:$0xff]  }
0x118d   : > { %v3427_v42 = vpop.f32.mrf.mxu1  ;;  %v3490_v49 = vpop.f32.mrf.mxu0  ;;  %6199 = vmatprep.subr.bf16.mxu1 %v6732_v47  ;;  %v3489_v22 = vadd.f32 %v3488_v20, %v7964_v52  ;;  %v3424_v41 = vadd.f32 %v3423_v26, %v7967_v54  ;;  %6233 = vmatprep.subr.bf16.mxu0 %v6733_v45  ;;  %v3487_v55 = vadd.f32 %v3486_v57, %v7970_v31  ;;  %v6740_v57 = vld [vmem:[%s7221_s25 + $0x58] sm:$0xff]   ;;  %v3204_v45 = vmax.f32 %v3114_v21, 0.0  ;;  %v6746_v21 = vld [vmem:[%s7221_s25 + $0x10] sm:$0xff]  }
0x118e   : > { %v3428_v40 = vadd.f32 %v3427_v42, %v7967_v54  ;;  %v3491_v58 = vadd.f32 %v3490_v49, %v7970_v31  ;;  %3827 = vmatprep.mubr.bf16.mxu1 %v3524_v61  ;;  %3884 = vmatprep.mubr.bf16.mxu0 %v3526_v1  ;;  %v3173_v54 = vadd.f32 %v7909_v8, %v8005_v60  ;;  %v3512_v26 = vmax.f32 %v3426_v19, 0.0  ;;  %v6739_v31 = vld [vmem:[%s7221_s25 + $0xa0] sm:$0xff]   ;;  %v6741_v1 = vld [vmem:[%s7221_s25 + $0xd8] sm:$0xff]   ;;  %v6744_v42 = vld [vmem:[%s7221_s25 + $0x50] sm:$0xff]  }
0x118f   : > { %v3429_v47 = vpop.f32.mrf.mxu1  ;;  %v3492_v17 = vpop.f32.mrf.mxu0  ;;  %3828 = vmatmul.mubr.bf16.gmra.mxu1 %v3523_v34  ;;  %3885 = vmatmul.mubr.bf16.gmra.mxu0 %v3525_v33  ;;  %v3511_v61 = vmax.f32 %v3424_v41, 0.0  ;;  %v3206_v46 = vmax.f32 %v3177_v29, 0.0  ;;  %v6747_v29 = vld [vmem:[%s7221_s25 + $0x90] sm:$0xff]   ;;  %v6748_v41 = vld [vmem:[%s7221_s25 + $0x48] sm:$0xff]  }
0x1190   : > { %v3430_v62 = vadd.f32 %v3429_v47, %v7961_v50  ;;  %v3493_v6 = vadd.f32 %v3492_v17, %v7964_v52  ;;  %6200 = vmatpush3.bf16.msra.mxu1 %v6734_v5  ;;  %v3515_v36 = vmax.f32 %v3428_v40, 0.0  ;;  %6234 = vmatpush3.bf16.msra.mxu0 %v6735_v25  ;;  %v3514_v50 = vmax.f32 %v3489_v22, 0.0  ;;  %v6743_v22 = vld [vmem:[%s7221_s25 + $0x98] sm:$0xff]   ;;  %v6749_v47 = vld [vmem:[%s7221_s25 + $0xc8] sm:$0xff]  }
0x1191   : > { %6201 = vmatprep.subr.bf16.mxu1 %v6736_v0  ;;  %v3517_v18 = vmax.f32 %v3491_v58, 0.0  ;;  %6235 = vmatprep.subr.bf16.mxu0 %v6737_v28  ;;  %v3513_v5 = vmax.f32 %v3487_v55, 0.0  ;;  %v6742_v0 = vld [vmem:[%s7221_s25 + $0x18] sm:$0xff]   ;;  %v3200_v25 = vmax.f32 %v3110_v51, 0.0  ;;  %v3202_v33 = vmax.f32 %v3173_v54, 0.0  ;;  %v6745_v58 = vld [vmem:[%s7221_s25 + $0xd0] sm:$0xff]  }
0x1192   : > { %v3516_v52 = vmax.f32 %v3430_v62, 0.0  ;;  %v3518_v20 = vmax.f32 %v3493_v6, 0.0  ;;  %v3527_v40 = vpack.c.bf16 %v3515_v36, %v3511_v61  ;;  %v8041_v17 = vrot.slane %v7996_v15, %v7956_v44  ;;  %v6750_v62 = vld [vmem:[%s7221_s25 + $0x8] sm:$0xff]   ;;  %v6752_v51 = vld [vmem:[%s7221_s25 + $0x40] sm:$0xff]  }
0x1193   : > { %v3529_v19 = vpack.c.bf16 %v3517_v18, %v3513_v5  ;;  %v3224_v49 = vpack.c.bf16 %v3204_v45, %v3200_v25  ;;  %v3226_v28 = vpack.c.bf16 %v3206_v46, %v3202_v33  ;;  %v8045_v55 = vrot.slane %v7996_v15, %v7958_v48  ;;  %v6753_v15 = vld [vmem:[%s7221_s25 + $0xc0] sm:$0xff]   ;;  %v4214_v18 = vld [vmem:[%s7206_s19 + $0xe8] sm:$0xff] }
0x1194   : > { %v3528_v8 = vpack.c.bf16 %v3516_v52, %v3512_v26  ;;  %v3530_v34 = vpack.c.bf16 %v3518_v20, %v3514_v50  ;;  %6202 = vmatpush3.bf16.msra.mxu1 %v6738_v9  ;;  %6236 = vmatpush3.bf16.msra.mxu0 %v6739_v31  ;;  %v3112_v6 = vadd.f32 %v7911_v38, %v8041_v17  ;;  %v6751_v9 = vld [vmem:[%s7221_s25 + $0x88] sm:$0xff]   ;;  %v4211_v36 = vld [vmem:[%s7206_s19 + $0xa0] sm:$0xff] }
0x1195   : > { %6203 = vmatprep.subr.bf16.mxu1 %v6740_v57  ;;  %6237 = vmatprep.subr.bf16.mxu0 %v6741_v1  ;;  %v3175_v54 = vadd.f32 %v7913_v24, %v8045_v55  ;;  %v3124_v26 = vadd.f32 %v7931_v27, %v8001_v53  ;;  %v4213_v31 = vld [vmem:[%s7206_s19 + $0xe0] sm:$0xff]  ;;  %v3108_v57 = vadd.f32 %v7903_v2, %v8041_v17  ;;  %v4212_v50 = vld [vmem:[%s7206_s19 + $0xa8] sm:$0xff] }
0x1196   : > { %3835 = vmatprep.mubr.bf16.mxu1 %v3528_v8  ;;  %3892 = vmatprep.mubr.bf16.mxu0 %v3530_v34  ;;  %v3187_v38 = vadd.f32 %v7933_v30, %v8005_v60  ;;  %v3171_v24 = vadd.f32 %v7905_v3, %v8045_v55  ;;  %v3120_v27 = vadd.f32 %v7923_v10, %v8001_v53  ;;  %v6754_v52 = vld [vmem:[%s7221_s25] sm:$0xff]   ;;  %v3203_v20 = vmax.f32 %v3112_v6, 0.0 }
0x1197   : > { %3836 = vmatmul.mubr.bf16.gmra.mxu1 %v3527_v40  ;;  %3893 = vmatmul.mubr.bf16.gmra.mxu0 %v3529_v19  ;;  %v3183_v45 = vadd.f32 %v7925_v39, %v8005_v60  ;;  %v6755_v2 = vld [vmem:[%s7221_s25 + $0x80] sm:$0xff]   ;;  %v5936_v30 = vcombine.high %v4211_v36, %v4213_v31  ;;  %v3205_v61 = vmax.f32 %v3175_v54, 0.0  ;;  %v3212_v1 = vmax.f32 %v3124_v26, 0.0  ;;  %v4208_v39 = vld [vmem:[%s7206_s19 + $0x28] sm:$0xff] }
0x1198   : > { %6204 = vmatpush3.bf16.msra.mxu1 %v6742_v0  ;;  %6238 = vmatpush3.bf16.msra.mxu0 %v6743_v22  ;;  %v5938_v46 = vcombine.high %v4212_v50, %v4214_v18  ;;  %v4207_v3 = vld [vmem:[%s7206_s19 + $0x20] sm:$0xff]  ;;  %v3199_v8 = vmax.f32 %v3108_v57, 0.0  ;;  %v3214_v10 = vmax.f32 %v3187_v38, 0.0  ;;  %v3201_v34 = vmax.f32 %v3171_v24, 0.0  ;;  %v4210_v22 = vld [vmem:[%s7206_s19 + $0x68] sm:$0xff] }
0x1199   : > { %4125 = vmatprep.mubr.bf16.mxu1 %v3224_v49  ;;  %4182 = vmatprep.mubr.bf16.mxu0 %v3226_v28  ;;  %v4209_v5 = vld [vmem:[%s7206_s19 + $0x60] sm:$0xff]  ;;  %v3208_v0 = vmax.f32 %v3120_v27, 0.0  ;;  %v5935_v25 = vcombine.low %v4211_v36, %v4213_v31  ;;  %v5937_v40 = vcombine.low %v4212_v50, %v4214_v18  ;;  %v3210_v19 = vmax.f32 %v3183_v45, 0.0  ;;  %v6759_v45 = vld [vmem:[%s7221_s25 + $0x2b8] sm:$0xff]  }
0x119a   : > { %6205 = vmatprep.subr.bf16.mxu1 %v6744_v42  ;;  %6239 = vmatprep.subr.bf16.mxu0 %v6745_v58  ;;  %v3223_v33 = vpack.c.bf16 %v3203_v20, %v3199_v8  ;;  %v3122_v42 = vadd.f32 %v7927_v56, %v8041_v17  ;;  %v5932_v49 = vcombine.high %v4207_v3, %v4209_v5  ;;  %v6767_v8 = vld [vmem:[%s7221_s25 + $0x2a8] sm:$0xff]  }
0x119b   : > { %v3225_v58 = vpack.c.bf16 %v3205_v61, %v3201_v34  ;;  %v3185_v28 = vadd.f32 %v7929_v16, %v8045_v55  ;;  %v5934_v56 = vcombine.high %v4208_v39, %v4210_v22  ;;  %v3181_v6 = vadd.f32 %v7921_v13, %v8045_v55  ;;  %v6762_v61 = vld [vmem:[%s7221_s25 + $0x230] sm:$0xff]   ;;  %v6769_v34 = vld [vmem:[%s7221_s25 + $0x2e0] sm:$0xff]  }
0x119c   : > { %6206 = vmatpush3.bf16.msra.mxu1 %v6746_v21  ;;  %6240 = vmatpush3.bf16.msra.mxu0 %v6747_v29  ;;  %v3228_v21 = vpack.c.bf16 %v3212_v1, %v3208_v0  ;;  %v3134_v29 = vadd.f32 %v7947_v35, %v8001_v53  ;;  %v3130_v16 = vadd.f32 %v7939_v7, %v8001_v53  ;;  %v6763_v1 = vld [vmem:[%s7221_s25 + $0x2b0] sm:$0xff]   ;;  %v6770_v0 = vld [vmem:[%s7221_s25 + $0x220] sm:$0xff]  }
0x119d   : > { %6207 = vmatprep.subr.bf16.mxu1 %v6748_v41  ;;  %6241 = vmatprep.subr.bf16.mxu0 %v6749_v47  ;;  %v3118_v41 = vadd.f32 %v7919_v12, %v8041_v17  ;;  %v3230_v47 = vpack.c.bf16 %v3214_v10, %v3210_v19  ;;  %v3193_v35 = vadd.f32 %v7941_v63, %v8005_v60  ;;  %v3209_v13 = vmax.f32 %v3181_v6, 0.0  ;;  %v6768_v10 = vld [vmem:[%s7221_s25 + $0x260] sm:$0xff]   ;;  %v6776_v19 = vld [vmem:[%s7221_s25 + $0x250] sm:$0xff]  }
0x119e   : > { %v5931_v12 = vcombine.low %v4207_v3, %v4209_v5  ;;  %v3220_v54 = vmax.f32 %v3134_v29, 0.0  ;;  %v3216_v36 = vmax.f32 %v3130_v16, 0.0  ;;  %v3132_v31 = vadd.f32 %v7943_v23, %v8041_v17  ;;  %v6765_v3 = vld [vmem:[%s7221_s25 + $0x2e8] sm:$0xff]   ;;  %v6787_v6 = vld [vmem:[%s7221_s25 + $0x280] sm:$0xff]   ;;  %v8152_v16 = vld [vmem:[%s7206_s19 + $0xb0] sm:$0xff] }
0x119f   : > { %v3207_v26 = vmax.f32 %v3118_v41, 0.0  ;;  %v3218_v53 = vmax.f32 %v3193_v35, 0.0  ;;  %v3128_v38 = vadd.f32 %v7935_v32, %v8041_v17  ;;  %v3191_v18 = vadd.f32 %v7937_v59, %v8045_v55  ;;  %v6756_v59 = vld [vmem:[%s7221_s25 + $0x278] sm:$0xff]   ;;  %v6766_v5 = vld [vmem:[%s7221_s25 + $0x228] sm:$0xff]  }
0x11a0   : > { %6208 = vmatpush3.bf16.msra.mxu1 %v6750_v62  ;;  %6242 = vmatpush3.bf16.msra.mxu0 %v6751_v9  ;;  %v3197_v62 = vadd.f32 %v7949_v37, %v8005_v60  ;;  %v3211_v9 = vmax.f32 %v3122_v42, 0.0  ;;  %v5933_v37 = vcombine.low %v4208_v39, %v4210_v22  ;;  %v3195_v60 = vadd.f32 %v7945_v43, %v8045_v55  ;;  %v6757_v17 = vld [vmem:[%s7221_s25 + $0x2f8] sm:$0xff]   ;;  %v6777_v42 = vld [vmem:[%s7221_s25 + $0x2d0] sm:$0xff]   ;;  %v6782_v29 = vld [vmem:[%s7221_s25 + $0x208] sm:$0xff]  }
0x11a1   : > { %6209 = vmatprep.subr.bf16.mxu1 %v6752_v51  ;;  %6243 = vmatprep.subr.bf16.mxu0 %v6753_v15  ;;  %v3213_v51 = vmax.f32 %v3185_v28, 0.0  ;;  %v3232_v57 = vpack.c.bf16 %v3220_v54, %v3216_v36  ;;  %v3219_v24 = vmax.f32 %v3132_v31, 0.0  ;;  %v3215_v27 = vmax.f32 %v3128_v38, 0.0  ;;  %v6758_v55 = vld [vmem:[%s7221_s25 + $0x238] sm:$0xff]   ;;  %v6780_v28 = vld [vmem:[%s7221_s25 + $0x248] sm:$0xff]  }
0x11a2   : > { %v3222_v15 = vmax.f32 %v3197_v62, 0.0  ;;  %v3227_v7 = vpack.c.bf16 %v3211_v9, %v3207_v26  ;;  %v3221_v23 = vmax.f32 %v3195_v60, 0.0  ;;  %v8493_v32 = vmov 0   ;;  %v6773_v39 = vld [vmem:[%s7221_s25 + $0x2d8] sm:$0xff]   ;;  %v6783_v41 = vld [vmem:[%s7221_s25 + $0x288] sm:$0xff]   ;;  %v6785_v62 = vld [vmem:[%s7221_s25 + $0x2c0] sm:$0xff]  }
0x11a3   : > { %v3229_v63 = vpack.c.bf16 %v3213_v51, %v3209_v13  ;;  %v3231_v20 = vpack.c.bf16 %v3219_v24, %v3215_v27  ;;  %v6774_v22 = vld [vmem:[%s7221_s25 + $0x218] sm:$0xff]   ;;  %v8155_v9 = vld [vmem:[%s7206_s19 + $0xf0] sm:$0xff] }
0x11a4   : > { %6210 = vmatpush3.bf16.msra.mxu1 %v6754_v52  ;;  %6244 = vmatpush3.bf16.msra.mxu0 %v6755_v2  ;;  %v3234_v50 = vpack.c.bf16 %v3222_v15, %v3218_v53  ;;  %v3217_v52 = vmax.f32 %v3191_v18, 0.0  ;;  %v6760_v2 = vld [vmem:[%s7221_s25 + $0x270] sm:$0xff]   ;;  %v8158_v35 = vld [vmem:[%s7206_s19 + $0xb8] sm:$0xff]  ;;  %v5982_v51 = vcombine.high %v8152_v16, %v8155_v9 }
0x11a5   : > { %4289 = vmatprep.subr.bf16.mxu1 %v5936_v30  ;;  %4352 = vmatprep.subr.bf16.mxu0 %v5938_v46  ;;  %v6761_v30 = vld [vmem:[%s7221_s25 + $0x2f0] sm:$0xff]   ;;  %v6764_v46 = vld [vmem:[%s7221_s25 + $0x268] sm:$0xff]   ;;  %v8165_v54 = vld [vmem:[%s7206_s19 + $0xf8] sm:$0xff] }
0x11a6   : > { %v3233_v43 = vpack.c.bf16 %v3221_v23, %v3217_v52  ;;  %v5984_v26 = vcombine.high %v8158_v35, %v8165_v54 }
0x11a7   : > { %4126 = vmatmul.mubr.bf16.vlgmr.msra.gmra.mxu1 %v3223_v33  ;;  %4183 = vmatmul.mubr.bf16.vlgmr.msra.gmra.mxu0 %v3225_v58  ;;  %v6775_v33 = vld [vmem:[%s7221_s25 + $0x298] sm:$0xff]   ;;  %v6779_v58 = vld [vmem:[%s7221_s25 + $0x290] sm:$0xff]  }
0x11a8   : > { %4133 = vmatprep.mubr.bf16.mxu1 %v3228_v21  ;;  %4190 = vmatprep.mubr.bf16.mxu0 %v3230_v47  ;;  %v6781_v21 = vld [vmem:[%s7221_s25 + $0x2c8] sm:$0xff]   ;;  %v6784_v47 = vld [vmem:[%s7221_s25 + $0x240] sm:$0xff]  }
0x11a9   : > { %4290 = vmatpush1.bf16.msra.mxu1 %v5935_v25  ;;  %4353 = vmatpush1.bf16.msra.mxu0 %v5937_v40  ;;  %v6771_v25 = vld [vmem:[%s7221_s25 + $0x2a0] sm:$0xff]   ;;  %v6772_v40 = vld [vmem:[%s7221_s25 + $0x258] sm:$0xff]  }
0x11aa   : > { %4291 = vmatprep.subr.bf16.mxu1 %v5932_v49  ;;  %4354 = vmatprep.subr.bf16.mxu0 %v5934_v56  ;;  %v6778_v49 = vld [vmem:[%s7221_s25 + $0x210] sm:$0xff]   ;;  %v6786_v56 = vld [vmem:[%s7221_s25 + $0x200] sm:$0xff]  }
0x11ad   : > { %4292 = vmatpush1.bf16.msra.mxu1 %v5931_v12  ;;  %4355 = vmatpush1.bf16.msra.mxu0 %v5933_v37  ;;  %v5981_v12 = vcombine.low %v8152_v16, %v8155_v9  ;;  %v5983_v37 = vcombine.low %v8158_v35, %v8165_v54 }
0x11ae   : > { %6263 = vmatprep.subr.bf16.mxu1 %v6756_v59  ;;  %6297 = vmatprep.subr.bf16.mxu0 %v6757_v17 }
0x11af   : > { %4134 = vmatmul.mubr.bf16.gmra.mxu1 %v3227_v7  ;;  %4191 = vmatmul.mubr.bf16.gmra.mxu0 %v3229_v63 }
0x11b0   : > { %4141 = vmatprep.mubr.bf16.mxu1 %v3232_v57  ;;  %4198 = vmatprep.mubr.bf16.mxu0 %v3234_v50 }
0x11b7   : > { %4142 = vmatmul.mubr.bf16.gmra.mxu1 %v3231_v20  ;;  %4199 = vmatmul.mubr.bf16.gmra.mxu0 %v3233_v43 }
0x11b8   : > { %4309 = vmatprep.mubr.bf16.mxu1 %v8493_v32  ;;  %4372 = vmatprep.mubr.bf16.mxu0 %v8493_v32 }
0x11bf   : > { %5939 = vmatmul.mubr.msk.bf16.vlgmr.msra.gmra.mxu1 %vm1042_vm3, %v7826_v4  ;;  %5942 = vmatmul.mubr.msk.bf16.vlgmr.msra.gmra.mxu0 %vm1042_vm3, %v7826_v4 }
0x11c0   : > { %4319 = vmatprep.mubr.bf16.mxu1 %v8493_v32  ;;  %4382 = vmatprep.mubr.bf16.mxu0 %v8493_v32 }
0x11c1   : > { %6264 = vmatpush3.bf16.msra.mxu1 %v6758_v55  ;;  %6298 = vmatpush3.bf16.msra.mxu0 %v6759_v45 }
0x11c2   : > { %6265 = vmatprep.subr.bf16.mxu1 %v6760_v2  ;;  %6299 = vmatprep.subr.bf16.mxu0 %v6761_v30 }
0x11c5   : > { %6266 = vmatpush3.bf16.msra.mxu1 %v6762_v61  ;;  %6300 = vmatpush3.bf16.msra.mxu0 %v6763_v1 }
0x11c6   : > { %6267 = vmatprep.subr.bf16.mxu1 %v6764_v46  ;;  %6301 = vmatprep.subr.bf16.mxu0 %v6765_v3 }
0x11c7   : > { %5940 = vmatmul.mubr.msk.bf16.gmra.mxu1 %vm1042_vm3, %v7836_v14  ;;  %5943 = vmatmul.mubr.msk.bf16.gmra.mxu0 %vm1042_vm3, %v7836_v14 }
0x11c8   : > { %4329 = vmatprep.mubr.bf16.mxu1 %v8493_v32  ;;  %4392 = vmatprep.mubr.bf16.mxu0 %v8493_v32 }
0x11c9   : > { %6268 = vmatpush3.bf16.msra.mxu1 %v6766_v5  ;;  %6302 = vmatpush3.bf16.msra.mxu0 %v6767_v8 }
0x11ca   : > { %6269 = vmatprep.subr.bf16.mxu1 %v6768_v10  ;;  %6303 = vmatprep.subr.bf16.mxu0 %v6769_v34 }
0x11cd   : > { %6270 = vmatpush3.bf16.msra.mxu1 %v6770_v0  ;;  %6304 = vmatpush3.bf16.msra.mxu0 %v6771_v25 }
0x11ce   : > { %6271 = vmatprep.subr.bf16.mxu1 %v6772_v40  ;;  %6305 = vmatprep.subr.bf16.mxu0 %v6773_v39 }
0x11cf   : > { %5941 = vmatmul.mubr.msk.bf16.gmra.mxu1 %vm1042_vm3, %v7845_v11  ;;  %5944 = vmatmul.mubr.msk.bf16.gmra.mxu0 %vm1042_vm3, %v7845_v11 }
0x11d1   : > { %6272 = vmatpush3.bf16.msra.mxu1 %v6774_v22  ;;  %6306 = vmatpush3.bf16.msra.mxu0 %v6775_v33 }
0x11d2   : > { %6273 = vmatprep.subr.bf16.mxu1 %v6776_v19  ;;  %6307 = vmatprep.subr.bf16.mxu0 %v6777_v42 }
0x11d5   : > { %6274 = vmatpush3.bf16.msra.mxu1 %v6778_v49  ;;  %6308 = vmatpush3.bf16.msra.mxu0 %v6779_v58 }
0x11d6   : > { %6275 = vmatprep.subr.bf16.mxu1 %v6780_v28  ;;  %6309 = vmatprep.subr.bf16.mxu0 %v6781_v21 }
0x11d9   : > { %6276 = vmatpush3.bf16.msra.mxu1 %v6782_v29  ;;  %6310 = vmatpush3.bf16.msra.mxu0 %v6783_v41 }
0x11da   : > { %6277 = vmatprep.subr.bf16.mxu1 %v6784_v47  ;;  %6311 = vmatprep.subr.bf16.mxu0 %v6785_v62 }
0x11dd   : > { %6278 = vmatpush3.bf16.msra.mxu1 %v6786_v56  ;;  %6312 = vmatpush3.bf16.msra.mxu0 %v6787_v6 }
0x11de   : > { %4897 = vmatprep.subr.bf16.mxu1 %v5982_v51  ;;  %4960 = vmatprep.subr.bf16.mxu0 %v5984_v26 }
0x1247   : > { %v6143_v15 = vpop.f32.mrf.mxu1  ;;  %v6177_v13 = vpop.f32.mrf.mxu0 }
0x1249   : > { %v6144_v36 = vpop.f32.mrf.mxu1  ;;  %v6178_v7 = vpop.f32.mrf.mxu0 }
0x124a   : > { %v6145_v53 = vadd.f32 %v6144_v36, %v6143_v15  ;;  %v6179_v31 = vadd.f32 %v6178_v7, %v6177_v13 }
0x124b   : > { %v6146_v63 = vpop.f32.mrf.mxu1  ;;  %v6180_v60 = vpop.f32.mrf.mxu0 }
0x124c   : > { %v3879_v57 = vadd.f32 %v6179_v31, %v6145_v53 }
0x124d   : > { %v6147_v38 = vpop.f32.mrf.mxu1  ;;  %v6181_v50 = vpop.f32.mrf.mxu0 }
0x124e   : > { %v6148_v18 = vadd.f32 %v6147_v38, %v6146_v63  ;;  %v6182_v24 = vadd.f32 %v6181_v50, %v6180_v60 }
0x124f   : > { %v6149_v23 = vpop.f32.mrf.mxu1  ;;  %v6183_v52 = vpop.f32.mrf.mxu0 }
0x1250   : > { %v3882_v27 = vadd.f32 %v6182_v24, %v6148_v18 }
0x1251   : > { %v6150_v20 = vpop.f32.mrf.mxu1  ;;  %v6184_v59 = vpop.f32.mrf.mxu0 }
0x1252   : > { %v6151_v43 = vadd.f32 %v6150_v20, %v6149_v23  ;;  %v6185_v17 = vadd.f32 %v6184_v59, %v6183_v52 }
0x1253   : > { %v6152_v55 = vpop.f32.mrf.mxu1  ;;  %v6186_v45 = vpop.f32.mrf.mxu0 }
0x1254   : > { %v3887_v2 = vadd.f32 %v6185_v17, %v6151_v43 }
0x1255   : > { %v6153_v30 = vpop.f32.mrf.mxu1  ;;  %v6187_v1 = vpop.f32.mrf.mxu0 }
0x1256   : > { %v6154_v61 = vadd.f32 %v6153_v30, %v6152_v55  ;;  %v6188_v46 = vadd.f32 %v6187_v1, %v6186_v45 }
0x1257   : > { %v6155_v3 = vpop.f32.mrf.mxu1  ;;  %v6189_v5 = vpop.f32.mrf.mxu0 }
0x1258   : > { %v3890_v8 = vadd.f32 %v6188_v46, %v6154_v61 }
0x1259   : > { %v6156_v10 = vpop.f32.mrf.mxu1  ;;  %v6190_v0 = vpop.f32.mrf.mxu0 }
0x125a   : > { %v6157_v34 = vadd.f32 %v6156_v10, %v6155_v3  ;;  %v6191_v25 = vadd.f32 %v6190_v0, %v6189_v5 }
0x125b   : > { %v6158_v40 = vpop.f32.mrf.mxu1  ;;  %v6192_v39 = vpop.f32.mrf.mxu0 }
0x125c   : > { %v3895_v22 = vadd.f32 %v6191_v25, %v6157_v34 }
0x125d   : > { %v6159_v33 = vpop.f32.mrf.mxu1  ;;  %v6193_v42 = vpop.f32.mrf.mxu0 }
0x125e   : > { %v6160_v19 = vadd.f32 %v6159_v33, %v6158_v40  ;;  %v6194_v49 = vadd.f32 %v6193_v42, %v6192_v39  ;;  %v4215_v33 = vld [vmem:[%s7211_s11 + $0x8] sm:$0xf] }
0x1260   : > { %v3898_v58 = vadd.f32 %v6194_v49, %v6160_v19 }
0x1267   : > { %v6211_v28 = vpop.f32.mrf.mxu1  ;;  %v6245_v21 = vpop.f32.mrf.mxu0 }
0x1269   : > { %v6212_v29 = vpop.f32.mrf.mxu1  ;;  %v6246_v47 = vpop.f32.mrf.mxu0 }
0x126a   : > { %v6213_v41 = vadd.f32 %v6212_v29, %v6211_v28  ;;  %v6247_v62 = vadd.f32 %v6246_v47, %v6245_v21  ;;  %v8494_v28 = vld [vmem:[#allocation15_spill] sm:$0xff]  ;;  %v8186_v29 = vrot.slane %v4215_v33, %v7956_v44  ;;  %v8495_v47 = vld [vmem:[#allocation16_spill] sm:$0xff] }
0x126b   : > { %v6214_v56 = vpop.f32.mrf.mxu1  ;;  %v6248_v51 = vpop.f32.mrf.mxu0  ;;  %v8183_v21 = vrot.slane %v4215_v33, %v8494_v28 }
0x126c   : > { %v4128_v6 = vadd.f32 %v6213_v41, %v3879_v57 }
0x126d   : > { %v6215_v26 = vpop.f32.mrf.mxu1  ;;  %v6249_v36 = vpop.f32.mrf.mxu0 }
0x126e   : > { %v8171_v15 = vadd.f32 %v6247_v62, %v4128_v6  ;;  %v6216_v13 = vadd.f32 %v6215_v26, %v6214_v56  ;;  %v6250_v7 = vadd.f32 %v6249_v36, %v6248_v51  ;;  %v8194_v56 = vrot.slane %v4215_v33, %v7958_v48 }
0x126f   : > { %v6217_v53 = vpop.f32.mrf.mxu1  ;;  %v6251_v63 = vpop.f32.mrf.mxu0 }
0x1270   : > { %v4131_v31 = vadd.f32 %v6216_v13, %v3882_v27 }
0x1271   : > { %v6218_v60 = vpop.f32.mrf.mxu1  ;;  %v6252_v18 = vpop.f32.mrf.mxu0 }
0x1272   : > { %v8173_v38 = vadd.f32 %v6250_v7, %v4131_v31  ;;  %v6219_v50 = vadd.f32 %v6218_v60, %v6217_v53  ;;  %v6253_v24 = vadd.f32 %v6252_v18, %v6251_v63 }
0x1273   : > { %v6220_v23 = vpop.f32.mrf.mxu1  ;;  %v6254_v20 = vpop.f32.mrf.mxu0 }
0x1274   : > { %v4136_v52 = vadd.f32 %v6219_v50, %v3887_v2 }
0x1275   : > { %v6221_v57 = vpop.f32.mrf.mxu1  ;;  %v6255_v17 = vpop.f32.mrf.mxu0 }
0x1276   : > { %v8175_v43 = vadd.f32 %v6253_v24, %v4136_v52  ;;  %v6222_v59 = vadd.f32 %v6221_v57, %v6220_v23  ;;  %v6256_v55 = vadd.f32 %v6255_v17, %v6254_v20  ;;  %v4815_v17 = vld [vmem:[%s7206_s19 + $0x30] sm:$0xff] }
0x1277   : > { %v6223_v45 = vpop.f32.mrf.mxu1  ;;  %v6257_v27 = vpop.f32.mrf.mxu0 }
0x1278   : > { %v4139_v30 = vadd.f32 %v6222_v59, %v3890_v8 }
0x1279   : > { %v6224_v61 = vpop.f32.mrf.mxu1  ;;  %v6258_v3 = vpop.f32.mrf.mxu0 }
0x127a   : > { %v8177_v1 = vadd.f32 %v6256_v55, %v4139_v30  ;;  %v6225_v46 = vadd.f32 %v6224_v61, %v6223_v45  ;;  %v6259_v5 = vadd.f32 %v6258_v3, %v6257_v27  ;;  %v4817_v55 = vld [vmem:[%s7206_s19 + $0x70] sm:$0xff]  ;;  %v4818_v3 = vld [vmem:[%s7206_s19 + $0x78] sm:$0xff] }
0x127b   : > { %v6226_v10 = vpop.f32.mrf.mxu1  ;;  %v6260_v2 = vpop.f32.mrf.mxu0 }
0x127c   : > { %v4144_v34 = vadd.f32 %v6225_v46, %v3895_v22  ;;  %v8189_v22 = vrot.slane %v4215_v33, %v8495_v47  ;;  %v4816_v46 = vld [vmem:[%s7206_s19 + $0x38] sm:$0xff]  ;;  %s8504_s19 = sld [smem:[#allocation28_spill]] (!%p6024_p6) }
0x127d   : > { %v6227_v0 = vpop.f32.mrf.mxu1  ;;  %v6261_v39 = vpop.f32.mrf.mxu0 }
0x127e   : > { %v8179_v25 = vadd.f32 %v6259_v5, %v4144_v34  ;;  %v6228_v40 = vadd.f32 %v6227_v0, %v6226_v10  ;;  %v6262_v19 = vadd.f32 %v6261_v39, %v6260_v2  ;;  %v5978_v39 = vcombine.high %v4815_v17, %v4817_v55 }
0x127f   : > { %v4311_v42 = vpop.f32.mrf.mxu1  ;;  %v4374_v8 = vpop.f32.mrf.mxu0 }
0x1280   : > { %v4147_v49 = vadd.f32 %v6228_v40, %v3898_v58  ;;  %v4312_v36 = vadd.f32 %v4311_v42, %v8186_v29  ;;  %v4375_v63 = vadd.f32 %v4374_v8, %v8194_v56  ;;  %v5980_v8 = vcombine.high %v4816_v46, %v4818_v3 }
0x1281   : > { %v4313_v41 = vpop.f32.mrf.mxu1  ;;  %v4376_v6 = vpop.f32.mrf.mxu0 }
0x1282   : > { %v8191_v62 = vadd.f32 %v6262_v19, %v4147_v49  ;;  %v4314_v58 = vadd.f32 %v4313_v41, %v8183_v21  ;;  %v4377_v7 = vadd.f32 %v4376_v6, %v8189_v22  ;;  %v4403_v45 = vmax.f32 %v4312_v36, 0.0 }
0x1283   : > { %v4315_v51 = vpop.f32.mrf.mxu1  ;;  %v4378_v13 = vpop.f32.mrf.mxu0  ;;  %v4405_v5 = vmax.f32 %v4375_v63, 0.0 }
0x1284   : > { %v4316_v26 = vadd.f32 %v4315_v51, %v8186_v29  ;;  %v4379_v53 = vadd.f32 %v4378_v13, %v8194_v56  ;;  %v4404_v52 = vmax.f32 %v4314_v58, 0.0  ;;  %v4406_v30 = vmax.f32 %v4377_v7, 0.0 }
0x1285   : > { %v4317_v31 = vpop.f32.mrf.mxu1  ;;  %v4380_v50 = vpop.f32.mrf.mxu0  ;;  %v5977_v7 = vcombine.low %v4815_v17, %v4817_v55 }
0x1286   : > { %v4318_v60 = vadd.f32 %v4317_v31, %v8183_v21  ;;  %v4407_v18 = vmax.f32 %v4316_v26, 0.0  ;;  %v4381_v24 = vadd.f32 %v4380_v50, %v8189_v22  ;;  %v4409_v20 = vmax.f32 %v4379_v53, 0.0 }
0x1287   : > { %v4321_v23 = vpop.f32.mrf.mxu1  ;;  %v4384_v59 = vpop.f32.mrf.mxu0 }
0x1288   : > { %v4408_v57 = vmax.f32 %v4318_v60, 0.0  ;;  %v4410_v27 = vmax.f32 %v4381_v24, 0.0  ;;  %v4427_v2 = vpack.c.bf16 %v4407_v18, %v4403_v45  ;;  %v4429_v33 = vpack.c.bf16 %v4409_v20, %v4405_v5 }
0x1289   : > { %v4323_v61 = vpop.f32.mrf.mxu1  ;;  %v4386_v34 = vpop.f32.mrf.mxu0  ;;  %v4322_v41 = vadd.f32 %v4321_v23, %v8186_v29  ;;  %v4385_v26 = vadd.f32 %v4384_v59, %v8194_v56  ;;  %v5979_v60 = vcombine.low %v4816_v46, %v4818_v3 }
0x128a   : > { %v4428_v10 = vpack.c.bf16 %v4408_v57, %v4404_v52  ;;  %v4430_v0 = vpack.c.bf16 %v4410_v27, %v4406_v30  ;;  %v4324_v19 = vadd.f32 %v4323_v61, %v8183_v21  ;;  %v4387_v6 = vadd.f32 %v4386_v34, %v8189_v22 }
0x128b   : > { %v4325_v40 = vpop.f32.mrf.mxu1  ;;  %v4388_v49 = vpop.f32.mrf.mxu0  ;;  %v4411_v52 = vmax.f32 %v4322_v41, 0.0 }
0x128c   : > { %v4326_v42 = vadd.f32 %v4325_v40, %v8186_v29  ;;  %4727 = vmatprep.mubr.bf16.mxu1 %v4428_v10  ;;  %v4389_v51 = vadd.f32 %v4388_v49, %v8194_v56  ;;  %4784 = vmatprep.mubr.bf16.mxu0 %v4430_v0  ;;  %v4412_v50 = vmax.f32 %v4324_v19, 0.0  ;;  %v4414_v20 = vmax.f32 %v4387_v6, 0.0 }
0x128d   : > { %v4327_v58 = vpop.f32.mrf.mxu1  ;;  %4728 = vmatmul.mubr.bf16.vlgmr.msra.gmra.mxu1 %v4427_v2  ;;  %v4390_v36 = vpop.f32.mrf.mxu0  ;;  %4785 = vmatmul.mubr.bf16.vlgmr.msra.gmra.mxu0 %v4429_v33 }
0x128e   : > { %v4328_v13 = vadd.f32 %v4327_v58, %v8183_v21  ;;  %4898 = vmatpush1.bf16.msra.mxu1 %v5981_v12  ;;  %v4415_v53 = vmax.f32 %v4326_v42, 0.0  ;;  %v4391_v31 = vadd.f32 %v4390_v36, %v8189_v22  ;;  %4961 = vmatpush1.bf16.msra.mxu0 %v5983_v37  ;;  %v4417_v18 = vmax.f32 %v4389_v51, 0.0  ;;  %v6794_v58 = vld [vmem:[%s7221_s25 + $0x330] sm:$0xff]   ;;  %v6798_v36 = vld [vmem:[%s7221_s25 + $0x328] sm:$0xff]  }
0x128f   : > { %v4331_v63 = vpop.f32.mrf.mxu1  ;;  %4899 = vmatprep.subr.bf16.mxu1 %v5978_v39  ;;  %v4394_v23 = vpop.f32.mrf.mxu0  ;;  %4962 = vmatprep.subr.bf16.mxu0 %v5980_v8  ;;  %v4413_v12 = vmax.f32 %v4385_v26, 0.0  ;;  %v6795_v26 = vld [vmem:[%s7221_s25 + $0x3b0] sm:$0xff]  }
0x1290   : > { %v4416_v24 = vmax.f32 %v4328_v13, 0.0  ;;  %v4418_v16 = vmax.f32 %v4391_v31, 0.0  ;;  %v4431_v17 = vpack.c.bf16 %v4415_v53, %v4411_v52  ;;  %v4332_v27 = vadd.f32 %v4331_v63, %v8186_v29  ;;  %v6797_v13 = vld [vmem:[%s7221_s25 + $0x3e8] sm:$0xff]   ;;  %v6800_v53 = vld [vmem:[%s7221_s25 + $0x360] sm:$0xff]   ;;  %v6808_v52 = vld [vmem:[%s7221_s25 + $0x350] sm:$0xff]  }
0x1291   : > { %v4333_v9 = vpop.f32.mrf.mxu1  ;;  %v4396_v59 = vpop.f32.mrf.mxu0  ;;  %v4433_v35 = vpack.c.bf16 %v4417_v18, %v4413_v12  ;;  %v4395_v5 = vadd.f32 %v4394_v23, %v8194_v56  ;;  %v6801_v31 = vld [vmem:[%s7221_s25 + $0x3e0] sm:$0xff]   ;;  %v6805_v18 = vld [vmem:[%s7221_s25 + $0x3d8] sm:$0xff]   ;;  %v6812_v12 = vld [vmem:[%s7221_s25 + $0x348] sm:$0xff]  }
0x1292   : > { %v4432_v57 = vpack.c.bf16 %v4416_v24, %v4412_v50  ;;  %4900 = vmatpush1.bf16.msra.mxu1 %v5977_v7  ;;  %v4434_v55 = vpack.c.bf16 %v4418_v16, %v4414_v20  ;;  %4963 = vmatpush1.bf16.msra.mxu0 %v5979_v60  ;;  %v4334_v54 = vadd.f32 %v4333_v9, %v8183_v21  ;;  %v6799_v7 = vld [vmem:[%s7221_s25 + $0x3a8] sm:$0xff]   ;;  %v6802_v63 = vld [vmem:[%s7221_s25 + $0x320] sm:$0xff]   ;;  %v6804_v50 = vld [vmem:[%s7221_s25 + $0x358] sm:$0xff]  }
0x1293   : > { %v4335_v45 = vpop.f32.mrf.mxu1  ;;  %v4398_v30 = vpop.f32.mrf.mxu0  ;;  %v4397_v61 = vadd.f32 %v4396_v59, %v8189_v22  ;;  %v4421_v49 = vmax.f32 %v4395_v5, 0.0  ;;  %v6803_v60 = vld [vmem:[%s7221_s25 + $0x3a0] sm:$0xff]   ;;  %v6806_v24 = vld [vmem:[%s7221_s25 + $0x318] sm:$0xff]   ;;  %v6809_v20 = vld [vmem:[%s7221_s25 + $0x3d0] sm:$0xff]  }
0x1294   : > { %v4336_v37 = vadd.f32 %v4335_v45, %v8186_v29  ;;  %4735 = vmatprep.mubr.bf16.mxu1 %v4432_v57  ;;  %v4399_v46 = vadd.f32 %v4398_v30, %v8194_v56  ;;  %4792 = vmatprep.mubr.bf16.mxu0 %v4434_v55  ;;  %v4420_v40 = vmax.f32 %v4334_v54, 0.0  ;;  %v4419_v29 = vmax.f32 %v4332_v27, 0.0  ;;  %v6791_v56 = vld [vmem:[%s7221_s25 + $0x3b8] sm:$0xff]   ;;  %v6810_v16 = vld [vmem:[%s7221_s25 + $0x310] sm:$0xff]   ;;  %v6813_v57 = vld [vmem:[%s7221_s25 + $0x3c8] sm:$0xff]  }
0x1295   : > { %v4337_v3 = vpop.f32.mrf.mxu1  ;;  %4736 = vmatmul.mubr.bf16.gmra.mxu1 %v4431_v17  ;;  %v4400_v34 = vpop.f32.mrf.mxu0  ;;  %4793 = vmatmul.mubr.bf16.gmra.mxu0 %v4433_v35  ;;  %v4422_v19 = vmax.f32 %v4397_v61, 0.0  ;;  %v6807_v23 = vld [vmem:[%s7221_s25 + $0x398] sm:$0xff]   ;;  %v6811_v9 = vld [vmem:[%s7221_s25 + $0x390] sm:$0xff]   ;;  %v6814_v59 = vld [vmem:[%s7221_s25 + $0x308] sm:$0xff]  }
0x1296   : > { %v4338_v10 = vadd.f32 %v4337_v3, %v8183_v21  ;;  %v4423_v2 = vmax.f32 %v4336_v37, 0.0  ;;  %v4401_v0 = vadd.f32 %v4400_v34, %v8189_v22  ;;  %v4425_v39 = vmax.f32 %v4399_v46, 0.0  ;;  %v6789_v21 = vld [vmem:[%s7221_s25 + $0x3f8] sm:$0xff]   ;;  %v6815_v17 = vld [vmem:[%s7221_s25 + $0x388] sm:$0xff]   ;;  %v6816_v55 = vld [vmem:[%s7221_s25 + $0x340] sm:$0xff]  }
0x1297   : > { %v6790_v22 = vld [vmem:[%s7221_s25 + $0x338] sm:$0xff]   ;;  %6365 = vmatprep.subr.bf16.mxu0 %v6789_v21  ;;  %v6817_v45 = vld [vmem:[%s7221_s25 + $0x3c0] sm:$0xff]   ;;  %v5443_v30 = vld [vmem:[%s8496_s27 + $0x8] sm:$0xff] }
0x1298   : > { %v4424_v33 = vmax.f32 %v4338_v10, 0.0  ;;  %v4426_v42 = vmax.f32 %v4401_v0, 0.0  ;;  %v4435_v41 = vpack.c.bf16 %v4423_v2, %v4419_v29  ;;  %v4437_v51 = vpack.c.bf16 %v4425_v39, %v4421_v49  ;;  %v6818_v35 = vld [vmem:[%s7221_s25 + $0x300] sm:$0xff]   ;;  %5452 = vperm.xlu1 %6689, %v5443_v30   ;;  %v5444_v27 = vld [vmem:[%s8496_s27 + $0x10] sm:$0xff] }
0x1299   : > { %v6819_v54 = vld [vmem:[%s7221_s25 + $0x380] sm:$0xff]  }
0x129a   : > { %v4436_v8 = vpack.c.bf16 %v4424_v33, %v4420_v40  ;;  %v4438_v6 = vpack.c.bf16 %v4426_v42, %v4422_v19  ;;  %v5442_v37 = vld [vmem:[%s8496_s27] sm:$0xff] }
0x129b   : > { %5447 = vperm.xlu0 %6688, %v5442_v37  }
0x129c   : > { %4743 = vmatprep.mubr.bf16.mxu1 %v4436_v8  ;;  %4800 = vmatprep.mubr.bf16.mxu0 %v4438_v6 }
0x129d   : > { %4744 = vmatmul.mubr.bf16.gmra.mxu1 %v4435_v41  ;;  %4801 = vmatmul.mubr.bf16.gmra.mxu0 %v4437_v51 }
0x129e   : > { %4917 = vmatprep.mubr.bf16.mxu1 %v8493_v32  ;;  %4980 = vmatprep.mubr.bf16.mxu0 %v8493_v32 }
0x129f   : > { %5457 = vperm.xlu1 %6689, %v5444_v27  }
0x12a5   : > { %5985 = vmatmul.mubr.msk.bf16.vlgmr.msra.gmra.mxu1 %vm1042_vm3, %v7826_v4  ;;  %5988 = vmatmul.mubr.msk.bf16.vlgmr.msra.gmra.mxu0 %vm1042_vm3, %v7826_v4  ;;  %v6788_v4 = vld [vmem:[%s7221_s25 + $0x378] sm:$0xff]  }
0x12a6   : > { %4927 = vmatprep.mubr.bf16.mxu1 %v8493_v32  ;;  %4990 = vmatprep.mubr.bf16.mxu0 %v8493_v32 }
0x12a7   : > { %6331 = vmatprep.subr.bf16.mxu1 %v6788_v4  ;;  %6366 = vmatpush3.bf16.msra.mxu0 %v6791_v56 }
0x12a8   : > { %6332 = vmatpush3.bf16.msra.mxu1 %v6790_v22 }
0x12ad   : > { %5986 = vmatmul.mubr.msk.bf16.gmra.mxu1 %vm1042_vm3, %v7836_v14  ;;  %5989 = vmatmul.mubr.msk.bf16.gmra.mxu0 %vm1042_vm3, %v7836_v14  ;;  %v6792_v14 = vld [vmem:[%s7221_s25 + $0x370] sm:$0xff]  }
0x12ae   : > { %4937 = vmatprep.mubr.bf16.mxu1 %v8493_v32  ;;  %5000 = vmatprep.mubr.bf16.mxu0 %v8493_v32  ;;  %v6793_v32 = vld [vmem:[%s7221_s25 + $0x3f0] sm:$0xff]  }
0x12af   : > { %6333 = vmatprep.subr.bf16.mxu1 %v6792_v14  ;;  %6367 = vmatprep.subr.bf16.mxu0 %v6793_v32 }
0x12b0   : > { %6334 = vmatpush3.bf16.msra.mxu1 %v6794_v58  ;;  %6368 = vmatpush3.bf16.msra.mxu0 %v6795_v26 }
0x12b1   : > { %6369 = vmatprep.subr.bf16.mxu0 %v6797_v13 }
0x12b4   : > { %6370 = vmatpush3.bf16.msra.mxu0 %v6799_v7 }
0x12b5   : > { %5987 = vmatmul.mubr.msk.bf16.gmra.mxu1 %vm1042_vm3, %v7845_v11  ;;  %5990 = vmatmul.mubr.msk.bf16.gmra.mxu0 %vm1042_vm3, %v7845_v11  ;;  %v6796_v11 = vld [vmem:[%s7221_s25 + $0x368] sm:$0xff]  }
0x12b6   : > { %6335 = vmatprep.subr.bf16.mxu1 %v6796_v11  ;;  %6371 = vmatprep.subr.bf16.mxu0 %v6801_v31 }
0x12b7   : > { %6336 = vmatpush3.bf16.msra.mxu1 %v6798_v36 }
0x12b8   : > { %6337 = vmatprep.subr.bf16.mxu1 %v6800_v53  ;;  %6372 = vmatpush3.bf16.msra.mxu0 %v6803_v60 }
0x12b9   : > { %6373 = vmatprep.subr.bf16.mxu0 %v6805_v18 }
0x12bb   : > { %6338 = vmatpush3.bf16.msra.mxu1 %v6802_v63 }
0x12bc   : > { %6339 = vmatprep.subr.bf16.mxu1 %v6804_v50  ;;  %6374 = vmatpush3.bf16.msra.mxu0 %v6807_v23 }
0x12bd   : > { %6375 = vmatprep.subr.bf16.mxu0 %v6809_v20 }
0x12bf   : > { %6340 = vmatpush3.bf16.msra.mxu1 %v6806_v24 }
0x12c0   : > { %6341 = vmatprep.subr.bf16.mxu1 %v6808_v52  ;;  %6376 = vmatpush3.bf16.msra.mxu0 %v6811_v9 }
0x12c1   : > { %6377 = vmatprep.subr.bf16.mxu0 %v6813_v57 }
0x12c3   : > { %6342 = vmatpush3.bf16.msra.mxu1 %v6810_v16 }
0x12c4   : > { %6343 = vmatprep.subr.bf16.mxu1 %v6812_v12  ;;  %6378 = vmatpush3.bf16.msra.mxu0 %v6815_v17 }
0x12c5   : > { %6379 = vmatprep.subr.bf16.mxu0 %v6817_v45 }
0x12c7   : > { %6344 = vmatpush3.bf16.msra.mxu1 %v6814_v59 }
0x12c8   : > { %6345 = vmatprep.subr.bf16.mxu1 %v6816_v55  ;;  %6380 = vmatpush3.bf16.msra.mxu0 %v6819_v54 }
0x12cb   : > { %6346 = vmatpush3.bf16.msra.mxu1 %v6818_v35 }
0x134d   : > { %v6279_v61 = vpop.f32.mrf.mxu1  ;;  %v6313_v46 = vpop.f32.mrf.mxu0 }
0x134f   : > { %v6280_v3 = vpop.f32.mrf.mxu1  ;;  %v6314_v10 = vpop.f32.mrf.mxu0 }
0x1350   : > { %v6281_v5 = vadd.f32 %v6280_v3, %v6279_v61  ;;  %v6315_v34 = vadd.f32 %v6314_v10, %v6313_v46 }
0x1351   : > { %v6282_v2 = vpop.f32.mrf.mxu1  ;;  %v6316_v0 = vpop.f32.mrf.mxu0 }
0x1352   : > { %v4787_v40 = vadd.f32 %v6315_v34, %v6281_v5 }
0x1353   : > { %v6283_v39 = vpop.f32.mrf.mxu1  ;;  %v6317_v29 = vpop.f32.mrf.mxu0 }
0x1354   : > { %v6284_v33 = vadd.f32 %v6283_v39, %v6282_v2  ;;  %v8290_v19 = vadd.f32 %v4787_v40, %v8171_v15  ;;  %v6318_v42 = vadd.f32 %v6317_v29, %v6316_v0 }
0x1355   : > { %v6285_v49 = vpop.f32.mrf.mxu1  ;;  %v6319_v8 = vpop.f32.mrf.mxu0 }
0x1356   : > { %v4790_v41 = vadd.f32 %v6318_v42, %v6284_v33 }
0x1357   : > { %v6286_v6 = vpop.f32.mrf.mxu1  ;;  %v6320_v4 = vpop.f32.mrf.mxu0 }
0x1358   : > { %v6287_v51 = vadd.f32 %v6286_v6, %v6285_v49  ;;  %v8293_v21 = vadd.f32 %v4790_v41, %v8173_v38  ;;  %v6321_v22 = vadd.f32 %v6320_v4, %v6319_v8 }
0x1359   : > { %v6288_v56 = vpop.f32.mrf.mxu1  ;;  %v6322_v14 = vpop.f32.mrf.mxu0 }
0x135a   : > { %v4795_v32 = vadd.f32 %v6321_v22, %v6287_v51 }
0x135b   : > { %v6289_v58 = vpop.f32.mrf.mxu1  ;;  %v6323_v11 = vpop.f32.mrf.mxu0 }
0x135c   : > { %v6290_v26 = vadd.f32 %v6289_v58, %v6288_v56  ;;  %v8296_v15 = vadd.f32 %v4795_v32, %v8175_v43  ;;  %v6324_v13 = vadd.f32 %v6323_v11, %v6322_v14  ;;  %v4823_v43 = vld [vmem:[%s7211_s11 + $0xc] sm:$0xf] }
0x135d   : > { %v6291_v36 = vpop.f32.mrf.mxu1  ;;  %v6325_v7 = vpop.f32.mrf.mxu0  ;;  %v8306_v17 = vrot.slane %v4823_v43, %v8494_v28  ;;  %v8312_v35 = vrot.slane %v4823_v43, %v8495_v47  ;;  %v8315_v54 = vrot.slane %v4823_v43, %v7958_v48 }
0x135e   : > { %v4798_v53 = vadd.f32 %v6324_v13, %v6290_v26 }
0x135f   : > { %v6292_v31 = vpop.f32.mrf.mxu1  ;;  %v6326_v60 = vpop.f32.mrf.mxu0 }
0x1360   : > { %v6293_v63 = vadd.f32 %v6292_v31, %v6291_v36  ;;  %v8299_v38 = vadd.f32 %v4798_v53, %v8177_v1  ;;  %v6327_v50 = vadd.f32 %v6326_v60, %v6325_v7  ;;  %v8309_v1 = vrot.slane %v4823_v43, %v7956_v44 }
0x1361   : > { %v6294_v18 = vpop.f32.mrf.mxu1  ;;  %v6328_v24 = vpop.f32.mrf.mxu0 }
0x1362   : > { %v4803_v23 = vadd.f32 %v6327_v50, %v6293_v63 }
0x1363   : > { %v6295_v52 = vpop.f32.mrf.mxu1  ;;  %v6329_v16 = vpop.f32.mrf.mxu0 }
0x1364   : > { %v6296_v20 = vadd.f32 %v6295_v52, %v6294_v18  ;;  %v8303_v9 = vadd.f32 %v4803_v23, %v8179_v25  ;;  %v6330_v12 = vadd.f32 %v6329_v16, %v6328_v24 }
0x1365   : > { %v4919_v57 = vpop.f32.mrf.mxu1  ;;  %v4982_v59 = vpop.f32.mrf.mxu0 }
0x1366   : > { %v4806_v55 = vadd.f32 %v6330_v12, %v6296_v20  ;;  %v4920_v44 = vadd.f32 %v4919_v57, %v8309_v1  ;;  %v4983_v48 = vadd.f32 %v4982_v59, %v8315_v54 }
0x1367   : > { %v4921_v45 = vpop.f32.mrf.mxu1  ;;  %v4984_v37 = vpop.f32.mrf.mxu0 }
0x1368   : > { %v8318_v25 = vadd.f32 %v4806_v55, %v8191_v62  ;;  %v4922_v27 = vadd.f32 %v4921_v45, %v8306_v17  ;;  %v4985_v46 = vadd.f32 %v4984_v37, %v8312_v35  ;;  %v5011_v29 = vmax.f32 %v4920_v44, 0.0 }
0x1369   : > { %v4923_v30 = vpop.f32.mrf.mxu1  ;;  %v4986_v61 = vpop.f32.mrf.mxu0  ;;  %v5013_v41 = vmax.f32 %v4983_v48, 0.0 }
0x136a   : > { %v4924_v28 = vadd.f32 %v4923_v30, %v8309_v1  ;;  %v4987_v47 = vadd.f32 %v4986_v61, %v8315_v54  ;;  %v5012_v0 = vmax.f32 %v4922_v27, 0.0  ;;  %v5014_v42 = vmax.f32 %v4985_v46, 0.0 }
0x136b   : > { %v4925_v3 = vpop.f32.mrf.mxu1  ;;  %v4988_v10 = vpop.f32.mrf.mxu0 }
0x136c   : > { %v4926_v5 = vadd.f32 %v4925_v3, %v8306_v17  ;;  %v5015_v62 = vmax.f32 %v4924_v28, 0.0  ;;  %v4989_v34 = vadd.f32 %v4988_v10, %v8312_v35  ;;  %v5017_v40 = vmax.f32 %v4987_v47, 0.0 }
0x136d   : > { %v4929_v2 = vpop.f32.mrf.mxu1  ;;  %v4992_v33 = vpop.f32.mrf.mxu0 }
0x136e   : > { %v5016_v39 = vmax.f32 %v4926_v5, 0.0  ;;  %v5018_v49 = vmax.f32 %v4989_v34, 0.0  ;;  %v5035_v4 = vpack.c.bf16 %v5015_v62, %v5011_v29  ;;  %v5037_v14 = vpack.c.bf16 %v5017_v40, %v5013_v41 }
0x136f   : > { %v4931_v8 = vpop.f32.mrf.mxu1  ;;  %v4994_v51 = vpop.f32.mrf.mxu0  ;;  %v4930_v11 = vadd.f32 %v4929_v2, %v8309_v1  ;;  %v4993_v53 = vadd.f32 %v4992_v33, %v8315_v54 }
0x1370   : > { %v5036_v6 = vpack.c.bf16 %v5016_v39, %v5012_v0  ;;  %v5038_v22 = vpack.c.bf16 %v5018_v49, %v5014_v42  ;;  %v4932_v32 = vadd.f32 %v4931_v8, %v8306_v17  ;;  %v4995_v13 = vadd.f32 %v4994_v51, %v8312_v35 }
0x1371   : > { %v4933_v56 = vpop.f32.mrf.mxu1  ;;  %v4996_v26 = vpop.f32.mrf.mxu0  ;;  %v5019_v16 = vmax.f32 %v4930_v11, 0.0  ;;  %v5021_v59 = vmax.f32 %v4993_v53, 0.0 }
0x1372   : > { %v4934_v58 = vadd.f32 %v4933_v56, %v8309_v1  ;;  %5335 = vmatprep.mubr.bf16.mxu1 %v5036_v6  ;;  %v4997_v36 = vadd.f32 %v4996_v26, %v8315_v54  ;;  %5392 = vmatprep.mubr.bf16.mxu0 %v5038_v22  ;;  %v5020_v24 = vmax.f32 %v4932_v32, 0.0  ;;  %v5022_v43 = vmax.f32 %v4995_v13, 0.0 }
0x1373   : > { %v4935_v7 = vpop.f32.mrf.mxu1  ;;  %5336 = vmatmul.mubr.bf16.vlgmr.msra.gmra.mxu1 %v5035_v4  ;;  %v4998_v63 = vpop.f32.mrf.mxu0  ;;  %5393 = vmatmul.mubr.bf16.vlgmr.msra.gmra.mxu0 %v5037_v14 }
0x1374   : > { %v4936_v31 = vadd.f32 %v4935_v7, %v8306_v17  ;;  %v5023_v60 = vmax.f32 %v4934_v58, 0.0  ;;  %v4999_v50 = vadd.f32 %v4998_v63, %v8312_v35  ;;  %v5025_v23 = vmax.f32 %v4997_v36, 0.0  ;;  %v6023_v63 = vld [vmem:[%s913_s29] ss:$0 sm:$0xff] }
0x1375   : > { %v4939_v18 = vpop.f32.mrf.mxu1  ;;  %v5002_v20 = vpop.f32.mrf.mxu0 }
0x1376   : > { %v5024_v52 = vmax.f32 %v4936_v31, 0.0  ;;  %v5026_v12 = vmax.f32 %v4999_v50, 0.0  ;;  %v5039_v37 = vpack.c.bf16 %v5023_v60, %v5019_v16  ;;  %v5041_v28 = vpack.c.bf16 %v5025_v23, %v5021_v59  ;;  %v5453_v59 = vpop.permute.xlu1 %5452 }
0x1377   : > { %v4941_v57 = vpop.f32.mrf.mxu1  ;;  %v5004_v45 = vpop.f32.mrf.mxu0  ;;  %v4940_v47 = vadd.f32 %v4939_v18, %v8309_v1  ;;  %v5003_v10 = vadd.f32 %v5002_v20, %v8315_v54  ;;  %v8497_v18 = vld [vmem:[#allocation9_spill] sm:$0xff] }
0x1378   : > { %v5040_v55 = vpack.c.bf16 %v5024_v52, %v5020_v24  ;;  %v5042_v30 = vpack.c.bf16 %v5026_v12, %v5022_v43  ;;  %v4942_v61 = vadd.f32 %v4941_v57, %v8306_v17  ;;  %v5005_v3 = vadd.f32 %v5004_v45, %v8312_v35  ;;  %v5448_v20 = vpop.permute.xlu0 %5447 }
0x1379   : > { %v4943_v27 = vpop.f32.mrf.mxu1  ;;  %v5006_v46 = vpop.f32.mrf.mxu0  ;;  %v5029_v49 = vmax.f32 %v5003_v10, 0.0 }
0x137a   : > { %v4944_v44 = vadd.f32 %v4943_v27, %v8309_v1  ;;  %5343 = vmatprep.mubr.bf16.mxu1 %v5040_v55  ;;  %v5007_v48 = vadd.f32 %v5006_v46, %v8315_v54  ;;  %5400 = vmatprep.mubr.bf16.mxu0 %v5042_v30  ;;  %v5028_v40 = vmax.f32 %v4942_v61, 0.0  ;;  %v5027_v1 = vmax.f32 %v4940_v47, 0.0  ;;  %v8498_v30 = vld [vmem:[#allocation10_spill] sm:$0xff] }
0x137b   : > { %v4945_v5 = vpop.f32.mrf.mxu1  ;;  %5344 = vmatmul.mubr.bf16.gmra.mxu1 %v5039_v37  ;;  %v5008_v34 = vpop.f32.mrf.mxu0  ;;  %5401 = vmatmul.mubr.bf16.gmra.mxu0 %v5041_v28  ;;  %v5030_v29 = vmax.f32 %v5005_v3, 0.0 }
0x137c   : > { %v4946_v62 = vadd.f32 %v4945_v5, %v8306_v17  ;;  %v5031_v2 = vmax.f32 %v4944_v44, 0.0  ;;  %v5009_v0 = vadd.f32 %v5008_v34, %v8312_v35  ;;  %v5033_v39 = vmax.f32 %v5007_v48, 0.0 }
0x137e   : > { %v5032_v33 = vmax.f32 %v4946_v62, 0.0  ;;  %v5034_v42 = vmax.f32 %v5009_v0, 0.0  ;;  %v5043_v41 = vpack.c.bf16 %v5031_v2, %v5027_v1  ;;  %v5045_v51 = vpack.c.bf16 %v5033_v39, %v5029_v49  ;;  %v8499_v62 = vld [vmem:[#allocation11_spill] sm:$0xff] }
0x1380   : > { %v5044_v8 = vpack.c.bf16 %v5032_v33, %v5028_v40  ;;  %v5046_v6 = vpack.c.bf16 %v5034_v42, %v5030_v29  ;;  %v5458_v40 = vpop.permute.xlu1 %5457  ;;  %v8500_v42 = vld [vmem:[#allocation12_spill] sm:$0xff] }
0x1382   : > { %5351 = vmatprep.mubr.bf16.mxu1 %v5044_v8  ;;  %5408 = vmatprep.mubr.bf16.mxu0 %v5046_v6 }
0x1383   : > { %5352 = vmatmul.mubr.bf16.gmra.mxu1 %v5043_v41  ;;  %5409 = vmatmul.mubr.bf16.gmra.mxu0 %v5045_v51 }
0x1433   : > { %v6347_v17 = vpop.f32.mrf.mxu1  ;;  %v6381_v54 = vpop.f32.mrf.mxu0 }
0x1435   : > { %v6348_v4 = vpop.f32.mrf.mxu1  ;;  %v6382_v22 = vpop.f32.mrf.mxu0 }
0x1436   : > { %v6349_v35 = vadd.f32 %v6348_v4, %v6347_v17  ;;  %v6383_v56 = vadd.f32 %v6382_v22, %v6381_v54  ;;  %v8501_v22 = vld [vmem:[#allocation13_spill] sm:$0xff] }
0x1437   : > { %v6350_v14 = vpop.f32.mrf.mxu1  ;;  %v6384_v32 = vpop.f32.mrf.mxu0 }
0x1438   : > { %v5395_v58 = vadd.f32 %v6383_v56, %v6349_v35 }
0x1439   : > { %v6351_v26 = vpop.f32.mrf.mxu1  ;;  %v6385_v13 = vpop.f32.mrf.mxu0 }
0x143a   : > { %v6352_v11 = vadd.f32 %v6351_v26, %v6350_v14  ;;  %v5417_v36 = vadd.f32 %v5395_v58, %v8290_v19  ;;  %v6386_v7 = vadd.f32 %v6385_v13, %v6384_v32 }
0x143b   : > { %v6353_v53 = vpop.f32.mrf.mxu1  ;;  %v6387_v31 = vpop.f32.mrf.mxu0 }
0x143c   : > { %v5398_v60 = vadd.f32 %v6386_v7, %v6352_v11  ;;  %v5423_v24 = vadd.f32 %v5417_v36, %v8497_v18  ;;  %v8502_v11 = vld [vmem:[#allocation14_spill] sm:$0xff] }
0x143d   : > { %v6354_v50 = vpop.f32.mrf.mxu1  ;;  %v6388_v52 = vpop.f32.mrf.mxu0 }
0x143e   : > { %v6355_v23 = vadd.f32 %v6354_v50, %v6353_v53  ;;  %v5418_v16 = vadd.f32 %v5398_v60, %v8293_v21  ;;  %v6389_v43 = vadd.f32 %v6388_v52, %v6387_v31  ;;  %v5436_v12 = vadd.f32 %v6023_v63, %v5423_v24 }
0x143f   : > { %v6356_v19 = vpop.f32.mrf.mxu1  ;;  %v6390_v57 = vpop.f32.mrf.mxu0 }
0x1440   : > { %v5403_v55 = vadd.f32 %v6389_v43, %v6355_v23  ;;  %v5460_v45 = vmul.f32 %v5448_v20, %v5436_v12  ;;  %v5424_v27 = vadd.f32 %v5418_v16, %v8498_v30 }
0x1441   : > { %v6357_v37 = vpop.f32.mrf.mxu1  ;;  %v6391_v61 = vpop.f32.mrf.mxu0 }
0x1442   : > { %v6358_v28 = vadd.f32 %v6357_v37, %v6356_v19  ;;  %v5419_v44 = vadd.f32 %v5403_v55, %v8296_v15  ;;  %5466 = vst.msk [vmem:[#allocation2] sm:$0xff] %vm1042_vm3, %v5460_v45  ;;  %v6392_v46 = vadd.f32 %v6391_v61, %v6390_v57  ;;  %v5437_v3 = vadd.f32 %v6023_v63, %v5424_v27 }
0x1443   : > { %v6359_v47 = vpop.f32.mrf.mxu1  ;;  %v6393_v21 = vpop.f32.mrf.mxu0 }
0x1444   : > { %v5406_v48 = vadd.f32 %v6392_v46, %v6358_v28  ;;  %v5461_v5 = vmul.f32 %v5453_v59, %v5437_v3  ;;  %v5425_v34 = vadd.f32 %v5419_v44, %v8499_v62 }
0x1445   : > { %v6360_v10 = vpop.f32.mrf.mxu1  ;;  %v6394_v0 = vpop.f32.mrf.mxu0 }
0x1446   : > { %v6361_v2 = vadd.f32 %v6360_v10, %v6359_v47  ;;  %v5420_v39 = vadd.f32 %v5406_v48, %v8299_v38  ;;  %5467 = vst.msk [vmem:[#allocation2 + $0x8] sm:$0xff] %vm1042_vm3, %v5461_v5  ;;  %v6395_v33 = vadd.f32 %v6394_v0, %v6393_v21  ;;  %v5438_v1 = vadd.f32 %v6023_v63, %v5425_v34 }
0x1447   : > { %v6362_v15 = vpop.f32.mrf.mxu1  ;;  %v6396_v29 = vpop.f32.mrf.mxu0 }
0x1448   : > { %v5426_v49 = vadd.f32 %v5420_v39, %v8500_v42  ;;  %v5411_v8 = vadd.f32 %v6395_v33, %v6361_v2  ;;  %v5462_v41 = vmul.f32 %v5458_v40, %v5438_v1 }
0x1449   : > { %v6363_v6 = vpop.f32.mrf.mxu1  ;;  %v6397_v17 = vpop.f32.mrf.mxu0 }
0x144a   : > { %v6364_v51 = vadd.f32 %v6363_v6, %v6362_v15  ;;  %v5439_v54 = vadd.f32 %v6023_v63, %v5426_v49  ;;  %v5421_v4 = vadd.f32 %v5411_v8, %v8303_v9  ;;  %5468 = vst.msk [vmem:[#allocation2 + $0x10] sm:$0xff] %vm1042_vm3, %v5462_v41  ;;  %v6398_v35 = vadd.f32 %v6397_v17, %v6396_v29 }
0x144c   : > { %v5463_v38 = vmul.f32 %v5448_v20, %v5439_v54  ;;  %v5427_v56 = vadd.f32 %v5421_v4, %v8501_v22  ;;  %v5414_v14 = vadd.f32 %v6398_v35, %v6364_v51 }
0x144e   : > { %5469 = vst.msk [vmem:[#allocation2 + $0x18] sm:$0xff] %vm1042_vm3, %v5463_v38  ;;  %v5440_v32 = vadd.f32 %v6023_v63, %v5427_v56  ;;  %v5422_v58 = vadd.f32 %v5414_v14, %v8318_v25 }
0x1450   : > { %v5464_v26 = vmul.f32 %v5453_v59, %v5440_v32  ;;  %v5428_v13 = vadd.f32 %v5422_v58, %v8502_v11 }
0x1452   : > { %5470 = vst.msk [vmem:[#allocation2 + $0x20] sm:$0xff] %vm1042_vm3, %v5464_v26  ;;  %v5441_v36 = vadd.f32 %v6023_v63, %v5428_v13  ;;  %5475 = sbr.rel (%p6024_p6) target bundleno = 5719 (0x1657), region = 120 }
0x1454   : > { %v5465_v7 = vmul.f32 %v5458_v40, %v5441_v36 }
0x1456   : > { %5471 = vst.msk [vmem:[#allocation2 + $0x28] sm:$0xff] %vm1042_vm3, %v5465_v7 }
0x1457   : > { %v5477_v9 = vrot.slane %v5463_v38, 7  ;;  %vm5479_vm8 = vcmask 1040384   ;;  %vm5483_vm9 = vcmask 254976   ;;  %v6949_v63 = vld [vmem:[%s8431_s21 + $0x8] sm:$0xff]   ;;  %v7019_v23 = vmov 0.0   ;;  %v6950_v52 = vld [vmem:[%s8431_s21] sm:$0xff]  }
0x1458   : > { %6608 = vmatprep.subr.bf16.mxu0 %v7019_v23  ;;  %vm7020_vm10 = vmmov 0   ;;  %v6025_v19 = vld [vmem:[%s8503_s2] ss:$0 sm:$0xff]  ;;  %vm5578_vm11 = vcmask 74752  }
0x1459   : > { %v5480_v53 = vsel %vm5479_vm8, %v5460_v45, %v5477_v9  ;;  %6612 = vmatprep.mubr.msk.bf16.mxu0 %vm7020_vm10, %v7019_v23  ;;  %6609 = vmatpush3.bf16.msra.mxu0 %v6949_v63  ;;  %v6026_v59 = vld [vmem:[%s8504_s19] ss:$0 sm:$0xff] }
0x145a   : > { %v5484_v31 = vsel %vm5483_vm9, %v5480_v53, 0.0  ;;  %6610 = vmatprep.subr.bf16.mxu0 %v7019_v23  ;;  %v6027_v30 = vld [vmem:[%s8505_s22] ss:$0 sm:$0xff] }
0x145b   : > { %5485 = vadd.xlane.f32.xlu0 %v5484_v31 }
0x145d   : > { %6611 = vmatpush3.bf16.msra.mxu0 %v6950_v52 }
0x14e4   : > { %v5486_v60 = vpop.xlane.xlu0 %5485 }
0x14e5   : > { %v5487_v25 = vmul.f32 0.03125, %v5486_v60 }
0x14e7   : > { %v5488_v50 = vsub.f32 %v5480_v53, %v5487_v25 }
0x14e9   : > { %v5489_v18 = vmul.f32 %v5488_v50, %v5488_v50 }
0x14eb   : > { %v5490_v24 = vsel %vm5483_vm9, %v5489_v18, 0.0 }
0x14ec   : > { %5491 = vadd.xlane.f32.xlu0 %v5490_v24 }
0x1575   : > { %v5492_v20 = vpop.xlane.xlu0 %5491 }
0x1576   : > { %v5493_v16 = vmul.f32 0.03125, %v5492_v20 }
0x1578   : > { %v5494_v43 = vadd.f32 1e-05, %v5493_v16 }
0x157a   : > { %6951 = vrsqrt.f32 %v5494_v43 }
0x1587   : > { %v6952_v12 = vpop.eup %6951 }
0x1588   : > { %v5496_v57 = vmul.f32 %v6952_v12, %v5488_v50 }
0x158a   : > { %v5503_v55 = vmul.f32 %v6025_v19, %v5496_v57 }
0x158c   : > { %v5510_v45 = vadd.f32 %v6026_v59, %v5503_v55 }
0x158e   : > { %v5511_v37 = vpack.c.bf16 %v5510_v45, %v5510_v45 }
0x1590   : > { %6613 = vmatmul.mubr.msk.bf16.vlgmr.msra.gmra.mxu0 %vm1042_vm3, %v5511_v37 }
0x1650   : > { %v5572_v27 = vpop.f32.mrf.mxu0 }
0x1651   : > { %v5573_v28 = vadd.f32 %v6027_v30, %v5572_v27 }
0x1652   : > { %v6614_v61 = vpop.f32.mrf.mxu0 }
0x1653   : > { %5579 = vst.msk [vmem:[#allocation3] sm:$0x3] %vm5578_vm11, %v5573_v28 }
0x1654   : > { %v5575_v44 = vpop.f32.mrf.mxu0 }
0x1656   : > { %v6615_v46 = vpop.f32.mrf.mxu0 }
0x1657 PF: > { %s8506_s28 = sld [smem:[#allocation7_spill]]  ;;  %s7021_s25 = smov [#allocation3]  }
0x1658   : > { %s5589_s1 = sshll.u32 %s7021_s25, 4  ;;  %s5590_s1 = int_to_ptr.vmem [resolvable:$true] %s5589_s1 }
0x1659   : > { %s6953_s29 = scalar_lea.vmem %s5590_s1, 32  ;;  %p6960_p11 = scmp.lt.s32.totalorder %s5590_s1, %s5590_s1 }
0x165a   : > { %p6954_p8 = scmp.ne.s32.totalorder %s5590_s1, %s6953_s29  ;;  %p6961_p12 = scmp.lt.s32.totalorder %s6953_s29, %s6953_s29 }
0x165c   : > { %p6962_p13 = por %p6961_p12, %p6960_p11 }
0x165d   : > { %s8507_s30 = sadd.s32 4294967295, %s8506_s28  }
0x165e   : > { %p8386_p7 = scmp.eq.s32.totalorder %s8507_s30, 1 }
0x1660   : > { %p6955_p9 = pnand %p6954_p8, %p8386_p7 }
0x1662   : > { %p6956_p10 = pneg %p6955_p9 }
0x1664   : > { %p6963_p0 = pnand %p6962_p13, %p6956_p10 }
0x1666   : > { %6966 = shalt.err (!%p6963_p0)
}
0x1667   : > { %s8509_s5 = sld [smem:[#allocation30_spill]] }
0x166d   : > { %6641 = dma.vmem_to_hbm [thread:$0]  (%p8386_p7), %s5590_s1, 32, %s8509_s5, [#allocation4]  }
0x166e   : > { %6990 = dma.done.wait (%p8386_p7), [#allocation4], 32  }
0x166f   : > { %6992 = vsyncadd (%p8386_p7), [#allocation4], 4294967264 }
0x1670 PF: > { %s8510_s26 = sld [smem:[#allocation7_spill]] }
0x1671   : > { %s8511_s4 = sld [smem:[#allocation6_spill]] }
0x1672   : > { %s8512_s30 = sld [smem:[#allocation8_spill]] }
0x1676   : > { %s34_s24 = sadd.s32 1, %s8510_s26  }
0x1677   : > { %p31_p1 = scmp.ge.s32.totalorder %s34_s24, 4  }
0x1679   :  { %33 = sbr.rel (!%p31_p1) target bundleno = 17 (0x11), region = 184 }
0x167e   :  { %5602 = vsyncpa [#allocation4], 1 }
0x167f   :  { %5604 = vsyncpa [#allocation4 + $0x1], 1 }

</bundles_post_ra>
